<compile_context>
chip_gen: v7x
topology: tpu7x:2x2x1
jax: 0.10.0
libtpu: 0.0.40
codegen_flags: <defaults>
</compile_context>

<pallas_src>
import functools

import jax
import jax.numpy as jnp
from jax.experimental import pallas as pl
from jax.experimental.pallas import tpu as pltpu

MAX_B_TILE = 512   # max batch rows per grid step (VMEM is a non-issue here)
LANE = 128


def _round_up(n, m):
    return ((n + m - 1) // m) * m


@functools.lru_cache(maxsize=None)
def _num_tensorcores_per_chip():
    """2 on v7x-class chips (megacore via 'parallel' grid axis), else 1."""
    try:
        kind = jax.devices()[0].device_kind.lower()
    except Exception:
        return 1
    return 2 if ("v7" in kind or "7x" in kind) else 1


@functools.lru_cache(maxsize=None)
def _single_buffer_supported():
    """Probe (outside jit) whether pipeline_mode=pl.Buffered(1) lowers here."""
    def copy_kernel(x_ref, o_ref):
        o_ref[...] = x_ref[...]

    try:
        out = pl.pallas_call(
            copy_kernel,
            out_shape=jax.ShapeDtypeStruct((8, LANE), jnp.float32),
            grid=(2,),
            in_specs=[pl.BlockSpec((8, LANE), lambda i: (0, 0),
                                   pipeline_mode=pl.Buffered(1))],
            out_specs=pl.BlockSpec((8, LANE), lambda i: (0, 0)),
        )(jnp.zeros((8, LANE), jnp.float32))
        jax.block_until_ready(out)
        return True
    except Exception:
        return False


def _choose_tiling(batch, n_cores):
    """(padded_batch, tile_rows, n_tiles): as few grid steps as possible
    (per-step overhead ~0.35us dominates this tiny MLP), 128-row tile
    multiples, and n_tiles a multiple of n_cores so v7x uses both TCs."""
    bp = _round_up(max(batch, 1), LANE)
    n_tiles = max(1, -(-bp // MAX_B_TILE))        # ceil-div
    n_tiles = _round_up(n_tiles, n_cores)
    tile = _round_up(-(-bp // n_tiles), LANE)     # ceil-div, 128-multiple
    return tile * n_tiles, tile, n_tiles


def _actor_kernel(x_ref, w1_ref, b1_ref, w2_ref, b2_ref, w3_ref, b3_ref, o_ref):
    # Layer 1 in f32: K = input_dim is tiny, so the f32 MXU pass is ~free and
    # keeps parity with the f32 reference (no wrapper-side cast of x needed).
    x = x_ref[...]                                                      # (Bt, D)   f32
    h1 = jnp.dot(x, w1_ref[...], preferred_element_type=jnp.float32)   # (Bt, H1p) f32
    h1 = jnp.maximum(h1 + b1_ref[...], 0.0)                            # ReLU (f32 VPU)
    # Layers 2/3: bf16 x bf16 -> f32 accumulation on the MXU.
    h2 = jnp.dot(h1.astype(jnp.bfloat16), w2_ref[...],
                 preferred_element_type=jnp.float32)                   # (Bt, H2p) f32
    h2 = jnp.maximum(h2 + b2_ref[...], 0.0)                            # ReLU (f32 VPU)
    h3 = jnp.dot(h2.astype(jnp.bfloat16), w3_ref[...],
                 preferred_element_type=jnp.float32)                   # (Bt, Ap)  f32
    o_ref[...] = jnp.tanh(h3 + b3_ref[...])                            # lane-dense store


def prepare_actor_params(w1, b1, w2, b2, w3, b3):
    """One-time parameter prep (call at init / after updates, NOT per forward):
    transpose from PyTorch (out, in) to (in, out), zero-pad output dims to
    128-multiples, cast w2/w3 to bf16 (w1 stays f32 for the f32 first layer).
    Zero-padded rows/cols + zero biases give exactly-zero padded activations
    (relu(0)=0, tanh(0)=0), so valid columns are never contaminated."""
    D = w1.shape[1]
    H1, H2, A = w1.shape[0], w2.shape[0], w3.shape[0]
    H1p, H2p, Ap = _round_up(H1, LANE), _round_up(H2, LANE), _round_up(A, LANE)

    def padw(wt, rows, cols, dtype):
        return jnp.pad(wt, ((0, rows - wt.shape[0]),
                            (0, cols - wt.shape[1]))).astype(dtype)

    def padb(b, cols):
        return jnp.pad(b, (0, cols - b.shape[0])).astype(jnp.float32)[None, :]

    return (padw(w1.T, D,   H1p, jnp.float32),  padb(b1, H1p),
            padw(w2.T, H1p, H2p, jnp.bfloat16), padb(b2, H2p),
            padw(w3.T, H2p, Ap,  jnp.bfloat16), padb(b3, Ap))


@functools.partial(jax.jit,
                   static_argnames=("nb_actions", "n_cores", "single_buffer"))
def _actor_forward_jit(x, w1, b1, w2, b2, w3, b3, *,
                       nb_actions, n_cores, single_buffer):
    B, D = x.shape
    H1p, H2p, Ap = w1.shape[1], w2.shape[1], w3.shape[1]

    Bp, b_tile, n_tiles = _choose_tiling(B, n_cores)
    if Bp != B:
        x = jnp.pad(x, ((0, Bp - B), (0, 0)))   # only when batch isn't a tile multiple

    def resident(shape):
        # Weights/biases use the same block every grid step: keep them VMEM
        # resident; single-buffer them (double-buffering an invariant is waste).
        if single_buffer:
            return pl.BlockSpec(shape, lambda i: (0, 0),
                                pipeline_mode=pl.Buffered(1))
        return pl.BlockSpec(shape, lambda i: (0, 0))

    flops = 2 * Bp * (D * H1p + H1p * H2p + H2p * Ap)
    bytes_accessed = (Bp * D * 4 + w1.size * 4 + (w2.size + w3.size) * 2
                      + (b1.size + b2.size + b3.size) * 4 + Bp * Ap * 4)
    cost = pl.CostEstimate(flops=flops, transcendentals=Bp * Ap,
                           bytes_accessed=bytes_accessed)

    out = pl.pallas_call(
        _actor_kernel,
        out_shape=jax.ShapeDtypeStruct((Bp, Ap), jnp.float32),
        grid=(n_tiles,),
        in_specs=[
            pl.BlockSpec((b_tile, D), lambda i: (i, 0)),   # x tiles stream
            resident((D, H1p)),   resident((1, H1p)),
            resident((H1p, H2p)), resident((1, H2p)),
            resident((H2p, Ap)),  resident((1, Ap)),
        ],
        out_specs=pl.BlockSpec((b_tile, Ap), lambda i: (i, 0)),
        compiler_params=pltpu.CompilerParams(
            dimension_semantics=("parallel",)),
        cost_estimate=cost,
    )(x, w1, b1, w2, b2, w3, b3)

    return out[:B, :nb_actions]


def actor_forward(x, w1, b1, w2, b2, w3, b3, *, nb_actions):
    """x: (B, input_dim) f32. Params already run through prepare_actor_params."""
    return _actor_forward_jit(
        x, w1, b1, w2, b2, w3, b3,
        nb_actions=nb_actions,
        n_cores=_num_tensorcores_per_chip(),
        single_buffer=_single_buffer_supported())


def init_actor_params(key, input_dim, nb_actions, hidden1=400, hidden2=300,
                      init_w=0.003):
    """Deterministic init mirroring the PyTorch module (PyTorch (out, in) layout).

    fanin_init uses size[0] of the weight (= out_features) as fan-in, exactly
    as the reference code does; fc3 weight uses uniform(-init_w, init_w).
    Biases follow nn.Linear default: uniform(+-1/sqrt(in_features))."""
    ks = jax.random.split(key, 6)

    def u(k, shape, bound):
        return jax.random.uniform(k, shape, jnp.float32, -bound, bound)

    w1 = u(ks[0], (hidden1, input_dim), 1.0 / jnp.sqrt(hidden1))
    b1 = u(ks[1], (hidden1,), 1.0 / jnp.sqrt(input_dim))
    w2 = u(ks[2], (hidden2, hidden1), 1.0 / jnp.sqrt(hidden2))
    b2 = u(ks[3], (hidden2,), 1.0 / jnp.sqrt(hidden1))
    w3 = u(ks[4], (nb_actions, hidden2), init_w)
    b3 = u(ks[5], (nb_actions,), 1.0 / jnp.sqrt(hidden2))
    return w1, b1, w2, b2, w3, b3


# TODO(synk): checkpoint save/load, soft_update/hard_update and .cuda() are
# framework plumbing with no kernel equivalent; only forward() is implemented.

if __name__ == "__main__":
    key = jax.random.PRNGKey(0)
    batch, input_dim, nb_actions = 256, 16, 4
    hidden1, hidden2 = 400, 300

    k_x, k_p = jax.random.split(key)
    x = jax.random.normal(k_x, (batch, input_dim), jnp.float32)

    raw_params = init_actor_params(k_p, input_dim, nb_actions, hidden1, hidden2)
    prepared = prepare_actor_params(*raw_params)   # one-time prep (outside jit)

    out = actor_forward(x, *prepared, nb_actions=nb_actions)
    jax.block_until_ready(out)

    # Reference check in plain JAX f32 with the original (PyTorch-layout) params.
    w1, b1, w2, b2, w3, b3 = raw_params
    h1 = jnp.maximum(x @ w1.T + b1, 0.0)
    h2 = jnp.maximum(h1 @ w2.T + b2, 0.0)
    ref = jnp.tanh(h2 @ w3.T + b3)

    assert out.shape == (batch, nb_actions)
    max_err = float(jnp.max(jnp.abs(out - ref)))
    assert max_err < 2e-2, f"max abs error {max_err} too large"

    print("KERNEL_OK")
</pallas_src>

<mosaic_0001>
module attributes {stable_mosaic.version = 11 : i64} {
  func.func @copy_kernel(%arg0: i32, %arg1: memref<8x128xf32, #tpu.memory_space<vmem>>, %arg2: memref<8x128xf32, #tpu.memory_space<vmem>>) attributes {dimension_semantics = [#tpu.dimension_semantics<arbitrary>], iteration_bounds = array<i64: 2>, scalar_prefetch = 0 : i64, scratch_operands = 0 : i64, tpu.core_type = #tpu.core_type<tc>, window_params = [{pipeline_mode = #tpu.pipeline_mode<synchronous>, transform_indices = @transform_0, window_bounds = array<i64: 8, 128>}, {pipeline_mode = #tpu.pipeline_mode<synchronous>, transform_indices = @transform_1, window_bounds = array<i64: 8, 128>}]} {
    %c0 = arith.constant 0 : index
    %c0_0 = arith.constant 0 : index
    %0 = vector.load %arg1[%c0, %c0_0] : memref<8x128xf32, #tpu.memory_space<vmem>>, vector<8x128xf32>
    %c0_1 = arith.constant 0 : index
    %c0_2 = arith.constant 0 : index
    %1 = vector.load %arg2[%c0_1, %c0_2] : memref<8x128xf32, #tpu.memory_space<vmem>>, vector<8x128xf32>
    tpu.vector_store %arg2[%c0_1, %c0_2], %0 {strides = array<i32>} : memref<8x128xf32, #tpu.memory_space<vmem>>, vector<8x128xf32>,
    return
  }
  func.func @transform_0(%arg0: i32) -> (i32, i32) {
    %c0_i32 = arith.constant 0 : i32
    %c0_i32_0 = arith.constant 0 : i32
    %c0_i32_1 = arith.constant 0 : i32
    return %c0_i32, %c0_i32_0 : i32, i32
  }
  func.func @transform_1(%arg0: i32) -> (i32, i32) {
    %c0_i32 = arith.constant 0 : i32
    %c0_i32_0 = arith.constant 0 : i32
    %c0_i32_1 = arith.constant 0 : i32
    return %c0_i32, %c0_i32_0 : i32, i32
  }
}

module attributes {stable_mosaic.version = 11 : i64} {
  func.func @_actor_kernel(%arg0: i32, %arg1: memref<256x16xf32, #tpu.memory_space<vmem>>, %arg2: memref<16x512xf32, #tpu.memory_space<vmem>>, %arg3: memref<1x512xf32, #tpu.memory_space<vmem>>, %arg4: memref<512x384xbf16, #tpu.memory_space<vmem>>, %arg5: memref<1x384xf32, #tpu.memory_space<vmem>>, %arg6: memref<384x128xbf16, #tpu.memory_space<vmem>>, %arg7: memref<1x128xf32, #tpu.memory_space<vmem>>, %arg8: memref<256x128xf32, #tpu.memory_space<vmem>>) attributes {dimension_semantics = [#tpu.dimension_semantics<parallel>], iteration_bounds = array<i64: 1>, scalar_prefetch = 0 : i64, scratch_operands = 0 : i64, tpu.core_type = #tpu.core_type<tc>, window_params = [{transform_indices = @transform_0, window_bounds = array<i64: 256, 16>}, {pipeline_mode = #tpu.pipeline_mode<synchronous>, transform_indices = @transform_1, window_bounds = array<i64: 16, 512>}, {pipeline_mode = #tpu.pipeline_mode<synchronous>, transform_indices = @transform_2, window_bounds = array<i64: 1, 512>}, {pipeline_mode = #tpu.pipeline_mode<synchronous>, transform_indices = @transform_3, window_bounds = array<i64: 512, 384>}, {pipeline_mode = #tpu.pipeline_mode<synchronous>, transform_indices = @transform_4, window_bounds = array<i64: 1, 384>}, {pipeline_mode = #tpu.pipeline_mode<synchronous>, transform_indices = @transform_5, window_bounds = array<i64: 384, 128>}, {pipeline_mode = #tpu.pipeline_mode<synchronous>, transform_indices = @transform_6, window_bounds = array<i64: 1, 128>}, {transform_indices = @transform_7, window_bounds = array<i64: 256, 128>}]} {
    %c0 = arith.constant 0 : index
    %c0_0 = arith.constant 0 : index
    %0 = vector.load %arg1[%c0, %c0_0] : memref<256x16xf32, #tpu.memory_space<vmem>>, vector<256x16xf32>
    %c0_1 = arith.constant 0 : index
    %c0_2 = arith.constant 0 : index
    %1 = vector.load %arg2[%c0_1, %c0_2] : memref<16x512xf32, #tpu.memory_space<vmem>>, vector<16x512xf32>
    %cst = arith.constant dense<0.000000e+00> : vector<256x512xf32>
    %2 = tpu.matmul %0, %1, %cst {dimension_numbers = #tpu.dot_dimension_numbers<[1], [0], [0], [1], [0, 0, 1, 1], [], []>} : vector<256x16xf32>, vector<16x512xf32>, vector<256x512xf32> -> vector<256x512xf32>
    %c0_3 = arith.constant 0 : index
    %c0_4 = arith.constant 0 : index
    %3 = vector.load %arg3[%c0_3, %c0_4] : memref<1x512xf32, #tpu.memory_space<vmem>>, vector<1x512xf32>
    %4 = vector.broadcast %3 : vector<1x512xf32> to vector<256x512xf32>
    %5 = arith.addf %2, %4 : vector<256x512xf32>
    %cst_5 = arith.constant 0.000000e+00 : f32
    %6 = vector.broadcast %cst_5 : f32 to vector<256x512xf32>
    %7 = arith.maximumf %5, %6 : vector<256x512xf32>
    %8 = arith.truncf %7 : vector<256x512xf32> to vector<256x512xbf16>
    %c0_6 = arith.constant 0 : index
    %c0_7 = arith.constant 0 : index
    %9 = vector.load %arg4[%c0_6, %c0_7] : memref<512x384xbf16, #tpu.memory_space<vmem>>, vector<512x384xbf16>
    %cst_8 = arith.constant dense<0.000000e+00> : vector<256x384xf32>
    %10 = tpu.matmul %8, %9, %cst_8 {dimension_numbers = #tpu.dot_dimension_numbers<[1], [0], [0], [1], [0, 0, 1, 1], [], []>} : vector<256x512xbf16>, vector<512x384xbf16>, vector<256x384xf32> -> vector<256x384xf32>
    %c0_9 = arith.constant 0 : index
    %c0_10 = arith.constant 0 : index
    %11 = vector.load %arg5[%c0_9, %c0_10] : memref<1x384xf32, #tpu.memory_space<vmem>>, vector<1x384xf32>
    %12 = vector.broadcast %11 : vector<1x384xf32> to vector<256x384xf32>
    %13 = arith.addf %10, %12 : vector<256x384xf32>
    %cst_11 = arith.constant 0.000000e+00 : f32
    %14 = vector.broadcast %cst_11 : f32 to vector<256x384xf32>
    %15 = arith.maximumf %13, %14 : vector<256x384xf32>
    %16 = arith.truncf %15 : vector<256x384xf32> to vector<256x384xbf16>
    %c0_12 = arith.constant 0 : index
    %c0_13 = arith.constant 0 : index
    %17 = vector.load %arg6[%c0_12, %c0_13] : memref<384x128xbf16, #tpu.memory_space<vmem>>, vector<384x128xbf16>
    %cst_14 = arith.constant dense<0.000000e+00> : vector<256x128xf32>
    %18 = tpu.matmul %16, %17, %cst_14 {dimension_numbers = #tpu.dot_dimension_numbers<[1], [0], [0], [1], [0, 0, 1, 1], [], []>} : vector<256x384xbf16>, vector<384x128xbf16>, vector<256x128xf32> -> vector<256x128xf32>
    %c0_15 = arith.constant 0 : index
    %c0_16 = arith.constant 0 : index
    %19 = vector.load %arg7[%c0_15, %c0_16] : memref<1x128xf32, #tpu.memory_space<vmem>>, vector<1x128xf32>
    %20 = vector.broadcast %19 : vector<1x128xf32> to vector<256x128xf32>
    %21 = arith.addf %18, %20 : vector<256x128xf32>
    %22 = math.tanh %21 : vector<256x128xf32>
    %c0_17 = arith.constant 0 : index
    %c0_18 = arith.constant 0 : index
    %23 = vector.load %arg8[%c0_17, %c0_18] : memref<256x128xf32, #tpu.memory_space<vmem>>, vector<256x128xf32>
    tpu.vector_store %arg8[%c0_17, %c0_18], %22 {strides = array<i32>} : memref<256x128xf32, #tpu.memory_space<vmem>>, vector<256x128xf32>,
    return
  }
  func.func @transform_0(%arg0: i32) -> (i32, i32) {
    %c0_i32 = arith.constant 0 : i32
    %c0_i32_0 = arith.constant 0 : i32
    return %arg0, %c0_i32 : i32, i32
  }
  func.func @transform_1(%arg0: i32) -> (i32, i32) {
    %c0_i32 = arith.constant 0 : i32
    %c0_i32_0 = arith.constant 0 : i32
    %c0_i32_1 = arith.constant 0 : i32
    return %c0_i32, %c0_i32_0 : i32, i32
  }
  func.func @transform_2(%arg0: i32) -> (i32, i32) {
    %c0_i32 = arith.constant 0 : i32
    %c0_i32_0 = arith.constant 0 : i32
    %c0_i32_1 = arith.constant 0 : i32
    return %c0_i32, %c0_i32_0 : i32, i32
  }
  func.func @transform_3(%arg0: i32) -> (i32, i32) {
    %c0_i32 = arith.constant 0 : i32
    %c0_i32_0 = arith.constant 0 : i32
    %c0_i32_1 = arith.constant 0 : i32
    return %c0_i32, %c0_i32_0 : i32, i32
  }
  func.func @transform_4(%arg0: i32) -> (i32, i32) {
    %c0_i32 = arith.constant 0 : i32
    %c0_i32_0 = arith.constant 0 : i32
    %c0_i32_1 = arith.constant 0 : i32
    return %c0_i32, %c0_i32_0 : i32, i32
  }
  func.func @transform_5(%arg0: i32) -> (i32, i32) {
    %c0_i32 = arith.constant 0 : i32
    %c0_i32_0 = arith.constant 0 : i32
    %c0_i32_1 = arith.constant 0 : i32
    return %c0_i32, %c0_i32_0 : i32, i32
  }
  func.func @transform_6(%arg0: i32) -> (i32, i32) {
    %c0_i32 = arith.constant 0 : i32
    %c0_i32_0 = arith.constant 0 : i32
    %c0_i32_1 = arith.constant 0 : i32
    return %c0_i32, %c0_i32_0 : i32, i32
  }
  func.func @transform_7(%arg0: i32) -> (i32, i32) {
    %c0_i32 = arith.constant 0 : i32
    %c0_i32_0 = arith.constant 0 : i32
    return %arg0, %c0_i32 : i32, i32
  }
}

</mosaic_0001>

<bundles_post_ra>
// kernel: tpu_custom_call.1
= control target key start
LH: loop header
LB: loop body
LE: loop exit
PB: predicated region body
PF: predicated region fallthrough
CT: control target
= control target key end

     0   :  { %6 = vsyncpa [#allocation3], 0  ;;  %s340_s0 = inlined_call_operand.hbm [shape: f32[8,128], index: 0, kind: input, shape index: {}]   ;;  %s341_s1 = inlined_call_operand.hbm [shape: f32[8,128], index: 1, kind: output, shape index: {}]  }
   0x1   :  { %7 = vsyncpa [#allocation4], 0  ;;  %s261_s6 = smov 0  }
   0x2 LB: > { %s144_s7 = sadd.s32 4294967295, %s247_s6   ;;  %p145_p0 = scmp.ge.s32.totalorder %s247_s6, 1  ;;  %s247_s6 = sphi %s261_s6, %s13_s6  }
   0x3   : > { %p60_p1 = scmp.lt.s32.totalorder %s247_s6, 3  ;;  %p275_p3 = scmp.eq.s32.totalorder %s144_s7, 0 }
   0x4   : > { %s249_s10 = smov [#allocation2]   ;;  %s179_s15 = scalar_lea.hbm %s340_s0, 128 }
   0x5   : > { %p269_p2 = pnand %p145_p0, %p60_p1  ;;  %s73_s11 = sshll.u32 %s249_s10, 4  ;;  %s74_s11 = int_to_ptr.vmem [resolvable:$true] %s73_s11 }
   0x6   : > { %s346_s9 = scalar_select %p275_p3, 1, 0 }
   0x7   : > { %s345_s8 = scalar_select %p269_p2, 1, 0 }
   0x8   : > { %p161_p4 = pneg %p269_p2  ;;  %p180_p6 = scmp.ne.s32.totalorder %s340_s0, %s179_s15 }
   0x9   : > { %p186_p10 = scmp.lt.u32.totalorder %s179_s15, %s340_s0 }
   0xa   : > { %p283_p5 = pnand %p275_p3, %p161_p4 }
   0xc   : > { %p181_p7 = pneg %p283_p5 }
   0xe   : > { %p182_p8 = pnand %p181_p7, %p180_p6 }
  0x10   : > { %p183_p9 = pneg %p182_p8 }
  0x12   : > { %p188_p11 = pnand %p186_p10, %p183_p9 }
  0x14   : > { %191 = shalt.err (!%p188_p11)
}
  0x15   : > { %s192_s20 = scalar_lea.vmem %s74_s11, 128  ;;  %p200_p1 = scmp.lt.s32.totalorder %s74_s11, %s74_s11 }
  0x16   : > { %p193_p12 = scmp.ne.s32.totalorder %s74_s11, %s192_s20  ;;  %p201_p4 = scmp.lt.s32.totalorder %s192_s20, %s192_s20 }
  0x18   : > { %p195_p13 = pnand %p193_p12, %p181_p7  ;;  %p202_p3 = por %p201_p4, %p200_p1 }
  0x1a   : > { %p196_p0 = pneg %p195_p13 }
  0x1c   : > { %p203_p2 = pnand %p202_p3, %p196_p0 }
  0x1e   : > { %206 = shalt.err (!%p203_p2)
}
  0x1f   : > { %164 = dma.hbm_to_vmem [thread:$0]  (!%p283_p5), %s340_s0, 128, %s74_s11, [#allocation3]  }
  0x20   : > { %p348_p6 = scmp.ne.s32.totalorder %s345_s8, 0 }
  0x21   : > { %p349_p8 = scmp.ne.s32.totalorder (!%p348_p6), %s346_s9, 0 }
  0x22   : > { %86 = sbr.rel (%p348_p6) target bundleno = 67 (0x43), region = 24 }
  0x29   : > { %238 = dma.done.wait (%p349_p8), [#allocation3], 128  }
  0x2a   : > { %240 = vsyncadd (%p349_p8), [#allocation3], 4294967168  ;;  %s250_s23 = smov [#allocation5]   ;;  %p311_p2 = scmp.eq.s32.totalorder %s144_s7, 1  ;;  %v96_v0 = vld [vmem:[#allocation2] sm:$0xff] }
  0x2b   : > { %s105_s24 = sshll.u32 %s250_s23, 4  ;;  %97 = vst [vmem:[#allocation5] sm:$0xff] %v96_v0  ;;  %s106_s24 = int_to_ptr.vmem [resolvable:$true] %s105_s24 }
  0x2c   : > { %s207_s26 = scalar_lea.vmem %s106_s24, 128  ;;  %p214_p9 = scmp.lt.s32.totalorder %s106_s24, %s106_s24 }
  0x2d   : > { %p208_p3 = scmp.ne.s32.totalorder %s106_s24, %s207_s26  ;;  %p215_p10 = scmp.lt.s32.totalorder %s207_s26, %s207_s26 }
  0x2f   : > { %p209_p5 = pnand %p208_p3, %p311_p2  ;;  %p216_p11 = por %p215_p10, %p214_p9 }
  0x31   : > { %p210_p7 = pneg %p209_p5 }
  0x33   : > { %p217_p12 = pnand %p216_p11, %p210_p7 }
  0x35   : > { %220 = shalt.err (!%p217_p12)
}
  0x36   : > { %s221_s29 = scalar_lea.hbm %s341_s1, 128 }
  0x37   : > { %p222_p13 = scmp.ne.s32.totalorder %s341_s1, %s221_s29  ;;  %p227_p4 = scmp.lt.u32.totalorder %s221_s29, %s341_s1 }
  0x39   : > { %p223_p0 = pnand %p222_p13, %p311_p2 }
  0x3b   : > { %p224_p1 = pneg %p223_p0 }
  0x3d   : > { %p229_p6 = pnand %p227_p4, %p224_p1 }
  0x3f   : > { %232 = shalt.err (!%p229_p6)
}
  0x40   : > { %158 = dma.vmem_to_hbm [thread:$0]  (%p311_p2), %s106_s24, 128, %s341_s1, [#allocation4]  }
  0x41   : > { %242 = dma.done.wait (%p311_p2), [#allocation4], 128  }
  0x42   : > { %244 = vsyncadd (%p311_p2), [#allocation4], 4294967168 }
  0x43 PF: > { %s13_s6 = sadd.s32 1, %s247_s6  }
  0x44   : > { %p10_p8 = scmp.ge.s32.totalorder %s13_s6, 4  }
  0x46   :  { %12 = sbr.rel (!%p10_p8) target bundleno = 2 (0x2), region = 53 }
  0x4d   :  { %118 = vsyncpa [#allocation3], 1 }
  0x4e   :  { %120 = vsyncpa [#allocation3 + $0x1], 1 }
  0x4f   :  { %121 = vsyncpa [#allocation4], 1 }
  0x50   :  { %123 = vsyncpa [#allocation4 + $0x1], 1 }

// kernel: _actor_forward_jit.1
= control target key start
LH: loop header
LB: loop body
LE: loop exit
PB: predicated region body
PF: predicated region fallthrough
CT: control target
= control target key end

     0   :  { %12 = vsyncpa [#allocation3], 0  ;;  %s3980_s24 = smov [#allocation2]   ;;  %s5109_s0 = inlined_call_operand.vmem [shape: f32[256,16], index: 0, kind: input, shape index: {}]   ;;  %s5110_s1 = inlined_call_operand.vmem [shape: f32[16,512], index: 1, kind: input, shape index: {}]   ;;  %s5111_s2 = inlined_call_operand.vmem [shape: f32[1,512], index: 2, kind: input, shape index: {}]   ;;  %s5112_s3 = inlined_call_operand.hbm [shape: bf16[512,384], index: 3, kind: input, shape index: {}]   ;;  %s5113_s4 = inlined_call_operand.vmem [shape: f32[1,384], index: 4, kind: input, shape index: {}]   ;;  %s5114_s5 = inlined_call_operand.vmem [shape: bf16[384,128], index: 5, kind: input, shape index: {}]   ;;  %s5115_s6 = inlined_call_operand.vmem [shape: f32[1,128], index: 6, kind: input, shape index: {}]   ;;  %s5116_s7 = inlined_call_operand.vmem [shape: f32[256,128], index: 7, kind: output, shape index: {}]  }
   0x1   :  { %s24_s25 = sshll.u32 %s3980_s24, 4  ;;  %s3956_s28 = scalar_lea.hbm %s5112_s3, 12288  ;;  %s25_s25 = int_to_ptr.vmem [resolvable:$true] %s24_s25 }
   0x2   :  { %p3957_p0 = scmp.ne.s32.totalorder %s5112_s3, %s3956_s28  ;;  %p3960_p1 = scmp.lt.u32.totalorder %s3956_s28, %s5112_s3 }
   0x4   :  { %p3962_p2 = pnand %p3960_p1, %p3957_p0 }
   0x6   :  { %3965 = shalt.err (!%p3962_p2)
}
   0x7   :  { %s3966_s10 = scalar_lea.vmem %s25_s25, 12288  ;;  %p3971_p4 = scmp.lt.s32.totalorder %s25_s25, %s25_s25 }
   0x8   :  { %p3967_p3 = scmp.ne.s32.totalorder %s25_s25, %s3966_s10  ;;  %p3972_p5 = scmp.lt.s32.totalorder %s3966_s10, %s3966_s10 }
   0xa   :  { %p3973_p6 = por %p3972_p5, %p3971_p4 }
   0xc   :  { %p3974_p7 = pnand %p3973_p6, %p3967_p3 }
   0xe   :  { %3977 = shalt.err (!%p3974_p7)
}
   0xf   :  { %s3981_s11 = smov 192   ;;  %s3982_s12 = smov 12  }
  0x10   :  { %30 = dma.hbm_to_vmem [thread:$0]  %s5112_s3, 12288, %s25_s25, [#allocation3], %s3981_s11, %s3981_s11, %s3982_s12  }
  0x11   :  { %3978 = dma.done.wait [#allocation3], 12288  }
  0x12   :  { %3979 = vsyncadd [#allocation3], 4294955008  ;;  %v3983_v0 = vmov 0.0   ;;  %v74_v1 = vld [vmem:[%s5110_s1 + $0x8] sm:$0xff]  ;;  %v73_v3 = vld [vmem:[%s5110_s1] sm:$0xff]  ;;  %vm103_vm0 = vcmask 130048  }
  0x13   :  { %264 = vmatprep.mubr.f32.mxu0 %v3983_v0  ;;  %408 = vmatprep.mubr.f32.mxu1 %v3983_v0  ;;  %v78_v2 = vld [vmem:[%s5110_s1 + $0x28] sm:$0xff]  ;;  %v77_v5 = vld [vmem:[%s5110_s1 + $0x20] sm:$0xff]  ;;  %v76_v11 = vld [vmem:[%s5110_s1 + $0x18] sm:$0xff] }
  0x14   :  { %v3598_v4 = vpack.c.bf16 %v78_v2, %v74_v1  ;;  %v3600_v6 = vpack.c.bf16 %v77_v5, %v73_v3  ;;  %v4053_v7 = vld [vmem:[%s5109_s0] sm:$0xff]  ;;  %v4065_v9 = vld [vmem:[%s5109_s0 + $0x8] sm:$0xff]  ;;  %v80_v12 = vld [vmem:[%s5110_s1 + $0x38] sm:$0xff] }
  0x15   :  { %v4058_v8 = vld [vmem:[%s5109_s0 + $0xc0] sm:$0xff]  ;;  %v4072_v10 = vld [vmem:[%s5109_s0 + $0xc8] sm:$0xff]  ;;  %v75_v13 = vld [vmem:[%s5110_s1 + $0x10] sm:$0xff]  ;;  %v3602_v15 = vpack.c.bf16 %v80_v12, %v76_v11 }
  0x16   :  { %3599 = vmatprep.subr.bf16.mxu0 %v3598_v4  ;;  %3606 = vmatprep.subr.bf16.mxu1 %v3598_v4  ;;  %v79_v14 = vld [vmem:[%s5110_s1 + $0x30] sm:$0xff]  ;;  %v4109_v20 = vld [vmem:[%s5109_s0 + $0x18] sm:$0xff]  ;;  %v3744_v22 = vld [vmem:[#allocation2] ss:$12 sps:$4 sm:$0xff]  }
  0x17   :  { %3601 = vmatpush1.bf16.msra.mxu0 %v3600_v6  ;;  %3607 = vmatpush1.bf16.msra.mxu1 %v3600_v6  ;;  %v3604_v16 = vpack.c.bf16 %v79_v14, %v75_v13  ;;  %v4096_v17 = vld [vmem:[%s5109_s0 + $0x10] sm:$0xff]  ;;  %v4118_v21 = vld [vmem:[%s5109_s0 + $0xd8] sm:$0xff]  ;;  %v4125_v24 = vld [vmem:[%s5109_s0 + $0x20] sm:$0xff] }
  0x18   :  { %3603 = vmatprep.subr.bf16.mxu1 %v3602_v15  ;;  %v4101_v18 = vld [vmem:[%s5109_s0 + $0xd0] sm:$0xff]  ;;  %v4134_v25 = vld [vmem:[%s5109_s0 + $0xe0] sm:$0xff]  ;;  %v3751_v26 = vld [vmem:[#allocation2 + $0x1c] ss:$12 sps:$4 sm:$0xff]  }
  0x19   :  { %v3740_v19 = vld [vmem:[#allocation2 + $0xc8] ss:$12 sps:$4 sm:$0xff]   ;;  %v3746_v23 = vld [vmem:[#allocation2 + $0x4] ss:$12 sps:$4 sm:$0xff]   ;;  %v3757_v34 = vld [vmem:[#allocation2 + $0x4c] ss:$12 sps:$4 sm:$0xff]  }
  0x1a   :  { %3005 = vmatmul.mubr.msk.f32.vlgmr.msra.gmra.mrb[0].mxu0 %vm103_vm0, %v4053_v7  ;;  %3029 = vmatmul.mubr.msk.f32.vlgmr.msra.gmra.mrb[0].mxu1 %vm103_vm0, %v4058_v8  ;;  %v3749_v27 = vld [vmem:[#allocation2 + $0x18] ss:$12 sps:$4 sm:$0xff]   ;;  %v4144_v28 = vld [vmem:[%s5109_s0 + $0x28] sm:$0xff]  ;;  %v3754_v30 = vld [vmem:[#allocation2 + $0x34] ss:$12 sps:$4 sm:$0xff]  }
  0x1b   :  { %270 = vmatprep.mubr.f32.mxu0 %v3983_v0  ;;  %414 = vmatprep.mubr.f32.mxu1 %v3983_v0  ;;  %v4150_v29 = vld [vmem:[%s5109_s0 + $0xe8] sm:$0xff]  ;;  %v3752_v31 = vld [vmem:[#allocation2 + $0x30] ss:$12 sps:$4 sm:$0xff]   ;;  %v4189_v40 = vld [vmem:[%s5109_s0 + $0x40] sm:$0xff] }
  0x1c   :  { %3605 = vmatpush1.bf16.msra.mxu1 %v3604_v16  ;;  %1563 = vmatprep.subr.bf16.mxu0 %v3746_v23  ;;  %v4157_v32 = vld [vmem:[%s5109_s0 + $0x30] sm:$0xff]  ;;  %v4173_v36 = vld [vmem:[%s5109_s0 + $0x38] sm:$0xff]  ;;  %v3760_v39 = vld [vmem:[#allocation2 + $0x60] ss:$12 sps:$4 sm:$0xff]  }
  0x1d   :  { %3190 = vmatprep.subr.bf16.mxu1 %v3740_v19  ;;  %1564 = vmatpush1.bf16.msra.mxu0 %v3744_v22  ;;  %v4166_v33 = vld [vmem:[%s5109_s0 + $0xf0] sm:$0xff]  ;;  %v4182_v37 = vld [vmem:[%s5109_s0 + $0xf8] sm:$0xff]  ;;  %v3742_v43 = vld [vmem:[#allocation2 + $0xe0] ss:$12 sps:$4 sm:$0xff]  }
  0x1e   :  { %3006 = vmatmul.mubr.msk.f32.gmra.mrb[2].mxu0 %vm103_vm0, %v4065_v9  ;;  %3030 = vmatmul.mubr.msk.f32.gmra.mrb[2].mxu1 %vm103_vm0, %v4072_v10  ;;  %v3755_v35 = vld [vmem:[#allocation2 + $0x48] ss:$12 sps:$4 sm:$0xff]   ;;  %v3762_v38 = vld [vmem:[#allocation2 + $0x64] ss:$12 sps:$4 sm:$0xff]   ;;  %v3743_v46 = vld [vmem:[#allocation2 + $0x20] ss:$12 sps:$4 sm:$0xff]  }
  0x1f   :  { %276 = vmatprep.mubr.f32.mxu0 %v3983_v0  ;;  %420 = vmatprep.mubr.f32.mxu1 %v3983_v0  ;;  %v3741_v41 = vld [vmem:[#allocation2 + $0x8] ss:$12 sps:$4 sm:$0xff]   ;;  %v3763_v44 = vld [vmem:[#allocation2 + $0x78] ss:$12 sps:$4 sm:$0xff]   ;;  %v3767_v49 = vld [vmem:[#allocation2 + $0x90] ss:$12 sps:$4 sm:$0xff]  }
  0x20   :  { %1565 = vmatprep.subr.bf16.mxu0 %v3751_v26  ;;  %v3765_v42 = vld [vmem:[#allocation2 + $0x7c] ss:$12 sps:$4 sm:$0xff]   ;;  %v3747_v47 = vld [vmem:[#allocation2 + $0xf8] ss:$12 sps:$4 sm:$0xff]   ;;  %v3769_v48 = vld [vmem:[#allocation2 + $0x94] ss:$12 sps:$4 sm:$0xff]  }
  0x21   :  { %1566 = vmatpush1.bf16.msra.mxu0 %v3749_v27  ;;  %v4200_v45 = vld [vmem:[%s5109_s0 + $0x48] sm:$0xff]  ;;  %v4214_v50 = vld [vmem:[%s5109_s0 + $0x50] sm:$0xff]  ;;  %v3748_v51 = vld [vmem:[#allocation2 + $0x38] ss:$12 sps:$4 sm:$0xff]  }
  0x22   :  { %3007 = vmatmul.mubr.msk.f32.gmra.mrb[4].mxu0 %vm103_vm0, %v4096_v17  ;;  %3031 = vmatmul.mubr.msk.f32.gmra.mrb[4].mxu1 %vm103_vm0, %v4101_v18  ;;  %v3758_v52 = vld [vmem:[#allocation2 + $0x110] ss:$12 sps:$4 sm:$0xff]   ;;  %v3773_v53 = vld [vmem:[#allocation2 + $0xac] ss:$12 sps:$4 sm:$0xff]   ;;  %v3771_v55 = vld [vmem:[#allocation2 + $0xa8] ss:$12 sps:$4 sm:$0xff]  }
  0x23   :  { %282 = vmatprep.mubr.f32.mxu0 %v3983_v0  ;;  %426 = vmatprep.mubr.f32.mxu1 %v3983_v0  ;;  %v4220_v54 = vld [vmem:[%s5109_s0 + $0x58] sm:$0xff]  ;;  %v3776_v57 = vld [vmem:[#allocation2 + $0xc4] ss:$12 sps:$4 sm:$0xff]   ;;  %v3766_v58 = vld [vmem:[#allocation2 + $0x128] ss:$12 sps:$4 sm:$0xff]  }
  0x24   :  { %1567 = vmatprep.subr.bf16.mxu0 %v3754_v30  ;;  %v3759_v56 = vld [vmem:[#allocation2 + $0x50] ss:$12 sps:$4 sm:$0xff]   ;;  %v3774_v59 = vld [vmem:[#allocation2 + $0xc0] ss:$12 sps:$4 sm:$0xff]   ;;  %v3770_v61 = vld [vmem:[#allocation2 + $0x68] ss:$12 sps:$4 sm:$0xff]  }
  0x25   :  { %1568 = vmatpush1.bf16.msra.mxu0 %v3752_v31  ;;  %v4231_v60 = vld [vmem:[%s5109_s0 + $0x60] sm:$0xff]  ;;  %v3781_v62 = vld [vmem:[#allocation2 + $0xdc] ss:$12 sps:$4 sm:$0xff]   ;;  %v59_v23 = vld [vmem:[%s5109_s0 + $0x90] sm:$0xff] }
  0x26   :  { %3008 = vmatmul.mubr.msk.f32.gmra.mrb[6].mxu0 %vm103_vm0, %v4109_v20  ;;  %3032 = vmatmul.mubr.msk.f32.gmra.mrb[6].mxu1 %vm103_vm0, %v4118_v21  ;;  %v3777_v63 = vld [vmem:[#allocation2 + $0x140] ss:$12 sps:$4 sm:$0xff]   ;;  %v3779_v1 = vld [vmem:[#allocation2 + $0xd8] ss:$12 sps:$4 sm:$0xff]   ;;  %v3782_v5 = vld [vmem:[#allocation2 + $0xf0] ss:$12 sps:$4 sm:$0xff]  }
  0x27   :  { %288 = vmatprep.mubr.f32.mxu0 %v3983_v0  ;;  %432 = vmatprep.mubr.f32.mxu1 %v3983_v0  ;;  %v4242_v2 = vld [vmem:[%s5109_s0 + $0x68] sm:$0xff]  ;;  %v3784_v4 = vld [vmem:[#allocation2 + $0xf4] ss:$12 sps:$4 sm:$0xff]   ;;  %v3788_v6 = vld [vmem:[#allocation2 + $0x158] ss:$12 sps:$4 sm:$0xff]  }
  0x28   :  { %1569 = vmatprep.subr.bf16.mxu0 %v3757_v34  ;;  %v3778_v3 = vld [vmem:[#allocation2 + $0x80] ss:$12 sps:$4 sm:$0xff]   ;;  %v3789_v11 = vld [vmem:[#allocation2 + $0x98] ss:$12 sps:$4 sm:$0xff]   ;;  %v3785_v12 = vld [vmem:[#allocation2 + $0x108] ss:$12 sps:$4 sm:$0xff]  }
  0x29   :  { %1570 = vmatpush1.bf16.msra.mxu0 %v3755_v35  ;;  %v3796_v13 = vld [vmem:[#allocation2 + $0x170] ss:$12 sps:$4 sm:$0xff]   ;;  %v3790_v16 = vld [vmem:[#allocation2 + $0x120] ss:$12 sps:$4 sm:$0xff]  }
  0x2a   :  { %3009 = vmatmul.mubr.msk.f32.gmra.mrb[8].mxu0 %vm103_vm0, %v4125_v24  ;;  %3033 = vmatmul.mubr.msk.f32.gmra.mrb[8].mxu1 %vm103_vm0, %v4134_v25  ;;  %v4264_v14 = vld [vmem:[%s5109_s0 + $0x78] sm:$0xff]  ;;  %v3792_v15 = vld [vmem:[#allocation2 + $0x124] ss:$12 sps:$4 sm:$0xff]   ;;  %v58_v22 = vld [vmem:[%s5109_s0 + $0x88] sm:$0xff] }
  0x2b   :  { %294 = vmatprep.mubr.f32.mxu0 %v3983_v0  ;;  %438 = vmatprep.mubr.f32.mxu1 %v3983_v0  ;;  %v3795_v19 = vld [vmem:[#allocation2 + $0x13c] ss:$12 sps:$4 sm:$0xff]   ;;  %v61_v26 = vld [vmem:[%s5109_s0 + $0xa0] sm:$0xff]  ;;  %v3803_v35 = vld [vmem:[#allocation2 + $0x16c] ss:$12 sps:$4 sm:$0xff]  }
  0x2c   :  { %1571 = vmatprep.subr.bf16.mxu0 %v3762_v38  ;;  %v62_v27 = vld [vmem:[%s5109_s0 + $0xa8] sm:$0xff]  ;;  %v3799_v30 = vld [vmem:[#allocation2 + $0x154] ss:$12 sps:$4 sm:$0xff]   ;;  %v3800_v31 = vld [vmem:[#allocation2 + $0xb0] ss:$12 sps:$4 sm:$0xff]  }
  0x2d   :  { %1572 = vmatpush1.bf16.msra.mxu0 %v3760_v39  ;;  %v64_v34 = vld [vmem:[%s5109_s0 + $0xb8] sm:$0xff]  ;;  %v3806_v38 = vld [vmem:[#allocation2 + $0x184] ss:$12 sps:$4 sm:$0xff]   ;;  %v3807_v39 = vld [vmem:[#allocation2 + $0x248] ss:$12 sps:$4 sm:$0xff]  }
  0x2e   :  { %3010 = vmatmul.mubr.msk.f32.gmra.mrb[10].mxu0 %vm103_vm0, %v4144_v28  ;;  %3034 = vmatmul.mubr.msk.f32.gmra.mrb[10].mxu1 %vm103_vm0, %v4150_v29 }
  0x2f   :  { %300 = vmatprep.mubr.f32.mxu0 %v3983_v0  ;;  %444 = vmatprep.mubr.f32.mxu1 %v3983_v0 }
  0x30   :  { %1573 = vmatprep.subr.bf16.mxu0 %v3765_v42 }
  0x31   :  { %1574 = vmatpush1.bf16.msra.mxu0 %v3763_v44 }
  0x32   :  { %3011 = vmatmul.mubr.msk.f32.gmra.mrb[12].mxu0 %vm103_vm0, %v4157_v32  ;;  %3035 = vmatmul.mubr.msk.f32.gmra.mrb[12].mxu1 %vm103_vm0, %v4166_v33 }
  0x33   :  { %306 = vmatprep.mubr.f32.mxu0 %v3983_v0  ;;  %450 = vmatprep.mubr.f32.mxu1 %v3983_v0 }
  0x34   :  { %1575 = vmatprep.subr.bf16.mxu0 %v3769_v48 }
  0x35   :  { %1576 = vmatpush1.bf16.msra.mxu0 %v3767_v49 }
  0x36   :  { %3012 = vmatmul.mubr.msk.f32.gmra.mrb[14].mxu0 %vm103_vm0, %v4173_v36  ;;  %3036 = vmatmul.mubr.msk.f32.gmra.mrb[14].mxu1 %vm103_vm0, %v4182_v37 }
  0x37   :  { %312 = vmatprep.mubr.f32.mxu0 %v3983_v0  ;;  %521 = vmatprep.mubr.f32.mxu1 %v3983_v0 }
  0x38   :  { %1577 = vmatprep.subr.bf16.mxu0 %v3773_v53 }
  0x39   :  { %1578 = vmatpush1.bf16.msra.mxu0 %v3771_v55 }
  0x3a   :  { %3013 = vmatmul.mubr.msk.f32.gmra.mrb[16].mxu0 %vm103_vm0, %v4189_v40  ;;  %3037 = vmatmul.mubr.msk.f32.vlgmr.msra.gmra.mrb[16].mxu1 %vm103_vm0, %v4053_v7  ;;  %v4253_v7 = vld [vmem:[%s5109_s0 + $0x70] sm:$0xff] }
  0x3b   :  { %318 = vmatprep.mubr.f32.mxu0 %v3983_v0  ;;  %527 = vmatprep.mubr.f32.mxu1 %v3983_v0 }
  0x3c   :  { %3191 = vmatpush3.bf16.msra.mxu1 %v3741_v41  ;;  %1579 = vmatprep.subr.bf16.mxu0 %v3776_v57 }
  0x3d   :  { %3192 = vmatprep.subr.bf16.mxu1 %v3742_v43  ;;  %1580 = vmatpush1.bf16.msra.mxu0 %v3774_v59 }
  0x3e   :  { %3014 = vmatmul.mubr.msk.f32.gmra.mrb[18].mxu0 %vm103_vm0, %v4200_v45  ;;  %3038 = vmatmul.mubr.msk.f32.gmra.mrb[18].mxu1 %vm103_vm0, %v4065_v9  ;;  %v3787_v9 = vld [vmem:[#allocation2 + $0x10c] ss:$12 sps:$4 sm:$0xff]  }
  0x3f   :  { %324 = vmatprep.mubr.f32.mxu0 %v3983_v0  ;;  %533 = vmatprep.mubr.f32.mxu1 %v3983_v0 }
  0x40   :  { %3193 = vmatpush3.bf16.msra.mxu1 %v3743_v46  ;;  %1581 = vmatprep.subr.bf16.mxu0 %v3781_v62 }
  0x41   :  { %3194 = vmatprep.subr.bf16.mxu1 %v3747_v47  ;;  %1582 = vmatpush1.bf16.msra.mxu0 %v3779_v1 }
  0x42   :  { %3015 = vmatmul.mubr.msk.f32.gmra.mrb[20].mxu0 %vm103_vm0, %v4214_v50  ;;  %3039 = vmatmul.mubr.msk.f32.gmra.mrb[20].mxu1 %vm103_vm0, %v4096_v17  ;;  %v57_v17 = vld [vmem:[%s5109_s0 + $0x80] sm:$0xff] }
  0x43   :  { %330 = vmatprep.mubr.f32.mxu0 %v3983_v0  ;;  %539 = vmatprep.mubr.f32.mxu1 %v3983_v0 }
  0x44   :  { %3195 = vmatpush3.bf16.msra.mxu1 %v3748_v51  ;;  %1583 = vmatprep.subr.bf16.mxu0 %v3784_v4 }
  0x45   :  { %3196 = vmatprep.subr.bf16.mxu1 %v3758_v52  ;;  %1584 = vmatpush1.bf16.msra.mxu0 %v3782_v5 }
  0x46   :  { %3016 = vmatmul.mubr.msk.f32.gmra.mrb[22].mxu0 %vm103_vm0, %v4220_v54  ;;  %3040 = vmatmul.mubr.msk.f32.gmra.mrb[22].mxu1 %vm103_vm0, %v4109_v20  ;;  %v3793_v20 = vld [vmem:[#allocation2 + $0x138] ss:$12 sps:$4 sm:$0xff]  }
  0x47   :  { %336 = vmatprep.mubr.f32.mxu0 %v3983_v0  ;;  %545 = vmatprep.mubr.f32.mxu1 %v3983_v0 }
  0x48   :  { %3197 = vmatpush3.bf16.msra.mxu1 %v3759_v56  ;;  %1585 = vmatprep.subr.bf16.mxu0 %v3787_v9  ;;  %v3808_v9 = vld [vmem:[#allocation2 + $0x188] ss:$12 sps:$4 sm:$0xff]  }
  0x49   :  { %3198 = vmatprep.subr.bf16.mxu1 %v3766_v58  ;;  %1586 = vmatpush1.bf16.msra.mxu0 %v3785_v12 }
  0x4a   :  { %3017 = vmatmul.mubr.msk.f32.gmra.mrb[24].mxu0 %vm103_vm0, %v4231_v60  ;;  %3041 = vmatmul.mubr.msk.f32.gmra.mrb[24].mxu1 %vm103_vm0, %v4125_v24  ;;  %v60_v24 = vld [vmem:[%s5109_s0 + $0x98] sm:$0xff] }
  0x4b   :  { %342 = vmatprep.mubr.f32.mxu0 %v3983_v0  ;;  %551 = vmatprep.mubr.f32.mxu1 %v3983_v0 }
  0x4c   :  { %3199 = vmatpush3.bf16.msra.mxu1 %v3770_v61  ;;  %1587 = vmatprep.subr.bf16.mxu0 %v3792_v15  ;;  %v3815_v15 = vld [vmem:[#allocation2 + $0x260] ss:$12 sps:$4 sm:$0xff]  }
  0x4d   :  { %3200 = vmatprep.subr.bf16.mxu1 %v3777_v63  ;;  %1588 = vmatpush1.bf16.msra.mxu0 %v3790_v16 }
  0x4e   :  { %3018 = vmatmul.mubr.msk.f32.gmra.mrb[26].mxu0 %vm103_vm0, %v4242_v2  ;;  %3042 = vmatmul.mubr.msk.f32.gmra.mrb[26].mxu1 %vm103_vm0, %v4144_v28  ;;  %v63_v28 = vld [vmem:[%s5109_s0 + $0xb0] sm:$0xff] }
  0x4f   :  { %348 = vmatprep.mubr.f32.mxu0 %v3983_v0  ;;  %557 = vmatprep.mubr.f32.mxu1 %v3983_v0 }
  0x50   :  { %3201 = vmatpush3.bf16.msra.mxu1 %v3778_v3  ;;  %1589 = vmatprep.subr.bf16.mxu0 %v3795_v19 }
  0x51   :  { %3202 = vmatprep.subr.bf16.mxu1 %v3788_v6  ;;  %1590 = vmatpush1.bf16.msra.mxu0 %v3793_v20 }
  0x52   :  { %3019 = vmatmul.mubr.msk.f32.gmra.mrb[28].mxu0 %vm103_vm0, %v4253_v7  ;;  %3043 = vmatmul.mubr.msk.f32.gmra.mrb[28].mxu1 %vm103_vm0, %v4157_v32  ;;  %v3797_v32 = vld [vmem:[#allocation2 + $0x150] ss:$12 sps:$4 sm:$0xff]  }
  0x53   :  { %354 = vmatprep.mubr.f32.mxu0 %v3983_v0  ;;  %563 = vmatprep.mubr.f32.mxu1 %v3983_v0 }
  0x54   :  { %3203 = vmatpush3.bf16.msra.mxu1 %v3789_v11  ;;  %1591 = vmatprep.subr.bf16.mxu0 %v3799_v30  ;;  %v3814_v30 = vld [vmem:[#allocation2 + $0x1b4] ss:$12 sps:$4 sm:$0xff]  }
  0x55   :  { %3204 = vmatprep.subr.bf16.mxu1 %v3796_v13  ;;  %1592 = vmatpush1.bf16.msra.mxu0 %v3797_v32 }
  0x56   :  { %3020 = vmatmul.mubr.msk.f32.gmra.mrb[30].mxu0 %vm103_vm0, %v4264_v14  ;;  %3044 = vmatmul.mubr.msk.f32.gmra.mrb[30].mxu1 %vm103_vm0, %v4173_v36  ;;  %v3801_v36 = vld [vmem:[#allocation2 + $0x168] ss:$12 sps:$4 sm:$0xff]  }
  0x57   :  { %360 = vmatprep.mubr.f32.mxu0 %v3983_v0  ;;  %569 = vmatprep.mubr.f32.mxu1 %v3983_v0 }
  0x58   :  { %3205 = vmatpush3.bf16.msra.mxu1 %v3800_v31  ;;  %1593 = vmatprep.subr.bf16.mxu0 %v3803_v35  ;;  %v3816_v31 = vld [vmem:[#allocation2 + $0x1a0] ss:$12 sps:$4 sm:$0xff]  }
  0x59   :  { %1594 = vmatpush1.bf16.msra.mxu0 %v3801_v36  ;;  %3302 = vmatprep.subr.bf16.mxu1 %v3807_v39 }
  0x5a   :  { %3021 = vmatmul.mubr.msk.f32.gmra.mrb[32].mxu0 %vm103_vm0, %v57_v17  ;;  %3045 = vmatmul.mubr.msk.f32.gmra.mrb[32].mxu1 %vm103_vm0, %v4189_v40 }
  0x5b   :  { %366 = vmatprep.mubr.f32.mxu0 %v3983_v0  ;;  %575 = vmatprep.mubr.f32.mxu1 %v3983_v0 }
  0x5c   :  { %1756 = vmatprep.subr.bf16.mxu0 %v3806_v38  ;;  %v3823_v38 = vld [vmem:[#allocation2 + $0x278] ss:$12 sps:$4 sm:$0xff]  }
  0x5e   :  { %3022 = vmatmul.mubr.msk.f32.gmra.mrb[34].mxu0 %vm103_vm0, %v58_v22  ;;  %3046 = vmatmul.mubr.msk.f32.gmra.mrb[34].mxu1 %vm103_vm0, %v4200_v45 }
  0x5f   :  { %372 = vmatprep.mubr.f32.mxu0 %v3983_v0  ;;  %581 = vmatprep.mubr.f32.mxu1 %v3983_v0 }
  0x62   :  { %3023 = vmatmul.mubr.msk.f32.gmra.mrb[36].mxu0 %vm103_vm0, %v59_v23  ;;  %3047 = vmatmul.mubr.msk.f32.gmra.mrb[36].mxu1 %vm103_vm0, %v4214_v50 }
  0x63   :  { %378 = vmatprep.mubr.f32.mxu0 %v3983_v0  ;;  %587 = vmatprep.mubr.f32.mxu1 %v3983_v0 }
  0x66   :  { %3024 = vmatmul.mubr.msk.f32.gmra.mrb[38].mxu0 %vm103_vm0, %v60_v24  ;;  %3048 = vmatmul.mubr.msk.f32.gmra.mrb[38].mxu1 %vm103_vm0, %v4220_v54 }
  0x67   :  { %384 = vmatprep.mubr.f32.mxu0 %v3983_v0  ;;  %593 = vmatprep.mubr.f32.mxu1 %v3983_v0 }
  0x6a   :  { %3025 = vmatmul.mubr.msk.f32.gmra.mrb[40].mxu0 %vm103_vm0, %v61_v26  ;;  %3049 = vmatmul.mubr.msk.f32.gmra.mrb[40].mxu1 %vm103_vm0, %v4231_v60 }
  0x6b   :  { %390 = vmatprep.mubr.f32.mxu0 %v3983_v0  ;;  %599 = vmatprep.mubr.f32.mxu1 %v3983_v0 }
  0x6e   :  { %3026 = vmatmul.mubr.msk.f32.gmra.mrb[42].mxu0 %vm103_vm0, %v62_v27  ;;  %3050 = vmatmul.mubr.msk.f32.gmra.mrb[42].mxu1 %vm103_vm0, %v4242_v2 }
  0x6f   :  { %396 = vmatprep.mubr.f32.mxu0 %v3983_v0  ;;  %605 = vmatprep.mubr.f32.mxu1 %v3983_v0 }
  0x72   :  { %3027 = vmatmul.mubr.msk.f32.gmra.mrb[44].mxu0 %vm103_vm0, %v63_v28  ;;  %3051 = vmatmul.mubr.msk.f32.gmra.mrb[44].mxu1 %vm103_vm0, %v4253_v7  ;;  %v3804_v7 = vld [vmem:[#allocation2 + $0x180] ss:$12 sps:$4 sm:$0xff]  }
  0x73   :  { %402 = vmatprep.mubr.f32.mxu0 %v3983_v0  ;;  %611 = vmatprep.mubr.f32.mxu1 %v3983_v0 }
  0x76   :  { %3028 = vmatmul.mubr.msk.f32.gmra.mrb[46].mxu0 %vm103_vm0, %v64_v34  ;;  %3052 = vmatmul.mubr.msk.f32.gmra.mrb[46].mxu1 %vm103_vm0, %v4264_v14  ;;  %v3811_v14 = vld [vmem:[#allocation2 + $0x19c] ss:$12 sps:$4 sm:$0xff]  }
  0x77   :  { %617 = vmatprep.mubr.f32.mxu1 %v3983_v0 }
  0x7a   :  { %3053 = vmatmul.mubr.msk.f32.gmra.mrb[48].mxu1 %vm103_vm0, %v57_v17 }
  0x7b   :  { %623 = vmatprep.mubr.f32.mxu1 %v3983_v0 }
  0x7e   :  { %3054 = vmatmul.mubr.msk.f32.gmra.mrb[50].mxu1 %vm103_vm0, %v58_v22 }
  0x7f   :  { %629 = vmatprep.mubr.f32.mxu1 %v3983_v0 }
  0x82   :  { %3055 = vmatmul.mubr.msk.f32.gmra.mrb[52].mxu1 %vm103_vm0, %v59_v23  ;;  %v3809_v23 = vld [vmem:[#allocation2 + $0x198] ss:$12 sps:$4 sm:$0xff]  }
  0x83   :  { %635 = vmatprep.mubr.f32.mxu1 %v3983_v0 }
  0x86   :  { %3056 = vmatmul.mubr.msk.f32.gmra.mrb[54].mxu1 %vm103_vm0, %v60_v24 }
  0x87   :  { %641 = vmatprep.mubr.f32.mxu1 %v3983_v0 }
  0x8a   :  { %3057 = vmatmul.mubr.msk.f32.gmra.mrb[56].mxu1 %vm103_vm0, %v61_v26 }
  0x8b   :  { %647 = vmatprep.mubr.f32.mxu1 %v3983_v0 }
  0x8e   :  { %3058 = vmatmul.mubr.msk.f32.gmra.mrb[58].mxu1 %vm103_vm0, %v62_v27 }
  0x8f   :  { %653 = vmatprep.mubr.f32.mxu1 %v3983_v0 }
  0x92   :  { %3059 = vmatmul.mubr.msk.f32.gmra.mrb[60].mxu1 %vm103_vm0, %v63_v28 }
  0x93   :  { %659 = vmatprep.mubr.f32.mxu1 %v3983_v0 }
  0x96   :  { %3060 = vmatmul.mubr.msk.f32.gmra.mrb[62].mxu1 %vm103_vm0, %v64_v34 }
  0x97   :  { %665 = vmatprep.mubr.f32.mxu1 %v3983_v0 }
  0x9a   :  { %3061 = vmatmul.mubr.msk.f32.gmra.mrb[64].mxu1 %vm103_vm0, %v4058_v8  ;;  %v83_v8 = vlaneseq }
  0x9b   :  { %671 = vmatprep.mubr.f32.mxu1 %v3983_v0 }
  0x9e   :  { %3062 = vmatmul.mubr.msk.f32.gmra.mrb[66].mxu1 %vm103_vm0, %v4072_v10  ;;  %v4380_v10 = vshrl.u32 %v83_v8, 7 }
  0x9f   :  { %677 = vmatprep.mubr.f32.mxu1 %v3983_v0 }
  0xa2   :  { %3063 = vmatmul.mubr.msk.f32.gmra.mrb[68].mxu1 %vm103_vm0, %v4101_v18  ;;  %v85_v18 = vsub.s32 0, %v4380_v10 }
  0xa3   :  { %683 = vmatprep.mubr.f32.mxu1 %v3983_v0 }
  0xa6   :  { %3064 = vmatmul.mubr.msk.f32.gmra.mrb[70].mxu1 %vm103_vm0, %v4118_v21  ;;  %v4386_v21 = vld [vmem:[%s5111_s2] sm:$0xf] }
  0xa7   :  { %689 = vmatprep.mubr.f32.mxu1 %v3983_v0 }
  0xaa   :  { %3065 = vmatmul.mubr.msk.f32.gmra.mrb[72].mxu1 %vm103_vm0, %v4134_v25  ;;  %v89_v25 = vsub.s32 1, %v4380_v10 }
  0xab   :  { %695 = vmatprep.mubr.f32.mxu1 %v3983_v0 }
  0xae   :  { %3066 = vmatmul.mubr.msk.f32.gmra.mrb[74].mxu1 %vm103_vm0, %v4150_v29  ;;  %v4392_v29 = vrot.slane %v4386_v21, %v85_v18 }
  0xaf   :  { %701 = vmatprep.mubr.f32.mxu1 %v3983_v0 }
  0xb2   :  { %3067 = vmatmul.mubr.msk.f32.gmra.mrb[76].mxu1 %vm103_vm0, %v4166_v33  ;;  %v4397_v33 = vrot.slane %v4386_v21, %v89_v25 }
  0xb3   :  { %707 = vmatprep.mubr.f32.mxu1 %v3983_v0 }
  0xb6   :  { %3068 = vmatmul.mubr.msk.f32.gmra.mrb[78].mxu1 %vm103_vm0, %v4182_v37 }
  0xed   :  { %v266_v0 = vpop.f32.mrb[0].mxu0  ;;  %v410_v37 = vpop.f32.mrb[0].mxu1 }
  0xee   :  { %v268_v40 = vpop.f32.mrb[1].mxu0  ;;  %v411_v41 = vadd.f32 %v410_v37, %v4392_v29  ;;  %v412_v42 = vpop.f32.mrb[1].mxu1  ;;  %v267_v44 = vadd.f32 %v266_v0, %v4392_v29 }
  0xef   :  { %v413_v43 = vadd.f32 %v412_v42, %v4397_v33  ;;  %v269_v45 = vadd.f32 %v268_v40, %v4397_v33 }
  0xf0   :  { %v810_v50 = vmax.f32 %v411_v41, 0.0  ;;  %v714_v56 = vmax.f32 %v267_v44, 0.0 }
  0xf1   :  { %v272_v46 = vpop.f32.mrb[2].mxu0  ;;  %v416_v47 = vpop.f32.mrb[2].mxu1  ;;  %v811_v54 = vmax.f32 %v413_v43, 0.0  ;;  %v715_v59 = vmax.f32 %v269_v45, 0.0 }
  0xf2   :  { %v273_v48 = vadd.f32 %v272_v46, %v4392_v29  ;;  %v274_v49 = vpop.f32.mrb[3].mxu0  ;;  %v417_v51 = vadd.f32 %v416_v47, %v4392_v29  ;;  %v418_v52 = vpop.f32.mrb[3].mxu1 }
  0xf3   :  { %v275_v53 = vadd.f32 %v274_v49, %v4397_v33  ;;  %v419_v55 = vadd.f32 %v418_v52, %v4397_v33  ;;  %v3824_v49 = vld [vmem:[#allocation2 + $0x1b8] ss:$12 sps:$4 sm:$0xff]  }
  0xf4   :  { %v718_v57 = vmax.f32 %v273_v48, 0.0  ;;  %v814_v58 = vmax.f32 %v417_v51, 0.0  ;;  %v3812_v48 = vld [vmem:[#allocation2 + $0x1b0] ss:$12 sps:$4 sm:$0xff]   ;;  %v3819_v52 = vld [vmem:[#allocation2 + $0x1cc] ss:$12 sps:$4 sm:$0xff]  }
  0xf5   :  { %v719_v60 = vmax.f32 %v275_v53, 0.0  ;;  %v278_v61 = vpop.f32.mrb[4].mxu0  ;;  %v815_v62 = vmax.f32 %v419_v55, 0.0  ;;  %v422_v63 = vpop.f32.mrb[4].mxu1  ;;  %v3831_v53 = vld [vmem:[#allocation2 + $0x290] ss:$12 sps:$4 sm:$0xff]  }
  0xf6   :  { %v842_v1 = vpack.c.bf16 %v718_v57, %v714_v56  ;;  %v280_v2 = vpop.f32.mrb[5].mxu0  ;;  %v4407_v3 = vpack.c.bf16 %v814_v58, %v810_v50  ;;  %v423_v4 = vadd.f32 %v422_v63, %v4392_v29  ;;  %v424_v5 = vpop.f32.mrb[5].mxu1  ;;  %v279_v13 = vadd.f32 %v278_v61, %v4392_v29 }
  0xf7   :  { %v843_v6 = vpack.c.bf16 %v719_v60, %v715_v59  ;;  %v4410_v11 = vpack.c.bf16 %v815_v62, %v811_v54  ;;  %v425_v12 = vadd.f32 %v424_v5, %v4397_v33  ;;  %v281_v16 = vadd.f32 %v280_v2, %v4397_v33  ;;  %v3817_v60 = vld [vmem:[#allocation2 + $0x1c8] ss:$12 sps:$4 sm:$0xff]   ;;  %v3822_v2 = vld [vmem:[#allocation2 + $0x1e4] ss:$12 sps:$4 sm:$0xff]  }
  0xf8   :  { %v818_v24 = vmax.f32 %v423_v4, 0.0  ;;  %v722_v35 = vmax.f32 %v279_v13, 0.0  ;;  %v3832_v4 = vld [vmem:[#allocation2 + $0x1d0] ss:$12 sps:$4 sm:$0xff]  }
  0xf9   :  { %v284_v17 = vpop.f32.mrb[6].mxu0  ;;  %1595 = vmatprep.mubr.bf16.mxu0 %v843_v6  ;;  %1981 = vmatprep.mubr.bf16.mxu1 %v843_v6  ;;  %v428_v19 = vpop.f32.mrb[6].mxu1  ;;  %v819_v32 = vmax.f32 %v425_v12, 0.0  ;;  %v723_v8 = vmax.f32 %v281_v16, 0.0  ;;  %v3839_v12 = vld [vmem:[#allocation2 + $0x2a8] ss:$12 sps:$4 sm:$0xff]  }
  0xfa   :  { %v285_v20 = vadd.f32 %v284_v17, %v4392_v29  ;;  %v286_v22 = vpop.f32.mrb[7].mxu0  ;;  %1596 = vmatmul.mubr.bf16.vlgmr.msra.gmra.mrb[48].mxu0 %v842_v1  ;;  %1982 = vmatmul.mubr.bf16.vlgmr.msra.gmra.mrb[80].mxu1 %v842_v1  ;;  %v429_v26 = vadd.f32 %v428_v19, %v4392_v29  ;;  %v430_v27 = vpop.f32.mrb[7].mxu1 }
  0xfb   :  { %v287_v28 = vadd.f32 %v286_v22, %v4397_v33  ;;  %1757 = vmatpush1.bf16.msra.mxu0 %v3804_v7  ;;  %3303 = vmatpush3.bf16.msra.mxu1 %v3808_v9  ;;  %v431_v34 = vadd.f32 %v430_v27, %v4397_v33  ;;  %v93_v27 = vsub.s32 2, %v4380_v10 }
  0xfc   :  { %v726_v36 = vmax.f32 %v285_v20, 0.0  ;;  %1758 = vmatprep.subr.bf16.mxu0 %v3811_v14  ;;  %3304 = vmatprep.subr.bf16.mxu1 %v3815_v15  ;;  %v822_v39 = vmax.f32 %v429_v26, 0.0 }
  0xfd   :  { %v727_v0 = vmax.f32 %v287_v28, 0.0  ;;  %v290_v37 = vpop.f32.mrb[8].mxu0  ;;  %v823_v40 = vmax.f32 %v431_v34, 0.0  ;;  %v434_v41 = vpop.f32.mrb[8].mxu1 }
  0xfe   :  { %v846_v42 = vpack.c.bf16 %v726_v36, %v722_v35  ;;  %v292_v43 = vpop.f32.mrb[9].mxu0  ;;  %v4419_v44 = vpack.c.bf16 %v822_v39, %v818_v24  ;;  %v435_v45 = vadd.f32 %v434_v41, %v4392_v29  ;;  %v436_v46 = vpop.f32.mrb[9].mxu1  ;;  %v291_v51 = vadd.f32 %v290_v37, %v4392_v29  ;;  %v3827_v35 = vld [vmem:[#allocation2 + $0x1fc] ss:$12 sps:$4 sm:$0xff]  }
  0xff   :  { %v847_v47 = vpack.c.bf16 %v727_v0, %v723_v8  ;;  %1759 = vmatpush1.bf16.msra.mxu0 %v3809_v23  ;;  %3305 = vmatpush3.bf16.msra.mxu1 %v3816_v31  ;;  %v4422_v50 = vpack.c.bf16 %v823_v40, %v819_v32  ;;  %v437_v54 = vadd.f32 %v436_v46, %v4397_v33  ;;  %v3840_v31 = vld [vmem:[#allocation2 + $0x1e8] ss:$12 sps:$4 sm:$0xff]   ;;  %v97_v39 = vsub.s32 3, %v4380_v10 }
 0x100   :  { %1760 = vmatprep.subr.bf16.mxu0 %v3814_v30  ;;  %3306 = vmatprep.subr.bf16.mxu1 %v3823_v38  ;;  %v293_v55 = vadd.f32 %v292_v43, %v4397_v33  ;;  %v826_v61 = vmax.f32 %v435_v45, 0.0  ;;  %v730_v7 = vmax.f32 %v291_v51, 0.0  ;;  %v3820_v30 = vld [vmem:[#allocation2 + $0x1e0] ss:$12 sps:$4 sm:$0xff]  }
 0x101   :  { %v296_v56 = vpop.f32.mrb[10].mxu0  ;;  %1605 = vmatprep.mubr.bf16.mxu0 %v847_v47  ;;  %1989 = vmatprep.mubr.bf16.mxu1 %v847_v47  ;;  %v440_v57 = vpop.f32.mrb[10].mxu1  ;;  %v827_v5 = vmax.f32 %v437_v54, 0.0  ;;  %v3847_v38 = vld [vmem:[#allocation2 + $0x2c0] ss:$12 sps:$4 sm:$0xff]   ;;  %v4446_v47 = vrot.slane %v4386_v21, %v93_v27 }
 0x102   :  { %v297_v58 = vadd.f32 %v296_v56, %v4392_v29  ;;  %v298_v59 = vpop.f32.mrb[11].mxu0  ;;  %1606 = vmatmul.mubr.bf16.gmra.mrb[52].mxu0 %v846_v42  ;;  %1990 = vmatmul.mubr.bf16.gmra.mrb[84].mxu1 %v846_v42  ;;  %v441_v62 = vadd.f32 %v440_v57, %v4392_v29  ;;  %v442_v63 = vpop.f32.mrb[11].mxu1  ;;  %v731_v14 = vmax.f32 %v293_v55, 0.0  ;;  %v3825_v42 = vld [vmem:[#allocation2 + $0x1f8] ss:$12 sps:$4 sm:$0xff]   ;;  %v4451_v57 = vrot.slane %v4386_v21, %v97_v39 }
 0x103   :  { %v299_v1 = vadd.f32 %v298_v59, %v4397_v33  ;;  %1761 = vmatpush1.bf16.msra.mxu0 %v3812_v48  ;;  %3307 = vmatpush3.bf16.msra.mxu1 %v3824_v49  ;;  %v443_v6 = vadd.f32 %v442_v63, %v4397_v33  ;;  %v3830_v49 = vld [vmem:[#allocation2 + $0x214] ss:$12 sps:$4 sm:$0xff]   ;;  %v3856_v21 = vld [vmem:[#allocation2 + $0x218] ss:$12 sps:$4 sm:$0xff]  }
 0x104   :  { %v734_v9 = vmax.f32 %v297_v58, 0.0  ;;  %1762 = vmatprep.subr.bf16.mxu0 %v3819_v52  ;;  %3308 = vmatprep.subr.bf16.mxu1 %v3831_v53  ;;  %v830_v13 = vmax.f32 %v441_v62, 0.0  ;;  %v3848_v53 = vld [vmem:[#allocation2 + $0x200] ss:$12 sps:$4 sm:$0xff]   ;;  %v3855_v58 = vld [vmem:[#allocation2 + $0x2d8] ss:$12 sps:$4 sm:$0xff]  }
 0x105   :  { %v735_v15 = vmax.f32 %v299_v1, 0.0  ;;  %v302_v16 = vpop.f32.mrb[12].mxu0  ;;  %v831_v17 = vmax.f32 %v443_v6, 0.0  ;;  %v446_v19 = vpop.f32.mrb[12].mxu1 }
 0x106   :  { %v850_v20 = vpack.c.bf16 %v734_v9, %v730_v7  ;;  %v304_v22 = vpop.f32.mrb[13].mxu0  ;;  %v4431_v23 = vpack.c.bf16 %v830_v13, %v826_v61  ;;  %v447_v24 = vadd.f32 %v446_v19, %v4392_v29  ;;  %v448_v26 = vpop.f32.mrb[13].mxu1  ;;  %v303_v34 = vadd.f32 %v302_v16, %v4392_v29  ;;  %v3828_v9 = vld [vmem:[#allocation2 + $0x210] ss:$12 sps:$4 sm:$0xff]  }
 0x107   :  { %v851_v28 = vpack.c.bf16 %v735_v15, %v731_v14  ;;  %1763 = vmatpush1.bf16.msra.mxu0 %v3817_v60  ;;  %3309 = vmatpush3.bf16.msra.mxu1 %v3832_v4  ;;  %v4435_v32 = vpack.c.bf16 %v831_v17, %v827_v5  ;;  %v449_v36 = vadd.f32 %v448_v26, %v4397_v33  ;;  %v3835_v14 = vld [vmem:[#allocation2 + $0x22c] ss:$12 sps:$4 sm:$0xff]   ;;  %v3863_v16 = vld [vmem:[#allocation2 + $0x2f0] ss:$12 sps:$4 sm:$0xff]  }
 0x108   :  { %1764 = vmatprep.subr.bf16.mxu0 %v3822_v2  ;;  %3310 = vmatprep.subr.bf16.mxu1 %v3839_v12  ;;  %v305_v8 = vadd.f32 %v304_v22, %v4397_v33  ;;  %v834_v43 = vmax.f32 %v447_v24, 0.0  ;;  %v738_v54 = vmax.f32 %v303_v34, 0.0  ;;  %v3833_v34 = vld [vmem:[#allocation2 + $0x228] ss:$12 sps:$4 sm:$0xff]  }
 0x109   :  { %v308_v0 = vpop.f32.mrb[14].mxu0  ;;  %1615 = vmatprep.mubr.bf16.mxu0 %v851_v28  ;;  %1997 = vmatprep.mubr.bf16.mxu1 %v851_v28  ;;  %v452_v37 = vpop.f32.mrb[14].mxu1  ;;  %v835_v51 = vmax.f32 %v449_v36, 0.0 }
 0x10a   :  { %v309_v40 = vadd.f32 %v308_v0, %v4392_v29  ;;  %v310_v41 = vpop.f32.mrb[15].mxu0  ;;  %1616 = vmatmul.mubr.bf16.gmra.mrb[56].mxu0 %v850_v20  ;;  %1998 = vmatmul.mubr.bf16.gmra.mrb[88].mxu1 %v850_v20  ;;  %v453_v45 = vadd.f32 %v452_v37, %v4392_v29  ;;  %v454_v46 = vpop.f32.mrb[15].mxu1  ;;  %v739_v59 = vmax.f32 %v305_v8, 0.0  ;;  %v3864_v37 = vld [vmem:[#allocation2 + $0x230] ss:$12 sps:$4 sm:$0xff]  }
 0x10b   :  { %v311_v48 = vadd.f32 %v310_v41, %v4397_v33  ;;  %1765 = vmatpush1.bf16.msra.mxu0 %v3820_v30  ;;  %3311 = vmatpush3.bf16.msra.mxu1 %v3840_v31  ;;  %v455_v52 = vadd.f32 %v454_v46, %v4397_v33 }
 0x10c   :  { %v742_v55 = vmax.f32 %v309_v40, 0.0  ;;  %1766 = vmatprep.subr.bf16.mxu0 %v3827_v35  ;;  %v838_v56 = vmax.f32 %v453_v45, 0.0  ;;  %3312 = vmatprep.subr.bf16.mxu1 %v3847_v38  ;;  %v3838_v35 = vld [vmem:[#allocation2 + $0x244] ss:$12 sps:$4 sm:$0xff]  }
 0x10d   :  { %v743_v60 = vmax.f32 %v311_v48, 0.0  ;;  %v314_v61 = vpop.f32.mrb[16].mxu0  ;;  %v839_v62 = vmax.f32 %v455_v52, 0.0  ;;  %v523_v63 = vpop.f32.mrb[16].mxu1 }
 0x10e   :  { %v854_v1 = vpack.c.bf16 %v742_v55, %v738_v54  ;;  %v316_v2 = vpop.f32.mrb[17].mxu0  ;;  %v4453_v4 = vpack.c.bf16 %v838_v56, %v834_v43  ;;  %v524_v5 = vadd.f32 %v523_v63, %v4446_v47  ;;  %v525_v6 = vpop.f32.mrb[17].mxu1  ;;  %v315_v13 = vadd.f32 %v314_v61, %v4392_v29  ;;  %v3836_v54 = vld [vmem:[#allocation2 + $0x240] ss:$12 sps:$4 sm:$0xff]  }
 0x10f   :  { %v855_v7 = vpack.c.bf16 %v743_v60, %v739_v59  ;;  %1767 = vmatpush1.bf16.msra.mxu0 %v3825_v42  ;;  %v4456_v12 = vpack.c.bf16 %v839_v62, %v835_v51  ;;  %3313 = vmatpush3.bf16.msra.mxu1 %v3848_v53  ;;  %v526_v15 = vadd.f32 %v525_v6, %v4451_v57  ;;  %v3843_v59 = vld [vmem:[#allocation2 + $0x25c] ss:$12 sps:$4 sm:$0xff]  }
 0x110   :  { %1768 = vmatprep.subr.bf16.mxu0 %v3830_v49  ;;  %3314 = vmatprep.subr.bf16.mxu1 %v3855_v58  ;;  %v317_v17 = vadd.f32 %v316_v2, %v4397_v33  ;;  %v716_v26 = vmax.f32 %v524_v5, 0.0  ;;  %v746_v39 = vmax.f32 %v315_v13, 0.0 }
 0x111   :  { %v320_v19 = vpop.f32.mrb[18].mxu0  ;;  %1625 = vmatprep.mubr.bf16.mxu0 %v855_v7  ;;  %2005 = vmatprep.mubr.bf16.mxu1 %v855_v7  ;;  %v529_v20 = vpop.f32.mrb[18].mxu1  ;;  %v717_v36 = vmax.f32 %v526_v15, 0.0 }
 0x112   :  { %v321_v22 = vadd.f32 %v320_v19, %v4392_v29  ;;  %v322_v24 = vpop.f32.mrb[19].mxu0  ;;  %1626 = vmatmul.mubr.bf16.gmra.mrb[60].mxu0 %v854_v1  ;;  %2006 = vmatmul.mubr.bf16.gmra.mrb[92].mxu1 %v854_v1  ;;  %v530_v28 = vadd.f32 %v529_v20, %v4446_v47  ;;  %v531_v30 = vpop.f32.mrb[19].mxu1  ;;  %v747_v40 = vmax.f32 %v317_v17, 0.0 }
 0x113   :  { %v323_v31 = vadd.f32 %v322_v24, %v4397_v33  ;;  %1769 = vmatpush1.bf16.msra.mxu0 %v3828_v9  ;;  %v532_v38 = vadd.f32 %v531_v30, %v4451_v57  ;;  %3315 = vmatpush3.bf16.msra.mxu1 %v3856_v21  ;;  %v3841_v9 = vld [vmem:[#allocation2 + $0x258] ss:$12 sps:$4 sm:$0xff]  }
 0x114   :  { %v750_v8 = vmax.f32 %v321_v22, 0.0  ;;  %1770 = vmatprep.subr.bf16.mxu0 %v3835_v14  ;;  %v720_v0 = vmax.f32 %v530_v28, 0.0  ;;  %3316 = vmatprep.subr.bf16.mxu1 %v3863_v16  ;;  %v3846_v16 = vld [vmem:[#allocation2 + $0x274] ss:$12 sps:$4 sm:$0xff]  }
 0x115   :  { %v751_v41 = vmax.f32 %v323_v31, 0.0  ;;  %v326_v42 = vpop.f32.mrb[20].mxu0  ;;  %v721_v43 = vmax.f32 %v532_v38, 0.0  ;;  %v535_v45 = vpop.f32.mrb[20].mxu1  ;;  %v3844_v38 = vld [vmem:[#allocation2 + $0x270] ss:$12 sps:$4 sm:$0xff]  }
 0x116   :  { %v858_v46 = vpack.c.bf16 %v750_v8, %v746_v39  ;;  %v328_v48 = vpop.f32.mrb[21].mxu0  ;;  %v4465_v49 = vpack.c.bf16 %v720_v0, %v716_v26  ;;  %v536_v51 = vadd.f32 %v535_v45, %v4446_v47  ;;  %v537_v52 = vpop.f32.mrb[21].mxu1  ;;  %v327_v58 = vadd.f32 %v326_v42, %v4392_v29 }
 0x117   :  { %v859_v53 = vpack.c.bf16 %v751_v41, %v747_v40  ;;  %1771 = vmatpush1.bf16.msra.mxu0 %v3833_v34  ;;  %v4468_v55 = vpack.c.bf16 %v721_v43, %v717_v36  ;;  %v538_v56 = vadd.f32 %v537_v52, %v4451_v57  ;;  %3317 = vmatpush3.bf16.msra.mxu1 %v3864_v37  ;;  %v3851_v37 = vld [vmem:[#allocation2 + $0x28c] ss:$12 sps:$4 sm:$0xff]  }
 0x118   :  { %1772 = vmatprep.subr.bf16.mxu0 %v3838_v35  ;;  %v329_v60 = vadd.f32 %v328_v48, %v4397_v33  ;;  %v724_v2 = vmax.f32 %v536_v51, 0.0  ;;  %v754_v14 = vmax.f32 %v327_v58, 0.0 }
 0x119   :  { %v332_v61 = vpop.f32.mrb[22].mxu0  ;;  %1635 = vmatprep.mubr.bf16.mxu0 %v859_v53  ;;  %2013 = vmatprep.mubr.bf16.mxu1 %v859_v53  ;;  %v541_v62 = vpop.f32.mrb[22].mxu1  ;;  %v725_v21 = vmax.f32 %v538_v56, 0.0  ;;  %v3849_v53 = vld [vmem:[#allocation2 + $0x288] ss:$12 sps:$4 sm:$0xff]  }
 0x11a   :  { %v333_v63 = vadd.f32 %v332_v61, %v4392_v29  ;;  %v334_v1 = vpop.f32.mrb[23].mxu0  ;;  %1636 = vmatmul.mubr.bf16.gmra.mrb[64].mxu0 %v858_v46  ;;  %2014 = vmatmul.mubr.bf16.gmra.mrb[96].mxu1 %v858_v46  ;;  %v542_v5 = vadd.f32 %v541_v62, %v4446_v47  ;;  %v543_v6 = vpop.f32.mrb[23].mxu1  ;;  %v755_v19 = vmax.f32 %v329_v60, 0.0  ;;  %v3854_v60 = vld [vmem:[#allocation2 + $0x2a4] ss:$12 sps:$4 sm:$0xff]  }
 0x11b   :  { %v335_v7 = vadd.f32 %v334_v1, %v4397_v33  ;;  %1773 = vmatpush1.bf16.msra.mxu0 %v3836_v54  ;;  %v544_v13 = vadd.f32 %v543_v6, %v4451_v57 }
 0x11c   :  { %v758_v15 = vmax.f32 %v333_v63, 0.0  ;;  %1774 = vmatprep.subr.bf16.mxu0 %v3843_v59  ;;  %v728_v17 = vmax.f32 %v542_v5, 0.0 }
 0x11d   :  { %v759_v20 = vmax.f32 %v335_v7, 0.0  ;;  %v338_v22 = vpop.f32.mrb[24].mxu0  ;;  %v729_v24 = vmax.f32 %v544_v13, 0.0  ;;  %v547_v26 = vpop.f32.mrb[24].mxu1 }
 0x11e   :  { %v862_v28 = vpack.c.bf16 %v758_v15, %v754_v14  ;;  %v340_v30 = vpop.f32.mrb[25].mxu0  ;;  %v4477_v31 = vpack.c.bf16 %v728_v17, %v724_v2  ;;  %v548_v34 = vadd.f32 %v547_v26, %v4446_v47  ;;  %v549_v35 = vpop.f32.mrb[25].mxu1  ;;  %v339_v0 = vadd.f32 %v338_v22, %v4392_v29  ;;  %v3852_v15 = vld [vmem:[#allocation2 + $0x2a0] ss:$12 sps:$4 sm:$0xff]  }
 0x11f   :  { %v863_v36 = vpack.c.bf16 %v759_v20, %v755_v19  ;;  %1775 = vmatpush1.bf16.msra.mxu0 %v3841_v9  ;;  %v4480_v39 = vpack.c.bf16 %v729_v24, %v725_v21  ;;  %v550_v8 = vadd.f32 %v549_v35, %v4451_v57  ;;  %v341_v40 = vadd.f32 %v340_v30, %v4397_v33  ;;  %v3859_v20 = vld [vmem:[#allocation2 + $0x2bc] ss:$12 sps:$4 sm:$0xff]  }
 0x120   :  { %1776 = vmatprep.subr.bf16.mxu0 %v3846_v16  ;;  %v732_v46 = vmax.f32 %v548_v34, 0.0  ;;  %v762_v58 = vmax.f32 %v339_v0, 0.0 }
 0x121   :  { %v344_v41 = vpop.f32.mrb[26].mxu0  ;;  %1645 = vmatprep.mubr.bf16.mxu0 %v863_v36  ;;  %2021 = vmatprep.mubr.bf16.mxu1 %v863_v36  ;;  %v553_v42 = vpop.f32.mrb[26].mxu1  ;;  %v733_v54 = vmax.f32 %v550_v8, 0.0  ;;  %v763_v62 = vmax.f32 %v341_v40, 0.0  ;;  %v3857_v8 = vld [vmem:[#allocation2 + $0x2b8] ss:$12 sps:$4 sm:$0xff]  }
 0x122   :  { %v345_v43 = vadd.f32 %v344_v41, %v4392_v29  ;;  %v346_v45 = vpop.f32.mrb[27].mxu0  ;;  %1646 = vmatmul.mubr.bf16.gmra.mrb[68].mxu0 %v862_v28  ;;  %2022 = vmatmul.mubr.bf16.gmra.mrb[100].mxu1 %v862_v28  ;;  %v554_v48 = vadd.f32 %v553_v42, %v4446_v47  ;;  %v555_v51 = vpop.f32.mrb[27].mxu1 }
 0x123   :  { %v347_v52 = vadd.f32 %v346_v45, %v4397_v33  ;;  %1777 = vmatpush1.bf16.msra.mxu0 %v3844_v38  ;;  %v556_v56 = vadd.f32 %v555_v51, %v4451_v57 }
 0x124   :  { %v766_v59 = vmax.f32 %v345_v43, 0.0  ;;  %1778 = vmatprep.subr.bf16.mxu0 %v3851_v37  ;;  %v736_v61 = vmax.f32 %v554_v48, 0.0  ;;  %v3862_v43 = vld [vmem:[#allocation2 + $0x2d4] ss:$12 sps:$4 sm:$0xff]  }
 0x125   :  { %v767_v63 = vmax.f32 %v347_v52, 0.0  ;;  %v350_v1 = vpop.f32.mrb[28].mxu0  ;;  %v737_v2 = vmax.f32 %v556_v56, 0.0  ;;  %v559_v5 = vpop.f32.mrb[28].mxu1 }
 0x126   :  { %v866_v6 = vpack.c.bf16 %v766_v59, %v762_v58  ;;  %v352_v7 = vpop.f32.mrb[29].mxu0  ;;  %v4489_v9 = vpack.c.bf16 %v736_v61, %v732_v46  ;;  %v560_v21 = vadd.f32 %v559_v5, %v4446_v47  ;;  %v561_v13 = vpop.f32.mrb[29].mxu1  ;;  %v351_v19 = vadd.f32 %v350_v1, %v4392_v29 }
 0x127   :  { %v867_v14 = vpack.c.bf16 %v767_v63, %v763_v62  ;;  %1779 = vmatpush1.bf16.msra.mxu0 %v3849_v53  ;;  %v4492_v16 = vpack.c.bf16 %v737_v2, %v733_v54  ;;  %v562_v17 = vadd.f32 %v561_v13, %v4451_v57  ;;  %v353_v22 = vadd.f32 %v352_v7, %v4397_v33  ;;  %v3860_v62 = vld [vmem:[#allocation2 + $0x2d0] ss:$12 sps:$4 sm:$0xff]   ;;  %v3867_v2 = vld [vmem:[#allocation2 + $0x2ec] ss:$12 sps:$4 sm:$0xff]  }
 0x128   :  { %1780 = vmatprep.subr.bf16.mxu0 %v3854_v60  ;;  %v740_v34 = vmax.f32 %v560_v21, 0.0  ;;  %v770_v40 = vmax.f32 %v351_v19, 0.0 }
 0x129   :  { %v356_v24 = vpop.f32.mrb[30].mxu0  ;;  %1655 = vmatprep.mubr.bf16.mxu0 %v867_v14  ;;  %2029 = vmatprep.mubr.bf16.mxu1 %v867_v14  ;;  %v565_v26 = vpop.f32.mrb[30].mxu1  ;;  %v741_v0 = vmax.f32 %v562_v17, 0.0  ;;  %v771_v45 = vmax.f32 %v353_v22, 0.0 }
 0x12a   :  { %v357_v28 = vadd.f32 %v356_v24, %v4392_v29  ;;  %v358_v30 = vpop.f32.mrb[31].mxu0  ;;  %1656 = vmatmul.mubr.bf16.gmra.mrb[72].mxu0 %v866_v6  ;;  %2030 = vmatmul.mubr.bf16.gmra.mrb[104].mxu1 %v866_v6  ;;  %v566_v35 = vadd.f32 %v565_v26, %v4446_v47  ;;  %v567_v36 = vpop.f32.mrb[31].mxu1  ;;  %v3865_v24 = vld [vmem:[#allocation2 + $0x2e8] ss:$12 sps:$4 sm:$0xff]  }
 0x12b   :  { %v359_v38 = vadd.f32 %v358_v30, %v4397_v33  ;;  %1781 = vmatpush1.bf16.msra.mxu0 %v3852_v15  ;;  %v568_v37 = vadd.f32 %v567_v36, %v4451_v57 }
 0x12c   :  { %v774_v41 = vmax.f32 %v357_v28, 0.0  ;;  %1782 = vmatprep.subr.bf16.mxu0 %v3859_v20  ;;  %v744_v42 = vmax.f32 %v566_v35, 0.0 }
 0x12d   :  { %v775_v46 = vmax.f32 %v359_v38, 0.0  ;;  %v362_v48 = vpop.f32.mrb[32].mxu0  ;;  %v745_v51 = vmax.f32 %v568_v37, 0.0  ;;  %v571_v52 = vpop.f32.mrb[32].mxu1 }
 0x12e   :  { %v870_v53 = vpack.c.bf16 %v774_v41, %v770_v40  ;;  %v364_v54 = vpop.f32.mrb[33].mxu0  ;;  %v4501_v56 = vpack.c.bf16 %v744_v42, %v740_v34  ;;  %v572_v58 = vadd.f32 %v571_v52, %v4446_v47  ;;  %v573_v59 = vpop.f32.mrb[33].mxu1  ;;  %v363_v1 = vadd.f32 %v362_v48, %v4392_v29 }
 0x12f   :  { %v871_v60 = vpack.c.bf16 %v775_v46, %v771_v45  ;;  %1783 = vmatpush1.bf16.msra.mxu0 %v3857_v8  ;;  %v4504_v61 = vpack.c.bf16 %v745_v51, %v741_v0  ;;  %v574_v63 = vadd.f32 %v573_v59, %v4451_v57  ;;  %v365_v5 = vadd.f32 %v364_v54, %v4397_v33 }
 0x130   :  { %1784 = vmatprep.subr.bf16.mxu0 %v3862_v43  ;;  %v748_v14 = vmax.f32 %v572_v58, 0.0  ;;  %v778_v26 = vmax.f32 %v363_v1, 0.0 }
 0x131   :  { %v368_v6 = vpop.f32.mrb[34].mxu0  ;;  %1665 = vmatprep.mubr.bf16.mxu0 %v871_v60  ;;  %2037 = vmatprep.mubr.bf16.mxu1 %v871_v60  ;;  %v577_v7 = vpop.f32.mrb[34].mxu1  ;;  %v749_v20 = vmax.f32 %v574_v63, 0.0  ;;  %v779_v34 = vmax.f32 %v365_v5, 0.0 }
 0x132   :  { %v369_v21 = vadd.f32 %v368_v6, %v4392_v29  ;;  %v370_v13 = vpop.f32.mrb[35].mxu0  ;;  %1666 = vmatmul.mubr.bf16.gmra.mrb[76].mxu0 %v870_v53  ;;  %2038 = vmatmul.mubr.bf16.gmra.mrb[108].mxu1 %v870_v53  ;;  %v578_v15 = vadd.f32 %v577_v7, %v4446_v47  ;;  %v579_v17 = vpop.f32.mrb[35].mxu1 }
 0x133   :  { %v371_v19 = vadd.f32 %v370_v13, %v4397_v33  ;;  %1785 = vmatpush1.bf16.msra.mxu0 %v3860_v62  ;;  %v580_v22 = vadd.f32 %v579_v17, %v4451_v57 }
 0x134   :  { %v782_v28 = vmax.f32 %v369_v21, 0.0  ;;  %v752_v30 = vmax.f32 %v578_v15, 0.0  ;;  %1786 = vmatprep.subr.bf16.mxu0 %v3867_v2 }
 0x135   :  { %v783_v35 = vmax.f32 %v371_v19, 0.0  ;;  %v374_v36 = vpop.f32.mrb[36].mxu0  ;;  %v753_v38 = vmax.f32 %v580_v22, 0.0  ;;  %v583_v8 = vpop.f32.mrb[36].mxu1 }
 0x136   :  { %v874_v0 = vpack.c.bf16 %v782_v28, %v778_v26  ;;  %v376_v37 = vpop.f32.mrb[37].mxu0  ;;  %v4513_v40 = vpack.c.bf16 %v752_v30, %v748_v14  ;;  %v584_v41 = vadd.f32 %v583_v8, %v4446_v47  ;;  %v585_v42 = vpop.f32.mrb[37].mxu1  ;;  %v375_v48 = vadd.f32 %v374_v36, %v4392_v29 }
 0x137   :  { %v875_v43 = vpack.c.bf16 %v783_v35, %v779_v34  ;;  %v4516_v45 = vpack.c.bf16 %v753_v38, %v749_v20  ;;  %1787 = vmatpush1.bf16.msra.mxu0 %v3865_v24  ;;  %v586_v46 = vadd.f32 %v585_v42, %v4451_v57  ;;  %v377_v51 = vadd.f32 %v376_v37, %v4397_v33 }
 0x138   :  { %v756_v59 = vmax.f32 %v584_v41, 0.0  ;;  %v786_v5 = vmax.f32 %v375_v48, 0.0 }
 0x139   :  { %v380_v52 = vpop.f32.mrb[38].mxu0  ;;  %1675 = vmatprep.mubr.bf16.mxu0 %v875_v43  ;;  %2045 = vmatprep.mubr.bf16.mxu1 %v875_v43  ;;  %v589_v53 = vpop.f32.mrb[38].mxu1  ;;  %v757_v1 = vmax.f32 %v586_v46, 0.0  ;;  %v787_v21 = vmax.f32 %v377_v51, 0.0 }
 0x13a   :  { %v381_v54 = vadd.f32 %v380_v52, %v4392_v29  ;;  %v382_v58 = vpop.f32.mrb[39].mxu0  ;;  %1676 = vmatmul.mubr.bf16.gmra.mrb[80].mxu0 %v874_v0  ;;  %2046 = vmatmul.mubr.bf16.gmra.mrb[112].mxu1 %v874_v0  ;;  %v590_v60 = vadd.f32 %v589_v53, %v4446_v47  ;;  %v591_v62 = vpop.f32.mrb[39].mxu1 }
 0x13b   :  { %v383_v63 = vadd.f32 %v382_v58, %v4397_v33  ;;  %v592_v2 = vadd.f32 %v591_v62, %v4451_v57 }
 0x13c   :  { %v790_v6 = vmax.f32 %v381_v54, 0.0  ;;  %v760_v7 = vmax.f32 %v590_v60, 0.0 }
 0x13d   :  { %v791_v13 = vmax.f32 %v383_v63, 0.0  ;;  %v386_v14 = vpop.f32.mrb[40].mxu0  ;;  %v761_v15 = vmax.f32 %v592_v2, 0.0  ;;  %v595_v17 = vpop.f32.mrb[40].mxu1 }
 0x13e   :  { %v878_v19 = vpack.c.bf16 %v790_v6, %v786_v5  ;;  %v388_v20 = vpop.f32.mrb[41].mxu0  ;;  %v4525_v22 = vpack.c.bf16 %v760_v7, %v756_v59  ;;  %v596_v24 = vadd.f32 %v595_v17, %v4446_v47  ;;  %v597_v26 = vpop.f32.mrb[41].mxu1  ;;  %v387_v35 = vadd.f32 %v386_v14, %v4392_v29 }
 0x13f   :  { %v879_v28 = vpack.c.bf16 %v791_v13, %v787_v21  ;;  %v4528_v30 = vpack.c.bf16 %v761_v15, %v757_v1  ;;  %v598_v34 = vadd.f32 %v597_v26, %v4451_v57  ;;  %v389_v36 = vadd.f32 %v388_v20, %v4397_v33 }
 0x140   :  { %v764_v41 = vmax.f32 %v596_v24, 0.0  ;;  %v794_v52 = vmax.f32 %v387_v35, 0.0 }
 0x141   :  { %v392_v38 = vpop.f32.mrb[42].mxu0  ;;  %1685 = vmatprep.mubr.bf16.mxu0 %v879_v28  ;;  %2053 = vmatprep.mubr.bf16.mxu1 %v879_v28  ;;  %v601_v8 = vpop.f32.mrb[42].mxu1  ;;  %v765_v48 = vmax.f32 %v598_v34, 0.0  ;;  %v795_v58 = vmax.f32 %v389_v36, 0.0 }
 0x142   :  { %v393_v0 = vadd.f32 %v392_v38, %v4392_v29  ;;  %v394_v37 = vpop.f32.mrb[43].mxu0  ;;  %1686 = vmatmul.mubr.bf16.gmra.mrb[84].mxu0 %v878_v19  ;;  %2054 = vmatmul.mubr.bf16.gmra.mrb[116].mxu1 %v878_v19  ;;  %v602_v42 = vadd.f32 %v601_v8, %v4446_v47  ;;  %v603_v43 = vpop.f32.mrb[43].mxu1 }
 0x143   :  { %v395_v46 = vadd.f32 %v394_v37, %v4397_v33  ;;  %v604_v51 = vadd.f32 %v603_v43, %v4451_v57 }
 0x144   :  { %v798_v53 = vmax.f32 %v393_v0, 0.0  ;;  %v768_v54 = vmax.f32 %v602_v42, 0.0 }
 0x145   :  { %v799_v59 = vmax.f32 %v395_v46, 0.0  ;;  %v398_v60 = vpop.f32.mrb[44].mxu0  ;;  %v769_v62 = vmax.f32 %v604_v51, 0.0  ;;  %v607_v63 = vpop.f32.mrb[44].mxu1 }
 0x146   :  { %v882_v1 = vpack.c.bf16 %v798_v53, %v794_v52  ;;  %v400_v2 = vpop.f32.mrb[45].mxu0  ;;  %v4537_v5 = vpack.c.bf16 %v768_v54, %v764_v41  ;;  %v608_v6 = vadd.f32 %v607_v63, %v4446_v47  ;;  %v609_v7 = vpop.f32.mrb[45].mxu1  ;;  %v399_v15 = vadd.f32 %v398_v60, %v4392_v29 }
 0x147   :  { %v883_v21 = vpack.c.bf16 %v799_v59, %v795_v58  ;;  %v4540_v13 = vpack.c.bf16 %v769_v62, %v765_v48  ;;  %v610_v14 = vadd.f32 %v609_v7, %v4451_v57  ;;  %v401_v17 = vadd.f32 %v400_v2, %v4397_v33 }
 0x148   :  { %v772_v28 = vmax.f32 %v608_v6, 0.0  ;;  %v802_v0 = vmax.f32 %v399_v15, 0.0 }
 0x149   :  { %v404_v19 = vpop.f32.mrb[46].mxu0  ;;  %1695 = vmatprep.mubr.bf16.mxu0 %v883_v21  ;;  %2061 = vmatprep.mubr.bf16.mxu1 %v883_v21  ;;  %v613_v20 = vpop.f32.mrb[46].mxu1  ;;  %v773_v38 = vmax.f32 %v610_v14, 0.0  ;;  %v803_v42 = vmax.f32 %v401_v17, 0.0 }
 0x14a   :  { %v405_v24 = vadd.f32 %v404_v19, %v4392_v29  ;;  %v406_v26 = vpop.f32.mrb[47].mxu0  ;;  %1696 = vmatmul.mubr.bf16.gmra.mrb[88].mxu0 %v882_v1  ;;  %2062 = vmatmul.mubr.bf16.gmra.mrb[120].mxu1 %v882_v1  ;;  %v614_v34 = vadd.f32 %v613_v20, %v4446_v47  ;;  %v615_v35 = vpop.f32.mrb[47].mxu1 }
 0x14b   :  { %v407_v36 = vadd.f32 %v406_v26, %v4397_v33  ;;  %v616_v8 = vadd.f32 %v615_v35, %v4451_v57 }
 0x14c   :  { %v806_v37 = vmax.f32 %v405_v24, 0.0  ;;  %v776_v41 = vmax.f32 %v614_v34, 0.0 }
 0x14d   :  { %v807_v43 = vmax.f32 %v407_v36, 0.0  ;;  %v777_v46 = vmax.f32 %v616_v8, 0.0  ;;  %v619_v48 = vpop.f32.mrb[48].mxu1 }
 0x14e   :  { %v886_v29 = vpack.c.bf16 %v806_v37, %v802_v0  ;;  %v4549_v51 = vpack.c.bf16 %v776_v41, %v772_v28  ;;  %v620_v52 = vadd.f32 %v619_v48, %v4446_v47  ;;  %v621_v53 = vpop.f32.mrb[49].mxu1 }
 0x14f   :  { %v887_v54 = vpack.c.bf16 %v807_v43, %v803_v42  ;;  %v4552_v58 = vpack.c.bf16 %v777_v46, %v773_v38  ;;  %v622_v33 = vadd.f32 %v621_v53, %v4451_v57 }
 0x150   :  { %v780_v60 = vmax.f32 %v620_v52, 0.0 }
 0x151   :  { %1705 = vmatprep.mubr.bf16.mxu0 %v887_v54  ;;  %2069 = vmatprep.mubr.bf16.mxu1 %v887_v54  ;;  %v625_v59 = vpop.f32.mrb[50].mxu1  ;;  %v781_v1 = vmax.f32 %v622_v33, 0.0 }
 0x152   :  { %1706 = vmatmul.mubr.bf16.gmra.mrb[92].mxu0 %v886_v29  ;;  %2070 = vmatmul.mubr.bf16.gmra.mrb[124].mxu1 %v886_v29  ;;  %v626_v62 = vadd.f32 %v625_v59, %v4446_v47  ;;  %v627_v63 = vpop.f32.mrb[51].mxu1 }
 0x153   :  { %1715 = vmatprep.mubr.bf16.mxu0 %v4410_v11  ;;  %2077 = vmatprep.mubr.bf16.mxu1 %v4410_v11  ;;  %v628_v2 = vadd.f32 %v627_v63, %v4451_v57  ;;  %v3868_v11 = vld [vmem:[%s5114_s5 + $0x40] sm:$0xff]  }
 0x154   :  { %v784_v6 = vmax.f32 %v626_v62, 0.0  ;;  %3414 = vmatprep.subr.bf16.mxu0 %v3868_v11 }
 0x155   :  { %v785_v7 = vmax.f32 %v628_v2, 0.0  ;;  %v631_v21 = vpop.f32.mrb[52].mxu1 }
 0x156   :  { %v4559_v14 = vpack.c.bf16 %v784_v6, %v780_v60  ;;  %v632_v15 = vadd.f32 %v631_v21, %v4446_v47  ;;  %v633_v17 = vpop.f32.mrb[53].mxu1 }
 0x157   :  { %v4562_v19 = vpack.c.bf16 %v785_v7, %v781_v1  ;;  %v634_v20 = vadd.f32 %v633_v17, %v4451_v57 }
 0x158   :  { %v788_v26 = vmax.f32 %v632_v15, 0.0 }
 0x159   :  { %v637_v24 = vpop.f32.mrb[54].mxu1  ;;  %v789_v35 = vmax.f32 %v634_v20, 0.0 }
 0x15a   :  { %1716 = vmatmul.mubr.bf16.gmra.mrb[96].mxu0 %v4407_v3  ;;  %2078 = vmatmul.mubr.bf16.gmra.mrb[128].mxu1 %v4407_v3  ;;  %v638_v28 = vadd.f32 %v637_v24, %v4446_v47  ;;  %v639_v34 = vpop.f32.mrb[55].mxu1 }
 0x15b   :  { %1725 = vmatprep.mubr.bf16.mxu0 %v4422_v50  ;;  %2085 = vmatprep.mubr.bf16.mxu1 %v4422_v50  ;;  %v640_v36 = vadd.f32 %v639_v34, %v4451_v57 }
 0x15c   :  { %v792_v38 = vmax.f32 %v638_v28, 0.0 }
 0x15d   :  { %v793_v8 = vmax.f32 %v640_v36, 0.0  ;;  %v643_v0 = vpop.f32.mrb[56].mxu1 }
 0x15e   :  { %v4574_v37 = vpack.c.bf16 %v792_v38, %v788_v26  ;;  %v644_v41 = vadd.f32 %v643_v0, %v4446_v47  ;;  %v645_v3 = vpop.f32.mrb[57].mxu1 }
 0x15f   :  { %v4577_v42 = vpack.c.bf16 %v793_v8, %v789_v35  ;;  %v646_v43 = vadd.f32 %v645_v3, %v4451_v57 }
 0x160   :  { %v796_v50 = vmax.f32 %v644_v41, 0.0 }
 0x161   :  { %v649_v46 = vpop.f32.mrb[58].mxu1  ;;  %v797_v52 = vmax.f32 %v646_v43, 0.0 }
 0x162   :  { %1726 = vmatmul.mubr.bf16.gmra.mrb[100].mxu0 %v4419_v44  ;;  %2086 = vmatmul.mubr.bf16.gmra.mrb[132].mxu1 %v4419_v44  ;;  %v650_v48 = vadd.f32 %v649_v46, %v4446_v47  ;;  %v651_v29 = vpop.f32.mrb[59].mxu1 }
 0x163   :  { %1735 = vmatprep.mubr.bf16.mxu0 %v4435_v32  ;;  %2093 = vmatprep.mubr.bf16.mxu1 %v4435_v32  ;;  %v652_v53 = vadd.f32 %v651_v29, %v4451_v57 }
 0x164   :  { %v800_v54 = vmax.f32 %v650_v48, 0.0 }
 0x165   :  { %v801_v33 = vmax.f32 %v652_v53, 0.0  ;;  %v655_v59 = vpop.f32.mrb[60].mxu1  ;;  %v3870_v53 = vld [vmem:[%s5114_s5 + $0x48] sm:$0xff]  }
 0x166   :  { %v4586_v60 = vpack.c.bf16 %v800_v54, %v796_v50  ;;  %v656_v62 = vadd.f32 %v655_v59, %v4446_v47  ;;  %v657_v63 = vpop.f32.mrb[61].mxu1 }
 0x167   :  { %v4589_v44 = vpack.c.bf16 %v801_v33, %v797_v52  ;;  %v658_v1 = vadd.f32 %v657_v63, %v4451_v57  ;;  %v3869_v52 = vld [vmem:[%s5114_s5] sm:$0xff]  }
 0x168   :  { %v804_v32 = vmax.f32 %v656_v62, 0.0 }
 0x169   :  { %v661_v2 = vpop.f32.mrb[62].mxu1  ;;  %v805_v21 = vmax.f32 %v658_v1, 0.0 }
 0x16a   :  { %1736 = vmatmul.mubr.bf16.gmra.mrb[104].mxu0 %v4431_v23  ;;  %2094 = vmatmul.mubr.bf16.gmra.mrb[136].mxu1 %v4431_v23  ;;  %v662_v6 = vadd.f32 %v661_v2, %v4446_v47  ;;  %v663_v7 = vpop.f32.mrb[63].mxu1  ;;  %v3871_v2 = vld [vmem:[%s5114_s5 + $0x8] sm:$0xff]  }
 0x16b   :  { %1745 = vmatprep.mubr.bf16.mxu0 %v4456_v12  ;;  %2101 = vmatprep.mubr.bf16.mxu1 %v4456_v12  ;;  %v664_v15 = vadd.f32 %v663_v7, %v4451_v57 }
 0x16c   :  { %v808_v17 = vmax.f32 %v662_v6, 0.0 }
 0x16d   :  { %v809_v20 = vmax.f32 %v664_v15, 0.0  ;;  %v667_v24 = vpop.f32.mrb[64].mxu1 }
 0x16e   :  { %v4598_v11 = vpack.c.bf16 %v808_v17, %v804_v32  ;;  %v668_v26 = vadd.f32 %v667_v24, %v4446_v47  ;;  %v669_v28 = vpop.f32.mrb[65].mxu1 }
 0x16f   :  { %v4601_v23 = vpack.c.bf16 %v809_v20, %v805_v21  ;;  %v670_v34 = vadd.f32 %v669_v28, %v4451_v57  ;;  %v3873_v20 = vld [vmem:[%s5114_s5 + $0x10] sm:$0xff]  }
 0x170   :  { %v812_v12 = vmax.f32 %v668_v26, 0.0 }
 0x171   :  { %v673_v35 = vpop.f32.mrb[66].mxu1  ;;  %v813_v8 = vmax.f32 %v670_v34, 0.0 }
 0x172   :  { %1746 = vmatmul.mubr.bf16.gmra.mrb[108].mxu0 %v4453_v4  ;;  %2102 = vmatmul.mubr.bf16.gmra.mrb[140].mxu1 %v4453_v4  ;;  %v674_v36 = vadd.f32 %v673_v35, %v4446_v47  ;;  %v675_v38 = vpop.f32.mrb[67].mxu1 }
 0x173   :  { %1788 = vmatprep.mubr.bf16.mxu0 %v4468_v55  ;;  %2142 = vmatprep.mubr.bf16.mxu1 %v4468_v55  ;;  %v676_v0 = vadd.f32 %v675_v38, %v4451_v57 }
 0x174   :  { %v816_v41 = vmax.f32 %v674_v36, 0.0 }
 0x175   :  { %v817_v3 = vmax.f32 %v676_v0, 0.0  ;;  %v679_v43 = vpop.f32.mrb[68].mxu1 }
 0x176   :  { %v4610_v46 = vpack.c.bf16 %v816_v41, %v812_v12  ;;  %v680_v50 = vadd.f32 %v679_v43, %v4446_v47  ;;  %v681_v48 = vpop.f32.mrb[69].mxu1 }
 0x177   :  { %v4613_v4 = vpack.c.bf16 %v817_v3, %v813_v8  ;;  %v682_v29 = vadd.f32 %v681_v48, %v4451_v57 }
 0x178   :  { %v820_v54 = vmax.f32 %v680_v50, 0.0 }
 0x179   :  { %v685_v55 = vpop.f32.mrb[70].mxu1  ;;  %v821_v62 = vmax.f32 %v682_v29, 0.0 }
 0x17a   :  { %1789 = vmatmul.mubr.bf16.vlgmr.msra.gmra.mrb[48].mxu0 %v4465_v49  ;;  %2143 = vmatmul.mubr.bf16.vlgmr.msra.gmra.mrb[144].mxu1 %v4465_v49  ;;  %v686_v33 = vadd.f32 %v685_v55, %v4446_v47  ;;  %v687_v59 = vpop.f32.mrb[71].mxu1  ;;  %v3872_v49 = vld [vmem:[%s5114_s5 + $0x50] sm:$0xff]  }
 0x17b   :  { %1798 = vmatprep.mubr.bf16.mxu0 %v4480_v39  ;;  %2150 = vmatprep.mubr.bf16.mxu1 %v4480_v39  ;;  %v688_v63 = vadd.f32 %v687_v59, %v4451_v57 }
 0x17c   :  { %v824_v1 = vmax.f32 %v686_v33, 0.0  ;;  %3415 = vmatpush3.bf16.msra.mxu0 %v3869_v52 }
 0x17d   :  { %v825_v32 = vmax.f32 %v688_v63, 0.0  ;;  %v691_v6 = vpop.f32.mrb[72].mxu1  ;;  %3416 = vmatprep.subr.bf16.mxu0 %v3870_v53  ;;  %v3889_v63 = vld [vmem:[%s5114_s5 + $0xa8] sm:$0xff]  }
 0x17e   :  { %v4634_v7 = vpack.c.bf16 %v824_v1, %v820_v54  ;;  %v692_v39 = vadd.f32 %v691_v6, %v4446_v47  ;;  %v693_v21 = vpop.f32.mrb[73].mxu1  ;;  %v3875_v54 = vld [vmem:[%s5114_s5 + $0x18] sm:$0xff]  }
 0x17f   :  { %v4637_v15 = vpack.c.bf16 %v825_v32, %v821_v62  ;;  %v694_v17 = vadd.f32 %v693_v21, %v4451_v57 }
 0x180   :  { %3417 = vmatpush3.bf16.msra.mxu0 %v3871_v2  ;;  %v828_v26 = vmax.f32 %v692_v39, 0.0 }
 0x181   :  { %v697_v24 = vpop.f32.mrb[74].mxu1  ;;  %3418 = vmatprep.subr.bf16.mxu0 %v3872_v49  ;;  %v829_v35 = vmax.f32 %v694_v17, 0.0  ;;  %v3890_v49 = vld [vmem:[%s5114_s5 + $0xb0] sm:$0xff]  }
 0x182   :  { %1799 = vmatmul.mubr.bf16.gmra.mrb[52].mxu0 %v4477_v31  ;;  %2151 = vmatmul.mubr.bf16.gmra.mrb[148].mxu1 %v4477_v31  ;;  %v698_v28 = vadd.f32 %v697_v24, %v4446_v47  ;;  %v699_v34 = vpop.f32.mrb[75].mxu1 }
 0x183   :  { %1808 = vmatprep.mubr.bf16.mxu0 %v4492_v16  ;;  %2158 = vmatprep.mubr.bf16.mxu1 %v4492_v16  ;;  %v700_v12 = vadd.f32 %v699_v34, %v4451_v57  ;;  %v3874_v16 = vld [vmem:[%s5114_s5 + $0x58] sm:$0xff]  }
 0x184   :  { %v832_v36 = vmax.f32 %v698_v28, 0.0  ;;  %3419 = vmatpush3.bf16.msra.mxu0 %v3873_v20 }
 0x185   :  { %v833_v38 = vmax.f32 %v700_v12, 0.0  ;;  %v703_v8 = vpop.f32.mrb[76].mxu1  ;;  %3420 = vmatprep.subr.bf16.mxu0 %v3874_v16 }
 0x186   :  { %v4649_v0 = vpack.c.bf16 %v832_v36, %v828_v26  ;;  %v704_v41 = vadd.f32 %v703_v8, %v4446_v47  ;;  %v705_v31 = vpop.f32.mrb[77].mxu1 }
 0x187   :  { %v4652_v3 = vpack.c.bf16 %v833_v38, %v829_v35  ;;  %v706_v43 = vadd.f32 %v705_v31, %v4451_v57 }
 0x188   :  { %v836_v48 = vmax.f32 %v704_v41, 0.0  ;;  %3421 = vmatpush3.bf16.msra.mxu0 %v3875_v54 }
 0x189   :  { %v709_v50 = vpop.f32.mrb[78].mxu1  ;;  %v837_v55 = vmax.f32 %v706_v43, 0.0 }
 0x18a   :  { %1809 = vmatmul.mubr.bf16.gmra.mrb[56].mxu0 %v4489_v9  ;;  %2159 = vmatmul.mubr.bf16.gmra.mrb[152].mxu1 %v4489_v9  ;;  %v710_v29 = vadd.f32 %v709_v50, %v4446_v47  ;;  %v711_v52 = vpop.f32.mrb[79].mxu1  ;;  %v3876_v47 = vld [vmem:[%s5114_s5 + $0x60] sm:$0xff]  }
 0x18b   :  { %1818 = vmatprep.mubr.bf16.mxu0 %v4504_v61  ;;  %2166 = vmatprep.mubr.bf16.mxu1 %v4504_v61  ;;  %v712_v53 = vadd.f32 %v711_v52, %v4451_v57  ;;  %v3877_v57 = vld [vmem:[%s5114_s5 + $0x20] sm:$0xff]   ;;  %v3879_v61 = vld [vmem:[%s5114_s5 + $0x68] sm:$0xff]  }
 0x18c   :  { %v840_v33 = vmax.f32 %v710_v29, 0.0  ;;  %3422 = vmatprep.subr.bf16.mxu0 %v3876_v47 }
 0x18d   :  { %v841_v59 = vmax.f32 %v712_v53, 0.0  ;;  %3423 = vmatpush3.bf16.msra.mxu0 %v3877_v57 }
 0x18e   :  { %v4667_v9 = vpack.c.bf16 %v840_v33, %v836_v48  ;;  %3424 = vmatprep.subr.bf16.mxu0 %v3879_v61 }
 0x18f   :  { %v4669_v62 = vpack.c.bf16 %v841_v59, %v837_v55 }
 0x192   :  { %1819 = vmatmul.mubr.bf16.gmra.mrb[60].mxu0 %v4501_v56  ;;  %2167 = vmatmul.mubr.bf16.gmra.mrb[156].mxu1 %v4501_v56  ;;  %v3878_v56 = vld [vmem:[%s5114_s5 + $0x80] sm:$0xff]  }
 0x193   :  { %1828 = vmatprep.mubr.bf16.mxu0 %v4516_v45  ;;  %2174 = vmatprep.mubr.bf16.mxu1 %v4516_v45  ;;  %v3881_v45 = vld [vmem:[%s5114_s5 + $0x88] sm:$0xff]  }
 0x194   :  { %3550 = vmatprep.subr.bf16.mxu1 %v3878_v56 }
 0x195   :  { %3551 = vmatpush3.bf16.msra.mxu1 %v3878_v56 }
 0x196   :  { %3552 = vmatprep.subr.bf16.mxu1 %v3881_v45 }
 0x199   :  { %3553 = vmatpush3.bf16.msra.mxu1 %v3881_v45 }
 0x19a   :  { %1829 = vmatmul.mubr.bf16.gmra.mrb[64].mxu0 %v4513_v40  ;;  %2175 = vmatmul.mubr.bf16.gmra.mrb[160].mxu1 %v4513_v40  ;;  %v3880_v40 = vld [vmem:[%s5114_s5 + $0x28] sm:$0xff]  }
 0x19b   :  { %1838 = vmatprep.mubr.bf16.mxu0 %v4528_v30  ;;  %2182 = vmatprep.mubr.bf16.mxu1 %v4528_v30  ;;  %v3883_v30 = vld [vmem:[%s5114_s5 + $0x30] sm:$0xff]  }
 0x19c   :  { %3425 = vmatpush3.bf16.msra.mxu0 %v3880_v40 }
 0x1a2   :  { %1839 = vmatmul.mubr.bf16.gmra.mrb[68].mxu0 %v4525_v22  ;;  %2183 = vmatmul.mubr.bf16.gmra.mrb[164].mxu1 %v4525_v22  ;;  %v3882_v22 = vld [vmem:[%s5114_s5 + $0x70] sm:$0xff]  }
 0x1a3   :  { %1848 = vmatprep.mubr.bf16.mxu0 %v4540_v13  ;;  %2190 = vmatprep.mubr.bf16.mxu1 %v4540_v13  ;;  %v3885_v13 = vld [vmem:[%s5114_s5 + $0x78] sm:$0xff]  }
 0x1a4   :  { %3426 = vmatprep.subr.bf16.mxu0 %v3882_v22 }
 0x1a5   :  { %3427 = vmatpush3.bf16.msra.mxu0 %v3883_v30 }
 0x1a6   :  { %3428 = vmatprep.subr.bf16.mxu0 %v3885_v13 }
 0x1aa   :  { %1849 = vmatmul.mubr.bf16.gmra.mrb[72].mxu0 %v4537_v5  ;;  %2191 = vmatmul.mubr.bf16.gmra.mrb[168].mxu1 %v4537_v5  ;;  %v3884_v5 = vld [vmem:[%s5114_s5 + $0x90] sm:$0xff]  }
 0x1ab   :  { %1858 = vmatprep.mubr.bf16.mxu0 %v4552_v58  ;;  %2198 = vmatprep.mubr.bf16.mxu1 %v4552_v58  ;;  %v3887_v58 = vld [vmem:[%s5114_s5 + $0x98] sm:$0xff]  }
 0x1ac   :  { %3554 = vmatprep.subr.bf16.mxu1 %v3884_v5 }
 0x1ad   :  { %3555 = vmatpush3.bf16.msra.mxu1 %v3884_v5 }
 0x1ae   :  { %3556 = vmatprep.subr.bf16.mxu1 %v3887_v58 }
 0x1b1   :  { %3557 = vmatpush3.bf16.msra.mxu1 %v3887_v58 }
 0x1b2   :  { %1859 = vmatmul.mubr.bf16.gmra.mrb[76].mxu0 %v4549_v51  ;;  %2199 = vmatmul.mubr.bf16.gmra.mrb[172].mxu1 %v4549_v51  ;;  %v3886_v51 = vld [vmem:[%s5114_s5 + $0x38] sm:$0xff]  }
 0x1b3   :  { %1868 = vmatprep.mubr.bf16.mxu0 %v4562_v19  ;;  %2206 = vmatprep.mubr.bf16.mxu1 %v4562_v19 }
 0x1b4   :  { %3429 = vmatpush3.bf16.msra.mxu0 %v3886_v51 }
 0x1ba   :  { %1869 = vmatmul.mubr.bf16.gmra.mrb[80].mxu0 %v4559_v14  ;;  %2207 = vmatmul.mubr.bf16.gmra.mrb[176].mxu1 %v4559_v14 }
 0x1bb   :  { %1878 = vmatprep.mubr.bf16.mxu0 %v4577_v42  ;;  %2214 = vmatprep.mubr.bf16.mxu1 %v4577_v42 }
 0x1c2   :  { %1879 = vmatmul.mubr.bf16.gmra.mrb[84].mxu0 %v4574_v37  ;;  %2215 = vmatmul.mubr.bf16.gmra.mrb[180].mxu1 %v4574_v37 }
 0x1c3   :  { %1888 = vmatprep.mubr.bf16.mxu0 %v4589_v44  ;;  %2222 = vmatprep.mubr.bf16.mxu1 %v4589_v44 }
 0x1ca   :  { %1889 = vmatmul.mubr.bf16.gmra.mrb[88].mxu0 %v4586_v60  ;;  %2223 = vmatmul.mubr.bf16.gmra.mrb[184].mxu1 %v4586_v60  ;;  %v3888_v60 = vld [vmem:[%s5114_s5 + $0xa0] sm:$0xff]  }
 0x1cb   :  { %1898 = vmatprep.mubr.bf16.mxu0 %v4601_v23  ;;  %2230 = vmatprep.mubr.bf16.mxu1 %v4601_v23 }
 0x1cc   :  { %3558 = vmatprep.subr.bf16.mxu1 %v3888_v60 }
 0x1cd   :  { %v3206_v14 = vpop.f32.mrb[80].mxu1  ;;  %3559 = vmatpush3.bf16.msra.mxu1 %v3888_v60 }
 0x1ce   :  { %v3207_v19 = vpop.f32.mrb[81].mxu1  ;;  %3560 = vmatprep.subr.bf16.mxu1 %v3889_v63 }
 0x1cf   :  { %v4739_v37 = vadd.f32 %v3207_v19, %v3206_v14  ;;  %v3209_v42 = vpop.f32.mrb[82].mxu1 }
 0x1d0   :  { %v3210_v44 = vpop.f32.mrb[83].mxu1 }
 0x1d1   :  { %v4744_v23 = vadd.f32 %v3210_v44, %v3209_v42  ;;  %3561 = vmatpush3.bf16.msra.mxu1 %v3889_v63 }
 0x1d2   :  { %1899 = vmatmul.mubr.bf16.gmra.mrb[92].mxu0 %v4598_v11  ;;  %2231 = vmatmul.mubr.bf16.gmra.mrb[188].mxu1 %v4598_v11 }
 0x1d3   :  { %1908 = vmatprep.mubr.bf16.mxu0 %v4613_v4  ;;  %2238 = vmatprep.mubr.bf16.mxu1 %v4613_v4  ;;  %v3891_v4 = vld [vmem:[%s5114_s5 + $0xb8] sm:$0xff]  }
 0x1d4   :  { %3562 = vmatprep.subr.bf16.mxu1 %v3890_v49 }
 0x1d5   :  { %v3212_v1 = vpop.f32.mrb[84].mxu1  ;;  %3563 = vmatpush3.bf16.msra.mxu1 %v3890_v49 }
 0x1d6   :  { %v3213_v2 = vpop.f32.mrb[85].mxu1  ;;  %3564 = vmatprep.subr.bf16.mxu1 %v3891_v4 }
 0x1d7   :  { %v4753_v32 = vadd.f32 %v3213_v2, %v3212_v1  ;;  %v3215_v6 = vpop.f32.mrb[86].mxu1 }
 0x1d8   :  { %v3216_v11 = vpop.f32.mrb[87].mxu1 }
 0x1d9   :  { %v4758_v39 = vadd.f32 %v3216_v11, %v3215_v6  ;;  %3565 = vmatpush3.bf16.msra.mxu1 %v3891_v4 }
 0x1da   :  { %1909 = vmatmul.mubr.bf16.gmra.mrb[96].mxu0 %v4610_v46  ;;  %2239 = vmatmul.mubr.bf16.gmra.mrb[192].mxu1 %v4610_v46 }
 0x1db   :  { %1918 = vmatprep.mubr.bf16.mxu0 %v4637_v15  ;;  %2246 = vmatprep.mubr.bf16.mxu1 %v4637_v15 }
 0x1dd   :  { %v3218_v21 = vpop.f32.mrb[88].mxu1 }
 0x1de   :  { %v3219_v17 = vpop.f32.mrb[89].mxu1 }
 0x1df   :  { %v4767_v20 = vadd.f32 %v3219_v17, %v3218_v21  ;;  %v3221_v24 = vpop.f32.mrb[90].mxu1 }
 0x1e0   :  { %v3222_v26 = vpop.f32.mrb[91].mxu1 }
 0x1e1   :  { %v4769_v28 = vadd.f32 %v3222_v26, %v3221_v24 }
 0x1e2   :  { %1919 = vmatmul.mubr.bf16.gmra.mrb[100].mxu0 %v4634_v7  ;;  %2247 = vmatmul.mubr.bf16.gmra.mrb[196].mxu1 %v4634_v7 }
 0x1e3   :  { %1928 = vmatprep.mubr.bf16.mxu0 %v4652_v3  ;;  %2254 = vmatprep.mubr.bf16.mxu1 %v4652_v3 }
 0x1e5   :  { %v3224_v46 = vpop.f32.mrb[92].mxu1 }
 0x1e6   :  { %v3225_v15 = vpop.f32.mrb[93].mxu1 }
 0x1e7   :  { %v4775_v34 = vadd.f32 %v3225_v15, %v3224_v46  ;;  %v3227_v35 = vpop.f32.mrb[94].mxu1 }
 0x1e8   :  { %v3228_v12 = vpop.f32.mrb[95].mxu1 }
 0x1e9   :  { %v4777_v36 = vadd.f32 %v3228_v12, %v3227_v35 }
 0x1ea   :  { %1929 = vmatmul.mubr.bf16.gmra.mrb[104].mxu0 %v4649_v0  ;;  %2255 = vmatmul.mubr.bf16.gmra.mrb[200].mxu1 %v4649_v0 }
 0x1eb   :  { %1938 = vmatprep.mubr.bf16.mxu0 %v4669_v62  ;;  %2262 = vmatprep.mubr.bf16.mxu1 %v4669_v62 }
 0x1ed   :  { %v3230_v7 = vpop.f32.mrb[96].mxu1 }
 0x1ee   :  { %v3231_v38 = vpop.f32.mrb[97].mxu1 }
 0x1ef   :  { %v4783_v8 = vadd.f32 %v3231_v38, %v3230_v7  ;;  %v3233_v41 = vpop.f32.mrb[98].mxu1 }
 0x1f0   :  { %v3234_v31 = vpop.f32.mrb[99].mxu1 }
 0x1f1   :  { %v4785_v3 = vadd.f32 %v3234_v31, %v3233_v41 }
 0x1f2   :  { %1939 = vmatmul.mubr.bf16.gmra.mrb[108].mxu0 %v4667_v9  ;;  %2263 = vmatmul.mubr.bf16.gmra.mrb[204].mxu1 %v4667_v9 }
 0x1f5   :  { %v3236_v43 = vpop.f32.mrb[100].mxu1 }
 0x1f6   :  { %v3237_v50 = vpop.f32.mrb[101].mxu1 }
 0x1f7   :  { %v4789_v16 = vadd.f32 %v3237_v50, %v3236_v43  ;;  %v3239_v0 = vpop.f32.mrb[102].mxu1 }
 0x1f8   :  { %v3240_v48 = vpop.f32.mrb[103].mxu1 }
 0x1f9   :  { %v4791_v29 = vadd.f32 %v3240_v48, %v3239_v0 }
 0x1fd   :  { %v3242_v52 = vpop.f32.mrb[104].mxu1 }
 0x1fe   :  { %v3243_v55 = vpop.f32.mrb[105].mxu1 }
 0x1ff   :  { %v4793_v53 = vadd.f32 %v3243_v55, %v3242_v52  ;;  %v3245_v54 = vpop.f32.mrb[106].mxu1 }
 0x200   :  { %v3246_v33 = vpop.f32.mrb[107].mxu1 }
 0x201   :  { %v4795_v59 = vadd.f32 %v3246_v33, %v3245_v54 }
 0x205   :  { %v3248_v62 = vpop.f32.mrb[108].mxu1 }
 0x206   :  { %v3249_v47 = vpop.f32.mrb[109].mxu1 }
 0x207   :  { %v4797_v57 = vadd.f32 %v3249_v47, %v3248_v62  ;;  %v3251_v9 = vpop.f32.mrb[110].mxu1 }
 0x208   :  { %v3252_v56 = vpop.f32.mrb[111].mxu1 }
 0x209   :  { %v4799_v61 = vadd.f32 %v3252_v56, %v3251_v9 }
 0x20d   :  { %v3254_v40 = vpop.f32.mrb[112].mxu1 }
 0x20e   :  { %v3255_v45 = vpop.f32.mrb[113].mxu1 }
 0x20f   :  { %v4801_v22 = vadd.f32 %v3255_v45, %v3254_v40  ;;  %v3257_v30 = vpop.f32.mrb[114].mxu1 }
 0x210   :  { %v3258_v5 = vpop.f32.mrb[115].mxu1 }
 0x211   :  { %v4803_v13 = vadd.f32 %v3258_v5, %v3257_v30  ;;  %v1034_v30 = vld [vmem:[%s5113_s4] sm:$0x7] }
 0x215   :  { %v3260_v51 = vpop.f32.mrb[116].mxu1 }
 0x216   :  { %v3261_v58 = vpop.f32.mrb[117].mxu1 }
 0x217   :  { %v4805_v14 = vadd.f32 %v3261_v58, %v3260_v51  ;;  %v3263_v19 = vpop.f32.mrb[118].mxu1  ;;  %v4838_v58 = vrot.slane %v1034_v30, %v85_v18 }
 0x218   :  { %v3264_v42 = vpop.f32.mrb[119].mxu1 }
 0x219   :  { %v4807_v60 = vadd.f32 %v3264_v42, %v3263_v19  ;;  %v4842_v19 = vrot.slane %v1034_v30, %v93_v27  ;;  %v4846_v42 = vrot.slane %v1034_v30, %v89_v25 }
 0x21b   :  { %v1987_v25 = vadd.f32 %v4744_v23, %v4842_v19  ;;  %v1992_v23 = vadd.f32 %v4753_v32, %v4842_v19 }
 0x21d   :  { %v3266_v44 = vpop.f32.mrb[120].mxu1 }
 0x21e   :  { %v3267_v63 = vpop.f32.mrb[121].mxu1 }
 0x21f   :  { %v4809_v1 = vadd.f32 %v3267_v63, %v3266_v44  ;;  %v3269_v2 = vpop.f32.mrb[122].mxu1 }
 0x220   :  { %v3270_v6 = vpop.f32.mrb[123].mxu1 }
 0x221   :  { %v4811_v49 = vadd.f32 %v3270_v6, %v3269_v2 }
 0x225   :  { %v3272_v11 = vpop.f32.mrb[124].mxu1 }
 0x226   :  { %v3273_v4 = vpop.f32.mrb[125].mxu1 }
 0x227   :  { %v4813_v21 = vadd.f32 %v3273_v4, %v3272_v11  ;;  %v3275_v17 = vpop.f32.mrb[126].mxu1  ;;  %v1984_v4 = vadd.f32 %v4739_v37, %v4842_v19 }
 0x228   :  { %v3276_v24 = vpop.f32.mrb[127].mxu1 }
 0x229   :  { %v4815_v26 = vadd.f32 %v3276_v24, %v3275_v17 }
 0x22d   :  { %v3278_v46 = vpop.f32.mrb[128].mxu1 }
 0x22e   :  { %v3279_v15 = vpop.f32.mrb[129].mxu1 }
 0x22f   :  { %v4817_v35 = vadd.f32 %v3279_v15, %v3278_v46  ;;  %v3281_v12 = vpop.f32.mrb[130].mxu1 }
 0x230   :  { %v3282_v7 = vpop.f32.mrb[131].mxu1 }
 0x231   :  { %v4819_v38 = vadd.f32 %v3282_v7, %v3281_v12 }
 0x235   :  { %v3284_v41 = vpop.f32.mrb[132].mxu1 }
 0x236   :  { %v3285_v31 = vpop.f32.mrb[133].mxu1 }
 0x237   :  { %v4821_v43 = vadd.f32 %v3285_v31, %v3284_v41  ;;  %v3287_v50 = vpop.f32.mrb[134].mxu1 }
 0x238   :  { %v3288_v0 = vpop.f32.mrb[135].mxu1 }
 0x239   :  { %v4823_v48 = vadd.f32 %v3288_v0, %v3287_v50 }
 0x23d   :  { %v3290_v52 = vpop.f32.mrb[136].mxu1 }
 0x23e   :  { %v3291_v55 = vpop.f32.mrb[137].mxu1 }
 0x23f   :  { %v4825_v54 = vadd.f32 %v3291_v55, %v3290_v52  ;;  %v3293_v33 = vpop.f32.mrb[138].mxu1 }
 0x240   :  { %v3294_v62 = vpop.f32.mrb[139].mxu1 }
 0x241   :  { %v4827_v47 = vadd.f32 %v3294_v62, %v3293_v33 }
 0x245   :  { %v3296_v9 = vpop.f32.mrb[140].mxu1 }
 0x246   :  { %v3297_v56 = vpop.f32.mrb[141].mxu1 }
 0x247   :  { %v4829_v40 = vadd.f32 %v3297_v56, %v3296_v9  ;;  %v3299_v45 = vpop.f32.mrb[142].mxu1 }
 0x248   :  { %v3300_v5 = vpop.f32.mrb[143].mxu1 }
 0x249   :  { %v4834_v51 = vadd.f32 %v3300_v5, %v3299_v45 }
 0x24d   :  { %v1790_v44 = vpop.f32.mrb[48].mxu0  ;;  %v3318_v63 = vpop.f32.mrb[144].mxu1 }
 0x24e   :  { %v3608_v2 = vadd.f32 %v1790_v44, %v4838_v58  ;;  %v1792_v6 = vpop.f32.mrb[49].mxu0  ;;  %v3319_v11 = vpop.f32.mrb[145].mxu1 }
 0x24f   :  { %v3609_v18 = vadd.f32 %v1792_v6, %v4846_v42  ;;  %v3320_v17 = vadd.f32 %v3319_v11, %v3318_v63  ;;  %v1794_v24 = vpop.f32.mrb[50].mxu0  ;;  %v3321_v46 = vpop.f32.mrb[146].mxu1 }
 0x250   :  { %v3610_v27 = vadd.f32 %v1794_v24, %v4838_v58  ;;  %v1796_v15 = vpop.f32.mrb[51].mxu0  ;;  %v3322_v10 = vpop.f32.mrb[147].mxu1  ;;  %v2271_v31 = vmax.f32 %v3608_v2, 0.0 }
 0x251   :  { %v2145_v12 = vadd.f32 %v3320_v17, %v1984_v4  ;;  %v3611_v7 = vadd.f32 %v1796_v15, %v4846_v42  ;;  %v3323_v41 = vadd.f32 %v3322_v10, %v3321_v46  ;;  %v2272_v0 = vmax.f32 %v3609_v18, 0.0 }
 0x252   :  { %v2274_v50 = vmax.f32 %v3610_v27, 0.0  ;;  %v1995_v46 = vadd.f32 %v4758_v39, %v4842_v19 }
 0x253   :  { %v2275_v37 = vmax.f32 %v3611_v7, 0.0  ;;  %v2148_v52 = vadd.f32 %v3323_v41, %v1987_v25  ;;  %v2273_v33 = vmax.f32 %v2145_v12, 0.0 }
 0x254   :  { %v2367_v55 = vpack.c.bf16 %v2274_v50, %v2271_v31 }
 0x255   :  { %v2368_v62 = vpack.c.bf16 %v2275_v37, %v2272_v0  ;;  %v2276_v9 = vmax.f32 %v2148_v52, 0.0  ;;  %v1800_v56 = vpop.f32.mrb[52].mxu0  ;;  %v3324_v45 = vpop.f32.mrb[148].mxu1 }
 0x256   :  { %v3612_v30 = vadd.f32 %v1800_v56, %v4838_v58  ;;  %v1802_v5 = vpop.f32.mrb[53].mxu0  ;;  %v3325_v44 = vpop.f32.mrb[149].mxu1 }
 0x257   :  { %v3613_v63 = vadd.f32 %v1802_v5, %v4846_v42  ;;  %v3326_v2 = vadd.f32 %v3325_v44, %v3324_v45  ;;  %v1804_v6 = vpop.f32.mrb[54].mxu0  ;;  %v3327_v11 = vpop.f32.mrb[150].mxu1  ;;  %2646 = vmatprep.mubr.bf16.mxu0 %v2368_v62  ;;  %v2369_v4 = vpack.c.bf16 %v2276_v9, %v2273_v33  ;;  %v2000_v9 = vadd.f32 %v4767_v20, %v4842_v19 }
 0x258   :  { %v3614_v18 = vadd.f32 %v1804_v6, %v4838_v58  ;;  %v1806_v17 = vpop.f32.mrb[55].mxu0  ;;  %v3328_v24 = vpop.f32.mrb[151].mxu1  ;;  %2647 = vmatmul.mubr.bf16.vlgmr.msra.gmra.mrb[112].mxu0 %v2367_v55  ;;  %v2277_v32 = vmax.f32 %v3612_v30, 0.0  ;;  %v2003_v6 = vadd.f32 %v4769_v28, %v4842_v19 }
 0x259   :  { %v2153_v27 = vadd.f32 %v3326_v2, %v1992_v23  ;;  %v3615_v15 = vadd.f32 %v1806_v17, %v4846_v42  ;;  %v3329_v10 = vadd.f32 %v3328_v24, %v3327_v11  ;;  %3566 = vmatprep.mubr.bf16.mxu1 %v2369_v4  ;;  %v2278_v12 = vmax.f32 %v3613_v63, 0.0 }
 0x25a   :  { %v2280_v25 = vmax.f32 %v3614_v18, 0.0 }
 0x25b   :  { %v2281_v7 = vmax.f32 %v3615_v15, 0.0  ;;  %v2156_v41 = vadd.f32 %v3329_v10, %v1995_v46  ;;  %v2279_v50 = vmax.f32 %v2153_v27, 0.0 }
 0x25c   :  { %v2370_v31 = vpack.c.bf16 %v2280_v25, %v2277_v32 }
 0x25d   :  { %v2371_v0 = vpack.c.bf16 %v2281_v7, %v2278_v12  ;;  %v2282_v37 = vmax.f32 %v2156_v41, 0.0  ;;  %v1810_v52 = vpop.f32.mrb[56].mxu0  ;;  %v3330_v33 = vpop.f32.mrb[152].mxu1 }
 0x25e   :  { %v3616_v55 = vadd.f32 %v1810_v52, %v4838_v58  ;;  %v1812_v62 = vpop.f32.mrb[57].mxu0  ;;  %v3331_v39 = vpop.f32.mrb[153].mxu1 }
 0x25f   :  { %v2372_v56 = vpack.c.bf16 %v2282_v37, %v2279_v50  ;;  %v3617_v45 = vadd.f32 %v1812_v62, %v4846_v42  ;;  %v3332_v30 = vadd.f32 %v3331_v39, %v3330_v33  ;;  %v1814_v5 = vpop.f32.mrb[58].mxu0  ;;  %v3333_v44 = vpop.f32.mrb[154].mxu1  ;;  %2654 = vmatprep.mubr.bf16.mxu0 %v2371_v0  ;;  %v2008_v50 = vadd.f32 %v4775_v34, %v4842_v19 }
 0x260   :  { %v3618_v23 = vadd.f32 %v1814_v5, %v4838_v58  ;;  %v1816_v63 = vpop.f32.mrb[59].mxu0  ;;  %v3334_v2 = vpop.f32.mrb[155].mxu1  ;;  %2655 = vmatmul.mubr.bf16.gmra.mrb[116].mxu0 %v2370_v31  ;;  %v2283_v20 = vmax.f32 %v3616_v55, 0.0 }
 0x261   :  { %v2161_v11 = vadd.f32 %v3332_v30, %v2000_v9  ;;  %v3619_v4 = vadd.f32 %v1816_v63, %v4846_v42  ;;  %v3335_v18 = vadd.f32 %v3334_v2, %v3333_v44  ;;  %3567 = vmatmul.mubr.bf16.vlgmr.msra.gmra.mrb[208].mxu1 %v2372_v56  ;;  %v2284_v24 = vmax.f32 %v3617_v45, 0.0 }
 0x262   :  { %v2286_v17 = vmax.f32 %v3618_v23, 0.0  ;;  %v2011_v56 = vadd.f32 %v4777_v36, %v4842_v19 }
 0x263   :  { %v2287_v46 = vmax.f32 %v3619_v4, 0.0  ;;  %v2164_v27 = vadd.f32 %v3335_v18, %v2003_v6  ;;  %v2285_v10 = vmax.f32 %v2161_v11, 0.0 }
 0x264   :  { %v2373_v15 = vpack.c.bf16 %v2286_v17, %v2283_v20 }
 0x265   :  { %v2374_v32 = vpack.c.bf16 %v2287_v46, %v2284_v24  ;;  %v2288_v25 = vmax.f32 %v2164_v27, 0.0  ;;  %v1820_v12 = vpop.f32.mrb[60].mxu0  ;;  %v3336_v7 = vpop.f32.mrb[156].mxu1  ;;  %v2016_v27 = vadd.f32 %v4783_v8, %v4842_v19 }
 0x266   :  { %v3620_v41 = vadd.f32 %v1820_v12, %v4838_v58  ;;  %v1822_v31 = vpop.f32.mrb[61].mxu0  ;;  %v3337_v28 = vpop.f32.mrb[157].mxu1 }
 0x267   :  { %v3621_v0 = vadd.f32 %v1822_v31, %v4846_v42  ;;  %v3338_v37 = vadd.f32 %v3337_v28, %v3336_v7  ;;  %v1824_v52 = vpop.f32.mrb[62].mxu0  ;;  %v3339_v33 = vpop.f32.mrb[158].mxu1  ;;  %2662 = vmatprep.mubr.bf16.mxu0 %v2374_v32  ;;  %v2375_v55 = vpack.c.bf16 %v2288_v25, %v2285_v10  ;;  %v2019_v28 = vadd.f32 %v4785_v3, %v4842_v19 }
 0x268   :  { %v3622_v62 = vadd.f32 %v1824_v52, %v4838_v58  ;;  %v1826_v39 = vpop.f32.mrb[63].mxu0  ;;  %v3340_v9 = vpop.f32.mrb[159].mxu1  ;;  %2663 = vmatmul.mubr.bf16.gmra.mrb[120].mxu0 %v2373_v15  ;;  %v2289_v34 = vmax.f32 %v3620_v41, 0.0 }
 0x269   :  { %v2169_v45 = vadd.f32 %v3338_v37, %v2008_v50  ;;  %v3623_v30 = vadd.f32 %v1826_v39, %v4846_v42  ;;  %v3341_v5 = vadd.f32 %v3340_v9, %v3339_v33  ;;  %3570 = vmatprep.mubr.bf16.mxu1 %v2375_v55  ;;  %v2290_v23 = vmax.f32 %v3621_v0, 0.0 }
 0x26a   :  { %v2292_v44 = vmax.f32 %v3622_v62, 0.0 }
 0x26b   :  { %v2293_v63 = vmax.f32 %v3623_v30, 0.0  ;;  %v2172_v2 = vadd.f32 %v3341_v5, %v2011_v56  ;;  %v2291_v11 = vmax.f32 %v2169_v45, 0.0 }
 0x26c   :  { %v2376_v6 = vpack.c.bf16 %v2292_v44, %v2289_v34 }
 0x26d   :  { %v2377_v4 = vpack.c.bf16 %v2293_v63, %v2290_v23  ;;  %v2294_v18 = vmax.f32 %v2172_v2, 0.0  ;;  %v1830_v20 = vpop.f32.mrb[64].mxu0  ;;  %v3342_v17 = vpop.f32.mrb[160].mxu1  ;;  %v2024_v23 = vadd.f32 %v4789_v16, %v4842_v19 }
 0x26e   :  { %v3624_v24 = vadd.f32 %v1830_v20, %v4838_v58  ;;  %v1832_v46 = vpop.f32.mrb[65].mxu0  ;;  %v3343_v36 = vpop.f32.mrb[161].mxu1 }
 0x26f   :  { %v3625_v15 = vadd.f32 %v1832_v46, %v4846_v42  ;;  %v3344_v10 = vadd.f32 %v3343_v36, %v3342_v17  ;;  %v1834_v32 = vpop.f32.mrb[66].mxu0  ;;  %v3345_v25 = vpop.f32.mrb[162].mxu1  ;;  %2670 = vmatprep.mubr.bf16.mxu0 %v2377_v4  ;;  %v2378_v12 = vpack.c.bf16 %v2294_v18, %v2291_v11 }
 0x270   :  { %v3626_v7 = vadd.f32 %v1834_v32, %v4838_v58  ;;  %v1836_v41 = vpop.f32.mrb[67].mxu0  ;;  %v3346_v31 = vpop.f32.mrb[163].mxu1  ;;  %2671 = vmatmul.mubr.bf16.gmra.mrb[124].mxu0 %v2376_v6  ;;  %v2295_v8 = vmax.f32 %v3624_v24, 0.0  ;;  %v2027_v24 = vadd.f32 %v4791_v29, %v4842_v19 }
 0x271   :  { %v2177_v50 = vadd.f32 %v3344_v10, %v2016_v27  ;;  %v3627_v0 = vadd.f32 %v1836_v41, %v4846_v42  ;;  %v3347_v37 = vadd.f32 %v3346_v31, %v3345_v25  ;;  %3571 = vmatmul.mubr.bf16.gmra.mrb[212].mxu1 %v2378_v12  ;;  %v2296_v33 = vmax.f32 %v3625_v15, 0.0 }
 0x272   :  { %v2298_v52 = vmax.f32 %v3626_v7, 0.0 }
 0x273   :  { %v2299_v55 = vmax.f32 %v3627_v0, 0.0  ;;  %v2180_v62 = vadd.f32 %v3347_v37, %v2019_v28  ;;  %v2297_v9 = vmax.f32 %v2177_v50, 0.0 }
 0x274   :  { %v2379_v39 = vpack.c.bf16 %v2298_v52, %v2295_v8  ;;  %v2032_v8 = vadd.f32 %v4793_v53, %v4842_v19 }
 0x275   :  { %v2380_v56 = vpack.c.bf16 %v2299_v55, %v2296_v33  ;;  %v2300_v45 = vmax.f32 %v2180_v62, 0.0  ;;  %v1840_v30 = vpop.f32.mrb[68].mxu0  ;;  %v3348_v5 = vpop.f32.mrb[164].mxu1 }
 0x276   :  { %v3628_v34 = vadd.f32 %v1840_v30, %v4838_v58  ;;  %v1842_v44 = vpop.f32.mrb[69].mxu0  ;;  %v3349_v3 = vpop.f32.mrb[165].mxu1  ;;  %v2035_v30 = vadd.f32 %v4795_v59, %v4842_v19 }
 0x277   :  { %v3629_v63 = vadd.f32 %v1842_v44, %v4846_v42  ;;  %v3350_v2 = vadd.f32 %v3349_v3, %v3348_v5  ;;  %v1844_v6 = vpop.f32.mrb[70].mxu0  ;;  %v3351_v11 = vpop.f32.mrb[166].mxu1  ;;  %2678 = vmatprep.mubr.bf16.mxu0 %v2380_v56  ;;  %v2381_v4 = vpack.c.bf16 %v2300_v45, %v2297_v9 }
 0x278   :  { %v3630_v18 = vadd.f32 %v1844_v6, %v4838_v58  ;;  %v1846_v20 = vpop.f32.mrb[71].mxu0  ;;  %v3352_v17 = vpop.f32.mrb[167].mxu1  ;;  %2679 = vmatmul.mubr.bf16.gmra.mrb[128].mxu0 %v2379_v39  ;;  %v2301_v16 = vmax.f32 %v3628_v34, 0.0 }
 0x279   :  { %v2185_v46 = vadd.f32 %v3350_v2, %v2024_v23  ;;  %v3631_v36 = vadd.f32 %v1846_v20, %v4846_v42  ;;  %v3353_v27 = vadd.f32 %v3352_v17, %v3351_v11  ;;  %3574 = vmatprep.mubr.bf16.mxu1 %v2381_v4  ;;  %v2302_v10 = vmax.f32 %v3629_v63, 0.0 }
 0x27a   :  { %v2304_v15 = vmax.f32 %v3630_v18, 0.0 }
 0x27b   :  { %v2305_v32 = vmax.f32 %v3631_v36, 0.0  ;;  %v2188_v25 = vadd.f32 %v3353_v27, %v2027_v24  ;;  %v2303_v7 = vmax.f32 %v2185_v46, 0.0  ;;  %v2040_v36 = vadd.f32 %v4797_v57, %v4842_v19 }
 0x27c   :  { %v2382_v12 = vpack.c.bf16 %v2304_v15, %v2301_v16 }
 0x27d   :  { %v2383_v41 = vpack.c.bf16 %v2305_v32, %v2302_v10  ;;  %v2306_v31 = vmax.f32 %v2188_v25, 0.0  ;;  %v1850_v28 = vpop.f32.mrb[72].mxu0  ;;  %v3354_v50 = vpop.f32.mrb[168].mxu1 }
 0x27e   :  { %v3632_v0 = vadd.f32 %v1850_v28, %v4838_v58  ;;  %v1852_v37 = vpop.f32.mrb[73].mxu0  ;;  %v3355_v29 = vpop.f32.mrb[169].mxu1 }
 0x27f   :  { %v3633_v52 = vadd.f32 %v1852_v37, %v4846_v42  ;;  %v3356_v33 = vadd.f32 %v3355_v29, %v3354_v50  ;;  %v1854_v55 = vpop.f32.mrb[74].mxu0  ;;  %v3357_v62 = vpop.f32.mrb[170].mxu1  ;;  %2686 = vmatprep.mubr.bf16.mxu0 %v2383_v41  ;;  %v2384_v39 = vpack.c.bf16 %v2306_v31, %v2303_v7  ;;  %v2043_v41 = vadd.f32 %v4799_v61, %v4842_v19 }
 0x280   :  { %v3634_v9 = vadd.f32 %v1854_v55, %v4838_v58  ;;  %v1856_v56 = vpop.f32.mrb[75].mxu0  ;;  %v3358_v45 = vpop.f32.mrb[171].mxu1  ;;  %2687 = vmatmul.mubr.bf16.gmra.mrb[132].mxu0 %v2382_v12  ;;  %v2307_v53 = vmax.f32 %v3632_v0, 0.0 }
 0x281   :  { %v2193_v5 = vadd.f32 %v3356_v33, %v2032_v8  ;;  %v3635_v34 = vadd.f32 %v1856_v56, %v4846_v42  ;;  %v3359_v44 = vadd.f32 %v3358_v45, %v3357_v62  ;;  %3575 = vmatmul.mubr.bf16.gmra.mrb[216].mxu1 %v2384_v39  ;;  %v2308_v23 = vmax.f32 %v3633_v52, 0.0 }
 0x282   :  { %v2310_v3 = vmax.f32 %v3634_v9, 0.0 }
 0x283   :  { %v2311_v63 = vmax.f32 %v3635_v34, 0.0  ;;  %v2196_v2 = vadd.f32 %v3359_v44, %v2035_v30  ;;  %v2309_v11 = vmax.f32 %v2193_v5, 0.0  ;;  %v2048_v30 = vadd.f32 %v4801_v22, %v4842_v19 }
 0x284   :  { %v2385_v6 = vpack.c.bf16 %v2310_v3, %v2307_v53 }
 0x285   :  { %v2386_v4 = vpack.c.bf16 %v2311_v63, %v2308_v23  ;;  %v2312_v18 = vmax.f32 %v2196_v2, 0.0  ;;  %v1860_v20 = vpop.f32.mrb[76].mxu0  ;;  %v3360_v17 = vpop.f32.mrb[172].mxu1 }
 0x286   :  { %v3636_v24 = vadd.f32 %v1860_v20, %v4838_v58  ;;  %v1862_v46 = vpop.f32.mrb[77].mxu0  ;;  %v3361_v59 = vpop.f32.mrb[173].mxu1 }
 0x287   :  { %v3637_v27 = vadd.f32 %v1862_v46, %v4846_v42  ;;  %v3362_v16 = vadd.f32 %v3361_v59, %v3360_v17  ;;  %v1864_v15 = vpop.f32.mrb[78].mxu0  ;;  %v3363_v10 = vpop.f32.mrb[174].mxu1  ;;  %2694 = vmatprep.mubr.bf16.mxu0 %v2386_v4  ;;  %v2387_v32 = vpack.c.bf16 %v2312_v18, %v2309_v11 }
 0x288   :  { %v3638_v25 = vadd.f32 %v1864_v15, %v4838_v58  ;;  %v1866_v12 = vpop.f32.mrb[79].mxu0  ;;  %v3364_v7 = vpop.f32.mrb[175].mxu1  ;;  %2695 = vmatmul.mubr.bf16.gmra.mrb[136].mxu0 %v2385_v6  ;;  %v2313_v57 = vmax.f32 %v3636_v24, 0.0  ;;  %v2051_v6 = vadd.f32 %v4803_v13, %v4842_v19 }
 0x289   :  { %v2201_v31 = vadd.f32 %v3362_v16, %v2040_v36  ;;  %v3639_v28 = vadd.f32 %v1866_v12, %v4846_v42  ;;  %v3365_v50 = vadd.f32 %v3364_v7, %v3363_v10  ;;  %3578 = vmatprep.mubr.bf16.mxu1 %v2387_v32  ;;  %v2314_v37 = vmax.f32 %v3637_v27, 0.0 }
 0x28a   :  { %v2316_v0 = vmax.f32 %v3638_v25, 0.0  ;;  %v2056_v12 = vadd.f32 %v4805_v14, %v4842_v19 }
 0x28b   :  { %v2317_v29 = vmax.f32 %v3639_v28, 0.0  ;;  %v2204_v8 = vadd.f32 %v3365_v50, %v2043_v41  ;;  %v2315_v33 = vmax.f32 %v2201_v31, 0.0 }
 0x28c   :  { %v2388_v52 = vpack.c.bf16 %v2316_v0, %v2313_v57 }
 0x28d   :  { %v2389_v55 = vpack.c.bf16 %v2317_v29, %v2314_v37  ;;  %v2318_v62 = vmax.f32 %v2204_v8, 0.0  ;;  %v1870_v39 = vpop.f32.mrb[80].mxu0  ;;  %v3366_v9 = vpop.f32.mrb[176].mxu1  ;;  %v2059_v29 = vadd.f32 %v4807_v60, %v4842_v19 }
 0x28e   :  { %v3640_v56 = vadd.f32 %v1870_v39, %v4838_v58  ;;  %v1872_v45 = vpop.f32.mrb[81].mxu0  ;;  %v3367_v61 = vpop.f32.mrb[177].mxu1 }
 0x28f   :  { %v3641_v5 = vadd.f32 %v1872_v45, %v4846_v42  ;;  %v3368_v34 = vadd.f32 %v3367_v61, %v3366_v9  ;;  %v1874_v44 = vpop.f32.mrb[82].mxu0  ;;  %v3369_v53 = vpop.f32.mrb[178].mxu1  ;;  %2702 = vmatprep.mubr.bf16.mxu0 %v2389_v55  ;;  %v2390_v3 = vpack.c.bf16 %v2318_v62, %v2315_v33 }
 0x290   :  { %v3642_v23 = vadd.f32 %v1874_v44, %v4838_v58  ;;  %v1876_v63 = vpop.f32.mrb[83].mxu0  ;;  %v3370_v2 = vpop.f32.mrb[179].mxu1  ;;  %2703 = vmatmul.mubr.bf16.gmra.mrb[140].mxu0 %v2388_v52  ;;  %v2319_v22 = vmax.f32 %v3640_v56, 0.0 }
 0x291   :  { %v2209_v11 = vadd.f32 %v3368_v34, %v2048_v30  ;;  %v3643_v4 = vadd.f32 %v1876_v63, %v4846_v42  ;;  %v3371_v18 = vadd.f32 %v3370_v2, %v3369_v53  ;;  %3579 = vmatmul.mubr.bf16.gmra.mrb[220].mxu1 %v2390_v3  ;;  %v2320_v17 = vmax.f32 %v3641_v5, 0.0 }
 0x292   :  { %v2322_v20 = vmax.f32 %v3642_v23, 0.0  ;;  %v2064_v3 = vadd.f32 %v4809_v1, %v4842_v19 }
 0x293   :  { %v2323_v24 = vmax.f32 %v3643_v4, 0.0  ;;  %v2212_v46 = vadd.f32 %v3371_v18, %v2051_v6  ;;  %v2321_v36 = vmax.f32 %v2209_v11, 0.0 }
 0x294   :  { %v2391_v59 = vpack.c.bf16 %v2322_v20, %v2319_v22  ;;  %v2067_v20 = vadd.f32 %v4811_v49, %v4842_v19 }
 0x295   :  { %v2392_v27 = vpack.c.bf16 %v2323_v24, %v2320_v17  ;;  %v2324_v16 = vmax.f32 %v2212_v46, 0.0  ;;  %v1880_v15 = vpop.f32.mrb[84].mxu0  ;;  %v3372_v10 = vpop.f32.mrb[180].mxu1 }
 0x296   :  { %v3644_v32 = vadd.f32 %v1880_v15, %v4838_v58  ;;  %v1882_v25 = vpop.f32.mrb[85].mxu0  ;;  %v3373_v13 = vpop.f32.mrb[181].mxu1 }
 0x297   :  { %v3645_v7 = vadd.f32 %v1882_v25, %v4846_v42  ;;  %v3374_v41 = vadd.f32 %v3373_v13, %v3372_v10  ;;  %v1884_v31 = vpop.f32.mrb[86].mxu0  ;;  %v3375_v28 = vpop.f32.mrb[182].mxu1  ;;  %2710 = vmatprep.mubr.bf16.mxu0 %v2392_v27  ;;  %v2393_v50 = vpack.c.bf16 %v2324_v16, %v2321_v36 }
 0x298   :  { %v3646_v57 = vadd.f32 %v1884_v31, %v4838_v58  ;;  %v1886_v0 = vpop.f32.mrb[87].mxu0  ;;  %v3376_v37 = vpop.f32.mrb[183].mxu1  ;;  %2711 = vmatmul.mubr.bf16.gmra.mrb[144].mxu0 %v2391_v59  ;;  %v2325_v14 = vmax.f32 %v3644_v32, 0.0  ;;  %v2072_v31 = vadd.f32 %v4813_v21, %v4842_v19 }
 0x299   :  { %v2217_v8 = vadd.f32 %v3374_v41, %v2056_v12  ;;  %v3647_v52 = vadd.f32 %v1886_v0, %v4846_v42  ;;  %v3377_v33 = vadd.f32 %v3376_v37, %v3375_v28  ;;  %3582 = vmatprep.mubr.bf16.mxu1 %v2393_v50  ;;  %v2326_v62 = vmax.f32 %v3645_v7, 0.0 }
 0x29a   :  { %v2328_v55 = vmax.f32 %v3646_v57, 0.0 }
 0x29b   :  { %v2329_v39 = vmax.f32 %v3647_v52, 0.0  ;;  %v2220_v9 = vadd.f32 %v3377_v33, %v2059_v29  ;;  %v2327_v45 = vmax.f32 %v2217_v8, 0.0  ;;  %v2075_v33 = vadd.f32 %v4815_v26, %v4842_v19 }
 0x29c   :  { %v2394_v56 = vpack.c.bf16 %v2328_v55, %v2325_v14 }
 0x29d   :  { %v2395_v61 = vpack.c.bf16 %v2329_v39, %v2326_v62  ;;  %v2330_v30 = vmax.f32 %v2220_v9, 0.0  ;;  %v1890_v5 = vpop.f32.mrb[88].mxu0  ;;  %v3378_v34 = vpop.f32.mrb[184].mxu1 }
 0x29e   :  { %v3648_v44 = vadd.f32 %v1890_v5, %v4838_v58  ;;  %v1892_v53 = vpop.f32.mrb[89].mxu0  ;;  %v3379_v60 = vpop.f32.mrb[185].mxu1 }
 0x29f   :  { %v3649_v23 = vadd.f32 %v1892_v53, %v4846_v42  ;;  %v3380_v63 = vadd.f32 %v3379_v60, %v3378_v34  ;;  %v1894_v2 = vpop.f32.mrb[90].mxu0  ;;  %v3381_v6 = vpop.f32.mrb[186].mxu1  ;;  %2718 = vmatprep.mubr.bf16.mxu0 %v2395_v61  ;;  %v2396_v11 = vpack.c.bf16 %v2330_v30, %v2327_v45 }
 0x2a0   :  { %v3650_v4 = vadd.f32 %v1894_v2, %v4838_v58  ;;  %v1896_v18 = vpop.f32.mrb[91].mxu0  ;;  %v3382_v22 = vpop.f32.mrb[187].mxu1  ;;  %2719 = vmatmul.mubr.bf16.gmra.mrb[148].mxu0 %v2394_v56  ;;  %v2331_v1 = vmax.f32 %v3648_v44, 0.0 }
 0x2a1   :  { %v2225_v17 = vadd.f32 %v3380_v63, %v2064_v3  ;;  %v3651_v24 = vadd.f32 %v1896_v18, %v4846_v42  ;;  %v3383_v46 = vadd.f32 %v3382_v22, %v3381_v6  ;;  %3583 = vmatmul.mubr.bf16.gmra.mrb[224].mxu1 %v2396_v11  ;;  %v2332_v36 = vmax.f32 %v3649_v23, 0.0 }
 0x2a2   :  { %v2334_v59 = vmax.f32 %v3650_v4, 0.0  ;;  %v2080_v23 = vadd.f32 %v4817_v35, %v4842_v19 }
 0x2a3   :  { %v2335_v27 = vmax.f32 %v3651_v24, 0.0  ;;  %v2228_v16 = vadd.f32 %v3383_v46, %v2067_v20  ;;  %v2333_v10 = vmax.f32 %v2225_v17, 0.0  ;;  %v2083_v17 = vadd.f32 %v4819_v38, %v4842_v19 }
 0x2a4   :  { %v2397_v15 = vpack.c.bf16 %v2334_v59, %v2331_v1 }
 0x2a5   :  { %v2398_v32 = vpack.c.bf16 %v2335_v27, %v2332_v36  ;;  %v2336_v25 = vmax.f32 %v2228_v16, 0.0  ;;  %v1900_v13 = vpop.f32.mrb[92].mxu0  ;;  %v3384_v12 = vpop.f32.mrb[188].mxu1 }
 0x2a6   :  { %v3652_v7 = vadd.f32 %v1900_v13, %v4838_v58  ;;  %v1902_v41 = vpop.f32.mrb[93].mxu0  ;;  %v3385_v49 = vpop.f32.mrb[189].mxu1 }
 0x2a7   :  { %v3653_v28 = vadd.f32 %v1902_v41, %v4846_v42  ;;  %v3386_v50 = vadd.f32 %v3385_v49, %v3384_v12  ;;  %v1904_v57 = vpop.f32.mrb[94].mxu0  ;;  %v3387_v0 = vpop.f32.mrb[190].mxu1  ;;  %2726 = vmatprep.mubr.bf16.mxu0 %v2398_v32  ;;  %v2399_v37 = vpack.c.bf16 %v2336_v25, %v2333_v10  ;;  %v2088_v49 = vadd.f32 %v4821_v43, %v4842_v19 }
 0x2a8   :  { %v3654_v29 = vadd.f32 %v1904_v57, %v4838_v58  ;;  %v1906_v8 = vpop.f32.mrb[95].mxu0  ;;  %v3388_v52 = vpop.f32.mrb[191].mxu1  ;;  %2727 = vmatmul.mubr.bf16.gmra.mrb[152].mxu0 %v2397_v15  ;;  %v2337_v21 = vmax.f32 %v3652_v7, 0.0 }
 0x2a9   :  { %v2233_v14 = vadd.f32 %v3386_v50, %v2072_v31  ;;  %v3655_v55 = vadd.f32 %v1906_v8, %v4846_v42  ;;  %v3389_v62 = vadd.f32 %v3388_v52, %v3387_v0  ;;  %3586 = vmatprep.mubr.bf16.mxu1 %v2399_v37  ;;  %v2338_v9 = vmax.f32 %v3653_v28, 0.0 }
 0x2aa   :  { %v2340_v39 = vmax.f32 %v3654_v29, 0.0  ;;  %v2091_v52 = vadd.f32 %v4823_v48, %v4842_v19 }
 0x2ab   :  { %v2341_v56 = vmax.f32 %v3655_v55, 0.0  ;;  %v2236_v45 = vadd.f32 %v3389_v62, %v2075_v33  ;;  %v2339_v30 = vmax.f32 %v2233_v14, 0.0 }
 0x2ac   :  { %v2400_v61 = vpack.c.bf16 %v2340_v39, %v2337_v21 }
 0x2ad   :  { %v2401_v5 = vpack.c.bf16 %v2341_v56, %v2338_v9  ;;  %v2342_v34 = vmax.f32 %v2236_v45, 0.0  ;;  %v1910_v44 = vpop.f32.mrb[96].mxu0  ;;  %v3390_v53 = vpop.f32.mrb[192].mxu1 }
 0x2ae   :  { %v3656_v60 = vadd.f32 %v1910_v44, %v4838_v58  ;;  %v1912_v3 = vpop.f32.mrb[97].mxu0  ;;  %v3391_v26 = vpop.f32.mrb[193].mxu1 }
 0x2af   :  { %v3657_v63 = vadd.f32 %v1912_v3, %v4846_v42  ;;  %v3392_v2 = vadd.f32 %v3391_v26, %v3390_v53  ;;  %v1914_v6 = vpop.f32.mrb[98].mxu0  ;;  %v3393_v11 = vpop.f32.mrb[194].mxu1  ;;  %2734 = vmatprep.mubr.bf16.mxu0 %v2401_v5  ;;  %v2402_v4 = vpack.c.bf16 %v2342_v34, %v2339_v30 }
 0x2b0   :  { %v3658_v18 = vadd.f32 %v1914_v6, %v4838_v58  ;;  %v1916_v22 = vpop.f32.mrb[99].mxu0  ;;  %v3394_v20 = vpop.f32.mrb[195].mxu1  ;;  %2735 = vmatmul.mubr.bf16.gmra.mrb[156].mxu0 %v2400_v61  ;;  %v2343_v35 = vmax.f32 %v3656_v60, 0.0  ;;  %v2096_v60 = vadd.f32 %v4825_v54, %v4842_v19 }
 0x2b1   :  { %v2241_v24 = vadd.f32 %v3392_v2, %v2080_v23  ;;  %v3659_v46 = vadd.f32 %v1916_v22, %v4846_v42  ;;  %v3395_v1 = vadd.f32 %v3394_v20, %v3393_v11  ;;  %3587 = vmatmul.mubr.bf16.gmra.mrb[228].mxu1 %v2402_v4  ;;  %v2344_v36 = vmax.f32 %v3657_v63, 0.0 }
 0x2b2   :  { %v2346_v59 = vmax.f32 %v3658_v18, 0.0  ;;  %v2099_v18 = vadd.f32 %v4827_v47, %v4842_v19 }
 0x2b3   :  { %v2347_v27 = vmax.f32 %v3659_v46, 0.0  ;;  %v2244_v16 = vadd.f32 %v3395_v1, %v2083_v17  ;;  %v2345_v10 = vmax.f32 %v2241_v24, 0.0 }
 0x2b4   :  { %v2403_v15 = vpack.c.bf16 %v2346_v59, %v2343_v35 }
 0x2b5   :  { %v2404_v32 = vpack.c.bf16 %v2347_v27, %v2344_v36  ;;  %v2348_v25 = vmax.f32 %v2244_v16, 0.0  ;;  %v1920_v13 = vpop.f32.mrb[100].mxu0  ;;  %v3396_v12 = vpop.f32.mrb[196].mxu1 }
 0x2b6   :  { %v3660_v7 = vadd.f32 %v1920_v13, %v4838_v58  ;;  %v1922_v41 = vpop.f32.mrb[101].mxu0  ;;  %v3397_v38 = vpop.f32.mrb[197].mxu1  ;;  %v2104_v13 = vadd.f32 %v4829_v40, %v4842_v19 }
 0x2b7   :  { %v3661_v31 = vadd.f32 %v1922_v41, %v4846_v42  ;;  %v3398_v28 = vadd.f32 %v3397_v38, %v3396_v12  ;;  %v1924_v50 = vpop.f32.mrb[102].mxu0  ;;  %v3399_v57 = vpop.f32.mrb[198].mxu1  ;;  %2742 = vmatprep.mubr.bf16.mxu0 %v2404_v32  ;;  %v2405_v0 = vpack.c.bf16 %v2348_v25, %v2345_v10 }
 0x2b8   :  { %v3662_v37 = vadd.f32 %v1924_v50, %v4838_v58  ;;  %v1926_v29 = vpop.f32.mrb[103].mxu0  ;;  %v3400_v8 = vpop.f32.mrb[199].mxu1  ;;  %2743 = vmatmul.mubr.bf16.gmra.mrb[160].mxu0 %v2403_v15  ;;  %v2349_v43 = vmax.f32 %v3660_v7, 0.0 }
 0x2b9   :  { %v2249_v33 = vadd.f32 %v3398_v28, %v2088_v49  ;;  %v3663_v14 = vadd.f32 %v1926_v29, %v4846_v42  ;;  %v3401_v55 = vadd.f32 %v3400_v8, %v3399_v57  ;;  %3590 = vmatprep.mubr.bf16.mxu1 %v2405_v0  ;;  %v2350_v21 = vmax.f32 %v3661_v31, 0.0 }
 0x2ba   :  { %v2352_v62 = vmax.f32 %v3662_v37, 0.0  ;;  %v2107_v57 = vadd.f32 %v4834_v51, %v4842_v19 }
 0x2bb   :  { %v2353_v39 = vmax.f32 %v3663_v14, 0.0  ;;  %v2252_v9 = vadd.f32 %v3401_v55, %v2091_v52  ;;  %v2351_v45 = vmax.f32 %v2249_v33, 0.0 }
 0x2bc   :  { %v2406_v56 = vpack.c.bf16 %v2352_v62, %v2349_v43 }
 0x2bd   :  { %v2407_v61 = vpack.c.bf16 %v2353_v39, %v2350_v21  ;;  %v2354_v30 = vmax.f32 %v2252_v9, 0.0  ;;  %v1930_v5 = vpop.f32.mrb[104].mxu0  ;;  %v3402_v34 = vpop.f32.mrb[200].mxu1 }
 0x2be   :  { %v3664_v44 = vadd.f32 %v1930_v5, %v4838_v58  ;;  %v1932_v53 = vpop.f32.mrb[105].mxu0  ;;  %v3403_v48 = vpop.f32.mrb[201].mxu1 }
 0x2bf   :  { %v3665_v3 = vadd.f32 %v1932_v53, %v4846_v42  ;;  %v3404_v26 = vadd.f32 %v3403_v48, %v3402_v34  ;;  %v1934_v23 = vpop.f32.mrb[106].mxu0  ;;  %v3405_v63 = vpop.f32.mrb[202].mxu1  ;;  %2750 = vmatprep.mubr.bf16.mxu0 %v2407_v61  ;;  %v2408_v2 = vpack.c.bf16 %v2354_v30, %v2351_v45  ;;  %v4979_v45 = vld [vmem:[%s5115_s6] ss:$0 sm:$0xff] }
 0x2c0   :  { %v3666_v6 = vadd.f32 %v1934_v23, %v4838_v58  ;;  %v1936_v11 = vpop.f32.mrb[107].mxu0  ;;  %v3406_v4 = vpop.f32.mrb[203].mxu1  ;;  %2751 = vmatmul.mubr.bf16.gmra.mrb[164].mxu0 %v2406_v56  ;;  %v2355_v54 = vmax.f32 %v3664_v44, 0.0 }
 0x2c1   :  { %v2257_v22 = vadd.f32 %v3404_v26, %v2096_v60  ;;  %v3667_v20 = vadd.f32 %v1936_v11, %v4846_v42  ;;  %v3407_v17 = vadd.f32 %v3406_v4, %v3405_v63  ;;  %3591 = vmatmul.mubr.bf16.gmra.mrb[232].mxu1 %v2408_v2  ;;  %v2356_v46 = vmax.f32 %v3665_v3, 0.0 }
 0x2c2   :  { %v2358_v24 = vmax.f32 %v3666_v6, 0.0 }
 0x2c3   :  { %v2359_v1 = vmax.f32 %v3667_v20, 0.0  ;;  %v2260_v35 = vadd.f32 %v3407_v17, %v2099_v18  ;;  %v2357_v36 = vmax.f32 %v2257_v22, 0.0 }
 0x2c4   :  { %v2409_v59 = vpack.c.bf16 %v2358_v24, %v2355_v54 }
 0x2c5   :  { %v2410_v27 = vpack.c.bf16 %v2359_v1, %v2356_v46  ;;  %v2360_v16 = vmax.f32 %v2260_v35, 0.0  ;;  %v1940_v15 = vpop.f32.mrb[108].mxu0  ;;  %v3408_v10 = vpop.f32.mrb[204].mxu1 }
 0x2c6   :  { %v3668_v32 = vadd.f32 %v1940_v15, %v4838_v58  ;;  %v1942_v25 = vpop.f32.mrb[109].mxu0  ;;  %v3409_v47 = vpop.f32.mrb[205].mxu1 }
 0x2c7   :  { %v3669_v12 = vadd.f32 %v1942_v25, %v4846_v42  ;;  %v3410_v7 = vadd.f32 %v3409_v47, %v3408_v10  ;;  %v1944_v41 = vpop.f32.mrb[110].mxu0  ;;  %v3411_v38 = vpop.f32.mrb[206].mxu1  ;;  %2758 = vmatprep.mubr.bf16.mxu0 %v2410_v27  ;;  %v2411_v49 = vpack.c.bf16 %v2360_v16, %v2357_v36 }
 0x2c8   :  { %v3670_v31 = vadd.f32 %v1944_v41, %v4838_v58  ;;  %v1946_v28 = vpop.f32.mrb[111].mxu0  ;;  %v3412_v50 = vpop.f32.mrb[207].mxu1  ;;  %2759 = vmatmul.mubr.bf16.gmra.mrb[168].mxu0 %v2409_v59  ;;  %v2361_v40 = vmax.f32 %v3668_v32, 0.0 }
 0x2c9   :  { %v2265_v0 = vadd.f32 %v3410_v7, %v2104_v13  ;;  %v3671_v37 = vadd.f32 %v1946_v28, %v4846_v42  ;;  %v3413_v29 = vadd.f32 %v3412_v50, %v3411_v38  ;;  %3594 = vmatprep.mubr.bf16.mxu1 %v2411_v49  ;;  %v2362_v52 = vmax.f32 %v3669_v12, 0.0 }
 0x2ca   :  { %v2364_v8 = vmax.f32 %v3670_v31, 0.0 }
 0x2cb   :  { %v2365_v33 = vmax.f32 %v3671_v37, 0.0  ;;  %v2268_v14 = vadd.f32 %v3413_v29, %v2107_v57  ;;  %v2363_v43 = vmax.f32 %v2265_v0, 0.0 }
 0x2cc   :  { %v2412_v55 = vpack.c.bf16 %v2364_v8, %v2361_v40 }
 0x2cd   :  { %v2413_v62 = vpack.c.bf16 %v2365_v33, %v2362_v52  ;;  %v2366_v58 = vmax.f32 %v2268_v14, 0.0 }
 0x2cf   :  { %2766 = vmatprep.mubr.bf16.mxu0 %v2413_v62  ;;  %v2414_v21 = vpack.c.bf16 %v2366_v58, %v2363_v43 }
 0x2d0   :  { %2767 = vmatmul.mubr.bf16.gmra.mrb[172].mxu0 %v2412_v55 }
 0x2d1   :  { %3595 = vmatmul.mubr.bf16.gmra.mrb[236].mxu1 %v2414_v21 }
 0x32b   :  { %v3430_v39 = vpop.f32.mrb[112].mxu0 }
 0x32c   :  { %v3431_v51 = vpop.f32.mrb[113].mxu0 }
 0x32d   :  { %v3432_v19 = vadd.f32 %v3431_v51, %v3430_v39  ;;  %v3433_v9 = vpop.f32.mrb[114].mxu0 }
 0x32e   :  { %v3434_v42 = vpop.f32.mrb[115].mxu0 }
 0x32f   :  { %v3435_v56 = vadd.f32 %v3434_v42, %v3433_v9  ;;  %v2649_v34 = vadd.f32 %v3432_v19, %v4979_v45 }
 0x331   :  { %v2652_v23 = vadd.f32 %v3435_v56, %v4979_v45 }
 0x333   :  { %v3436_v61 = vpop.f32.mrb[116].mxu0 }
 0x334   :  { %v3437_v30 = vpop.f32.mrb[117].mxu0  ;;  %v3568_v5 = vpop.f32.mrb[208].mxu1 }
 0x335   :  { %v3438_v44 = vadd.f32 %v3437_v30, %v3436_v61  ;;  %v3439_v53 = vpop.f32.mrb[118].mxu0  ;;  %v2809_v48 = vpop.f32.mrb[209].mxu1 }
 0x336   :  { %v2810_v60 = vadd.f32 %v2809_v48, %v2649_v34  ;;  %v3440_v3 = vpop.f32.mrb[119].mxu0  ;;  %v3569_v26 = vpop.f32.mrb[210].mxu1 }
 0x337   :  { %v2657_v63 = vadd.f32 %v3438_v44, %v4979_v45  ;;  %v3441_v2 = vadd.f32 %v3440_v3, %v3439_v53  ;;  %v2812_v6 = vpop.f32.mrb[211].mxu1 }
 0x338   :  { %3892 = vtanh.f32 %v2810_v60  ;;  %v2813_v11 = vadd.f32 %v2812_v6, %v2652_v23 }
 0x339   :  { %v2818_v4 = vadd.f32 %v3568_v5, %v2657_v63  ;;  %v2660_v18 = vadd.f32 %v3441_v2, %v4979_v45 }
 0x33a   :  { %3894 = vtanh.f32 %v2813_v11 }
 0x33b   :  { %3896 = vtanh.f32 %v2818_v4  ;;  %v2821_v22 = vadd.f32 %v3569_v26, %v2660_v18  ;;  %v3442_v20 = vpop.f32.mrb[120].mxu0 }
 0x33c   :  { %v3443_v17 = vpop.f32.mrb[121].mxu0 }
 0x33d   :  { %3898 = vtanh.f32 %v2821_v22  ;;  %v3444_v54 = vadd.f32 %v3443_v17, %v3442_v20  ;;  %v3445_v24 = vpop.f32.mrb[122].mxu0 }
 0x33e   :  { %v3446_v46 = vpop.f32.mrb[123].mxu0 }
 0x33f   :  { %v3447_v1 = vadd.f32 %v3446_v46, %v3445_v24  ;;  %v2665_v15 = vadd.f32 %v3444_v54, %v4979_v45 }
 0x341   :  { %v2668_v41 = vadd.f32 %v3447_v1, %v4979_v45 }
 0x342   :  { %v3893_v35 = vpop.eup %3892 }
 0x343   :  { %2968 = vst [vmem:[%s5116_s7] sm:$0xff] %v3893_v35  ;;  %v3448_v59 = vpop.f32.mrb[124].mxu0 }
 0x344   :  { %v3895_v36 = vpop.eup %3894  ;;  %v3449_v27 = vpop.f32.mrb[125].mxu0 }
 0x345   :  { %v3572_v16 = vpop.f32.mrb[212].mxu1  ;;  %v3897_v10 = vpop.eup %3896  ;;  %2969 = vst [vmem:[%s5116_s7 + $0x8] sm:$0xff] %v3895_v36  ;;  %v3450_v32 = vadd.f32 %v3449_v27, %v3448_v59 }
 0x346   :  { %v3451_v25 = vpop.f32.mrb[126].mxu0  ;;  %v2825_v47 = vpop.f32.mrb[213].mxu1  ;;  %2970 = vst [vmem:[%s5116_s7 + $0x10] sm:$0xff] %v3897_v10 }
 0x347   :  { %v2826_v13 = vadd.f32 %v2825_v47, %v2665_v15  ;;  %v3452_v12 = vpop.f32.mrb[127].mxu0  ;;  %v3573_v7 = vpop.f32.mrb[214].mxu1  ;;  %v2673_v49 = vadd.f32 %v3450_v32, %v4979_v45 }
 0x348   :  { %v3899_v38 = vpop.eup %3898  ;;  %v3453_v31 = vadd.f32 %v3452_v12, %v3451_v25  ;;  %v2828_v28 = vpop.f32.mrb[215].mxu1 }
 0x349   :  { %2971 = vst [vmem:[%s5116_s7 + $0x18] sm:$0xff] %v3899_v38  ;;  %3900 = vtanh.f32 %v2826_v13  ;;  %v2829_v50 = vadd.f32 %v2828_v28, %v2668_v41  ;;  %v2834_v57 = vadd.f32 %v3572_v16, %v2673_v49 }
 0x34a   :  { %v2676_v0 = vadd.f32 %v3453_v31, %v4979_v45 }
 0x34b   :  { %3902 = vtanh.f32 %v2829_v50  ;;  %v3454_v29 = vpop.f32.mrb[128].mxu0 }
 0x34c   :  { %3904 = vtanh.f32 %v2834_v57  ;;  %v2837_v37 = vadd.f32 %v3573_v7, %v2676_v0  ;;  %v3455_v40 = vpop.f32.mrb[129].mxu0 }
 0x34d   :  { %v3456_v8 = vadd.f32 %v3455_v40, %v3454_v29  ;;  %v3457_v52 = vpop.f32.mrb[130].mxu0 }
 0x34e   :  { %3906 = vtanh.f32 %v2837_v37  ;;  %v3458_v33 = vpop.f32.mrb[131].mxu0 }
 0x34f   :  { %v3459_v14 = vadd.f32 %v3458_v33, %v3457_v52  ;;  %v2681_v39 = vadd.f32 %v3456_v8, %v4979_v45 }
 0x351   :  { %v2684_v5 = vadd.f32 %v3459_v14, %v4979_v45 }
 0x353   :  { %v3901_v55 = vpop.eup %3900  ;;  %v3460_v43 = vpop.f32.mrb[132].mxu0 }
 0x354   :  { %2972 = vst [vmem:[%s5116_s7 + $0x20] sm:$0xff] %v3901_v55  ;;  %v3461_v58 = vpop.f32.mrb[133].mxu0  ;;  %v3576_v21 = vpop.f32.mrb[216].mxu1 }
 0x355   :  { %v3903_v62 = vpop.eup %3902  ;;  %v3462_v19 = vadd.f32 %v3461_v58, %v3460_v43  ;;  %v3463_v9 = vpop.f32.mrb[134].mxu0 }
 0x356   :  { %v3905_v51 = vpop.eup %3904  ;;  %2973 = vst [vmem:[%s5116_s7 + $0x28] sm:$0xff] %v3903_v62  ;;  %v2841_v42 = vpop.f32.mrb[217].mxu1 }
 0x357   :  { %2974 = vst [vmem:[%s5116_s7 + $0x30] sm:$0xff] %v3905_v51  ;;  %v2842_v56 = vadd.f32 %v2841_v42, %v2681_v39  ;;  %v3464_v61 = vpop.f32.mrb[135].mxu0  ;;  %v3577_v30 = vpop.f32.mrb[218].mxu1  ;;  %v2689_v44 = vadd.f32 %v3462_v19, %v4979_v45 }
 0x358   :  { %v3907_v34 = vpop.eup %3906  ;;  %v3465_v53 = vadd.f32 %v3464_v61, %v3463_v9  ;;  %v2844_v48 = vpop.f32.mrb[219].mxu1 }
 0x359   :  { %2975 = vst [vmem:[%s5116_s7 + $0x38] sm:$0xff] %v3907_v34  ;;  %3908 = vtanh.f32 %v2842_v56  ;;  %v2845_v60 = vadd.f32 %v2844_v48, %v2684_v5  ;;  %v2850_v3 = vadd.f32 %v3576_v21, %v2689_v44 }
 0x35a   :  { %v2692_v26 = vadd.f32 %v3465_v53, %v4979_v45 }
 0x35b   :  { %3910 = vtanh.f32 %v2845_v60  ;;  %v3466_v63 = vpop.f32.mrb[136].mxu0 }
 0x35c   :  { %3912 = vtanh.f32 %v2850_v3  ;;  %v2853_v23 = vadd.f32 %v3577_v30, %v2692_v26  ;;  %v3467_v2 = vpop.f32.mrb[137].mxu0 }
 0x35d   :  { %v3468_v6 = vadd.f32 %v3467_v2, %v3466_v63  ;;  %v3469_v11 = vpop.f32.mrb[138].mxu0 }
 0x35e   :  { %3914 = vtanh.f32 %v2853_v23  ;;  %v3470_v4 = vpop.f32.mrb[139].mxu0 }
 0x35f   :  { %v3471_v18 = vadd.f32 %v3470_v4, %v3469_v11  ;;  %v2697_v46 = vadd.f32 %v3468_v6, %v4979_v45 }
 0x361   :  { %v2700_v10 = vadd.f32 %v3471_v18, %v4979_v45 }
 0x363   :  { %v3909_v22 = vpop.eup %3908  ;;  %v3472_v20 = vpop.f32.mrb[140].mxu0 }
 0x364   :  { %2976 = vst [vmem:[%s5116_s7 + $0x40] sm:$0xff] %v3909_v22  ;;  %v3473_v54 = vpop.f32.mrb[141].mxu0  ;;  %v3580_v24 = vpop.f32.mrb[220].mxu1 }
 0x365   :  { %v3911_v17 = vpop.eup %3910  ;;  %v3474_v35 = vadd.f32 %v3473_v54, %v3472_v20  ;;  %v3475_v59 = vpop.f32.mrb[142].mxu0 }
 0x366   :  { %v3913_v1 = vpop.eup %3912  ;;  %2977 = vst [vmem:[%s5116_s7 + $0x48] sm:$0xff] %v3911_v17  ;;  %v2857_v36 = vpop.f32.mrb[221].mxu1 }
 0x367   :  { %2978 = vst [vmem:[%s5116_s7 + $0x50] sm:$0xff] %v3913_v1  ;;  %v2858_v27 = vadd.f32 %v2857_v36, %v2697_v46  ;;  %v3476_v16 = vpop.f32.mrb[143].mxu0  ;;  %v3581_v15 = vpop.f32.mrb[222].mxu1  ;;  %v2705_v25 = vadd.f32 %v3474_v35, %v4979_v45 }
 0x368   :  { %v3915_v32 = vpop.eup %3914  ;;  %v3477_v47 = vadd.f32 %v3476_v16, %v3475_v59  ;;  %v2860_v13 = vpop.f32.mrb[223].mxu1 }
 0x369   :  { %2979 = vst [vmem:[%s5116_s7 + $0x58] sm:$0xff] %v3915_v32  ;;  %3916 = vtanh.f32 %v2858_v27  ;;  %v2861_v12 = vadd.f32 %v2860_v13, %v2700_v10  ;;  %v2866_v7 = vadd.f32 %v3580_v24, %v2705_v25 }
 0x36a   :  { %v2708_v41 = vadd.f32 %v3477_v47, %v4979_v45 }
 0x36b   :  { %3918 = vtanh.f32 %v2861_v12  ;;  %v3478_v49 = vpop.f32.mrb[144].mxu0 }
 0x36c   :  { %3920 = vtanh.f32 %v2866_v7  ;;  %v2869_v38 = vadd.f32 %v3581_v15, %v2708_v41  ;;  %v3479_v31 = vpop.f32.mrb[145].mxu0 }
 0x36d   :  { %v3480_v28 = vadd.f32 %v3479_v31, %v3478_v49  ;;  %v3481_v50 = vpop.f32.mrb[146].mxu0 }
 0x36e   :  { %3922 = vtanh.f32 %v2869_v38  ;;  %v3482_v57 = vpop.f32.mrb[147].mxu0 }
 0x36f   :  { %v3483_v0 = vadd.f32 %v3482_v57, %v3481_v50  ;;  %v2713_v33 = vadd.f32 %v3480_v28, %v4979_v45 }
 0x371   :  { %v2716_v51 = vadd.f32 %v3483_v0, %v4979_v45 }
 0x373   :  { %v3917_v37 = vpop.eup %3916  ;;  %v3484_v29 = vpop.f32.mrb[148].mxu0 }
 0x374   :  { %2980 = vst [vmem:[%s5116_s7 + $0x60] sm:$0xff] %v3917_v37  ;;  %v3485_v8 = vpop.f32.mrb[149].mxu0  ;;  %v3584_v52 = vpop.f32.mrb[224].mxu1 }
 0x375   :  { %v3919_v40 = vpop.eup %3918  ;;  %v3486_v55 = vadd.f32 %v3485_v8, %v3484_v29  ;;  %v3487_v43 = vpop.f32.mrb[150].mxu0 }
 0x376   :  { %v3921_v14 = vpop.eup %3920  ;;  %2981 = vst [vmem:[%s5116_s7 + $0x68] sm:$0xff] %v3919_v40  ;;  %v2873_v62 = vpop.f32.mrb[225].mxu1 }
 0x377   :  { %2982 = vst [vmem:[%s5116_s7 + $0x70] sm:$0xff] %v3921_v14  ;;  %v2874_v58 = vadd.f32 %v2873_v62, %v2713_v33  ;;  %v3488_v21 = vpop.f32.mrb[151].mxu0  ;;  %v3585_v39 = vpop.f32.mrb[226].mxu1  ;;  %v2721_v9 = vadd.f32 %v3486_v55, %v4979_v45 }
 0x378   :  { %v3923_v19 = vpop.eup %3922  ;;  %v3489_v42 = vadd.f32 %v3488_v21, %v3487_v43  ;;  %v2876_v56 = vpop.f32.mrb[227].mxu1 }
 0x379   :  { %2983 = vst [vmem:[%s5116_s7 + $0x78] sm:$0xff] %v3923_v19  ;;  %3924 = vtanh.f32 %v2874_v58  ;;  %v2877_v61 = vadd.f32 %v2876_v56, %v2716_v51  ;;  %v2882_v30 = vadd.f32 %v3584_v52, %v2721_v9 }
 0x37a   :  { %v2724_v5 = vadd.f32 %v3489_v42, %v4979_v45 }
 0x37b   :  { %3926 = vtanh.f32 %v2877_v61  ;;  %v3490_v44 = vpop.f32.mrb[152].mxu0 }
 0x37c   :  { %3928 = vtanh.f32 %v2882_v30  ;;  %v2885_v34 = vadd.f32 %v3585_v39, %v2724_v5  ;;  %v3491_v53 = vpop.f32.mrb[153].mxu0 }
 0x37d   :  { %v3492_v48 = vadd.f32 %v3491_v53, %v3490_v44  ;;  %v3493_v60 = vpop.f32.mrb[154].mxu0 }
 0x37e   :  { %3930 = vtanh.f32 %v2885_v34  ;;  %v3494_v3 = vpop.f32.mrb[155].mxu0 }
 0x37f   :  { %v3495_v26 = vadd.f32 %v3494_v3, %v3493_v60  ;;  %v2729_v4 = vadd.f32 %v3492_v48, %v4979_v45 }
 0x381   :  { %v2732_v1 = vadd.f32 %v3495_v26, %v4979_v45 }
 0x383   :  { %v3925_v23 = vpop.eup %3924  ;;  %v3496_v63 = vpop.f32.mrb[156].mxu0 }
 0x384   :  { %2984 = vst [vmem:[%s5116_s7 + $0x80] sm:$0xff] %v3925_v23  ;;  %v3497_v6 = vpop.f32.mrb[157].mxu0  ;;  %v3588_v11 = vpop.f32.mrb[228].mxu1 }
 0x385   :  { %v3927_v2 = vpop.eup %3926  ;;  %v3498_v22 = vadd.f32 %v3497_v6, %v3496_v63  ;;  %v3499_v20 = vpop.f32.mrb[158].mxu0 }
 0x386   :  { %v3929_v18 = vpop.eup %3928  ;;  %2985 = vst [vmem:[%s5116_s7 + $0x88] sm:$0xff] %v3927_v2  ;;  %v2889_v17 = vpop.f32.mrb[229].mxu1 }
 0x387   :  { %2986 = vst [vmem:[%s5116_s7 + $0x90] sm:$0xff] %v3929_v18  ;;  %v2890_v54 = vadd.f32 %v2889_v17, %v2729_v4  ;;  %v3500_v24 = vpop.f32.mrb[159].mxu0  ;;  %v3589_v46 = vpop.f32.mrb[230].mxu1  ;;  %v2737_v59 = vadd.f32 %v3498_v22, %v4979_v45 }
 0x388   :  { %v3931_v35 = vpop.eup %3930  ;;  %v3501_v36 = vadd.f32 %v3500_v24, %v3499_v20  ;;  %v2892_v27 = vpop.f32.mrb[231].mxu1 }
 0x389   :  { %2987 = vst [vmem:[%s5116_s7 + $0x98] sm:$0xff] %v3931_v35  ;;  %3932 = vtanh.f32 %v2890_v54  ;;  %v2893_v16 = vadd.f32 %v2892_v27, %v2732_v1  ;;  %v2898_v15 = vadd.f32 %v3588_v11, %v2737_v59 }
 0x38a   :  { %v2740_v10 = vadd.f32 %v3501_v36, %v4979_v45 }
 0x38b   :  { %3934 = vtanh.f32 %v2893_v16  ;;  %v3502_v25 = vpop.f32.mrb[160].mxu0 }
 0x38c   :  { %3936 = vtanh.f32 %v2898_v15  ;;  %v2901_v32 = vadd.f32 %v3589_v46, %v2740_v10  ;;  %v3503_v47 = vpop.f32.mrb[161].mxu0 }
 0x38d   :  { %v3504_v13 = vadd.f32 %v3503_v47, %v3502_v25  ;;  %v3505_v12 = vpop.f32.mrb[162].mxu0 }
 0x38e   :  { %3938 = vtanh.f32 %v2901_v32  ;;  %v3506_v7 = vpop.f32.mrb[163].mxu0 }
 0x38f   :  { %v3507_v41 = vadd.f32 %v3506_v7, %v3505_v12  ;;  %v2745_v57 = vadd.f32 %v3504_v13, %v4979_v45 }
 0x391   :  { %v2748_v14 = vadd.f32 %v3507_v41, %v4979_v45 }
 0x393   :  { %v3933_v38 = vpop.eup %3932  ;;  %v3508_v49 = vpop.f32.mrb[164].mxu0 }
 0x394   :  { %2988 = vst [vmem:[%s5116_s7 + $0xa0] sm:$0xff] %v3933_v38  ;;  %v3509_v28 = vpop.f32.mrb[165].mxu0  ;;  %v3592_v50 = vpop.f32.mrb[232].mxu1 }
 0x395   :  { %v3935_v31 = vpop.eup %3934  ;;  %v3510_v37 = vadd.f32 %v3509_v28, %v3508_v49  ;;  %v3511_v29 = vpop.f32.mrb[166].mxu0 }
 0x396   :  { %v3937_v0 = vpop.eup %3936  ;;  %2989 = vst [vmem:[%s5116_s7 + $0xa8] sm:$0xff] %v3935_v31  ;;  %v2905_v40 = vpop.f32.mrb[233].mxu1 }
 0x397   :  { %2990 = vst [vmem:[%s5116_s7 + $0xb0] sm:$0xff] %v3937_v0  ;;  %v2906_v8 = vadd.f32 %v2905_v40, %v2745_v57  ;;  %v3512_v52 = vpop.f32.mrb[167].mxu0  ;;  %v3593_v33 = vpop.f32.mrb[234].mxu1  ;;  %v2753_v43 = vadd.f32 %v3510_v37, %v4979_v45 }
 0x398   :  { %v3939_v55 = vpop.eup %3938  ;;  %v3513_v62 = vadd.f32 %v3512_v52, %v3511_v29  ;;  %v2908_v58 = vpop.f32.mrb[235].mxu1 }
 0x399   :  { %2991 = vst [vmem:[%s5116_s7 + $0xb8] sm:$0xff] %v3939_v55  ;;  %3940 = vtanh.f32 %v2906_v8  ;;  %v2909_v21 = vadd.f32 %v2908_v58, %v2748_v14  ;;  %v2914_v39 = vadd.f32 %v3592_v50, %v2753_v43 }
 0x39a   :  { %v2756_v51 = vadd.f32 %v3513_v62, %v4979_v45 }
 0x39b   :  { %3942 = vtanh.f32 %v2909_v21  ;;  %v3514_v9 = vpop.f32.mrb[168].mxu0 }
 0x39c   :  { %3944 = vtanh.f32 %v2914_v39  ;;  %v2917_v19 = vadd.f32 %v3593_v33, %v2756_v51  ;;  %v3515_v42 = vpop.f32.mrb[169].mxu0 }
 0x39d   :  { %v3516_v56 = vadd.f32 %v3515_v42, %v3514_v9  ;;  %v3517_v61 = vpop.f32.mrb[170].mxu0 }
 0x39e   :  { %3946 = vtanh.f32 %v2917_v19  ;;  %v3518_v30 = vpop.f32.mrb[171].mxu0 }
 0x39f   :  { %v3519_v5 = vadd.f32 %v3518_v30, %v3517_v61  ;;  %v2761_v3 = vadd.f32 %v3516_v56, %v4979_v45 }
 0x3a1   :  { %v2764_v18 = vadd.f32 %v3519_v5, %v4979_v45 }
 0x3a3   :  { %v3941_v34 = vpop.eup %3940  ;;  %v3520_v44 = vpop.f32.mrb[172].mxu0 }
 0x3a4   :  { %2992 = vst [vmem:[%s5116_s7 + $0xc0] sm:$0xff] %v3941_v34  ;;  %v3521_v48 = vpop.f32.mrb[173].mxu0  ;;  %v3596_v60 = vpop.f32.mrb[236].mxu1 }
 0x3a5   :  { %v3943_v53 = vpop.eup %3942  ;;  %v3522_v23 = vadd.f32 %v3521_v48, %v3520_v44  ;;  %v3523_v63 = vpop.f32.mrb[174].mxu0 }
 0x3a6   :  { %v3945_v26 = vpop.eup %3944  ;;  %2993 = vst [vmem:[%s5116_s7 + $0xc8] sm:$0xff] %v3943_v53  ;;  %v2921_v2 = vpop.f32.mrb[237].mxu1 }
 0x3a7   :  { %2994 = vst [vmem:[%s5116_s7 + $0xd0] sm:$0xff] %v3945_v26  ;;  %v2922_v6 = vadd.f32 %v2921_v2, %v2761_v3  ;;  %v3524_v11 = vpop.f32.mrb[175].mxu0  ;;  %v3597_v4 = vpop.f32.mrb[238].mxu1  ;;  %v2769_v20 = vadd.f32 %v3522_v23, %v4979_v45 }
 0x3a8   :  { %v3947_v22 = vpop.eup %3946  ;;  %v3525_v17 = vadd.f32 %v3524_v11, %v3523_v63  ;;  %v2924_v54 = vpop.f32.mrb[239].mxu1 }
 0x3a9   :  { %2995 = vst [vmem:[%s5116_s7 + $0xd8] sm:$0xff] %v3947_v22  ;;  %3948 = vtanh.f32 %v2922_v6  ;;  %v2925_v24 = vadd.f32 %v2924_v54, %v2764_v18  ;;  %v2930_v46 = vadd.f32 %v3596_v60, %v2769_v20 }
 0x3aa   :  { %v2772_v1 = vadd.f32 %v3525_v17, %v4979_v45 }
 0x3ab   :  { %3950 = vtanh.f32 %v2925_v24 }
 0x3ac   :  { %3952 = vtanh.f32 %v2930_v46  ;;  %v2933_v35 = vadd.f32 %v3597_v4, %v2772_v1 }
 0x3ae   :  { %3954 = vtanh.f32 %v2933_v35 }
 0x3b3   :  { %v3949_v59 = vpop.eup %3948 }
 0x3b4   :  { %2996 = vst [vmem:[%s5116_s7 + $0xe0] sm:$0xff] %v3949_v59 }
 0x3b5   :  { %v3951_v36 = vpop.eup %3950 }
 0x3b6   :  { %v3953_v27 = vpop.eup %3952  ;;  %2997 = vst [vmem:[%s5116_s7 + $0xe8] sm:$0xff] %v3951_v36 }
 0x3b7   :  { %2998 = vst [vmem:[%s5116_s7 + $0xf0] sm:$0xff] %v3953_v27 }
 0x3b8   :  { %v3955_v45 = vpop.eup %3954 }
 0x3b9   :  { %2999 = vst [vmem:[%s5116_s7 + $0xf8] sm:$0xff] %v3955_v45 }
 0x3ba   :  { %3004 = vsyncpa [#allocation3], 1 }

</bundles_post_ra>
